<compile_context>
chip_gen: v6e
topology: v6e:2x2x1
jax: 0.10.0
libtpu: 0.0.40
codegen_flags: <defaults>
</compile_context>

<pallas_src>
import math

import jax
import jax.numpy as jnp
from jax.experimental import pallas as pl
from jax.experimental.pallas import tpu as pltpu

# ----------------------------- config (small, consistent with the module) ----
N_EMBD = 32          # n_embd == channel dim C of both conv feature maps
N_HEAD = 4
HEAD_DIM = N_EMBD // N_HEAD
BLOCK_EXP = 4
N_LAYER = 2
HIDDEN = BLOCK_EXP * N_EMBD

BZ = 2
SEQ_LEN = 1
IMG_VERT_ANCHORS = 4
IMG_HORZ_ANCHORS = 4
LIDAR_VERT_ANCHORS = 2
LIDAR_HORZ_ANCHORS = 4
RADAR_TIME_FRAMES = 1

N_IMG_TOK = SEQ_LEN * IMG_VERT_ANCHORS * IMG_HORZ_ANCHORS                 # 16
N_RAD_TOK = RADAR_TIME_FRAMES * LIDAR_VERT_ANCHORS * LIDAR_HORZ_ANCHORS   # 8
T_TOTAL = N_IMG_TOK + N_RAD_TOK                                           # 24
N_TOK = BZ * T_TOTAL                                                      # 48

GPT_LINEAR_INIT_MEAN = 0.0
GPT_LINEAR_INIT_STD = 0.02
GPT_LN_INIT_WEIGHT = 1.0
LN_EPS = 1e-5
NEG_INF = -1e30


# ----------------------------- in-kernel helpers ------------------------------
def _layernorm_cm(x, w, b):
    # x: (C, N) channel-major; normalize over channels (axis 0). w/b: (C, 1).
    mu = jnp.mean(x, axis=0, keepdims=True)
    var = jnp.mean((x - mu) ** 2, axis=0, keepdims=True)
    return (x - mu) * jax.lax.rsqrt(var + LN_EPS) * w + b


# ----------------------------- the Pallas kernel ------------------------------
def gpt_kernel(x_ref, bias_ref,
               ln1w_ref, ln1b_ref,
               wqkv_ref, bqkv_ref, wp_ref, bp_ref,
               ln2w_ref, ln2b_ref,
               w1_ref, b1_ref, w2_ref, b2_ref,
               lnfw_ref, lnfb_ref,
               out_ref):
    C, HD, NH = N_EMBD, HEAD_DIM, N_HEAD

    x = x_ref[...]                # (C, N_TOK) f32, pos-emb already added
    bias = bias_ref[...]          # (N_TOK, N_TOK) additive block-diag batch mask

    for l in range(N_LAYER):      # static unroll (N_LAYER == 2)
        # --------------------------- attention ---------------------------
        xn = _layernorm_cm(x, ln1w_ref[l], ln1b_ref[l])
        # fused QKV: one (3C, C) @ (C, N) MXU pass; 1/sqrt(HD) is folded into
        # the q rows of the (bf16) weights / bias on the host side.
        qkv = jnp.dot(wqkv_ref[l], xn.astype(jnp.bfloat16),
                      preferred_element_type=jnp.float32) + bqkv_ref[l]  # (3C, N)

        y_heads = []
        for h in range(NH):       # aligned sublane slices (HD == 8)
            lo = h * HD
            q_h = qkv[lo:lo + HD, :].astype(jnp.bfloat16)            # (HD, N)
            k_h = qkv[C + lo:C + lo + HD, :].astype(jnp.bfloat16)    # (HD, N)
            v_h = qkv[2 * C + lo:2 * C + lo + HD, :].astype(jnp.bfloat16)

            # scores: contract the HD (sublane) axis directly -> (N, N)
            att = jax.lax.dot_general(
                q_h, k_h, (((0,), (0,)), ((), ())),
                preferred_element_type=jnp.float32)
            att = att + bias                           # mask cross-batch pairs
            att = att - jnp.max(att, axis=-1, keepdims=True)
            att = jnp.exp(att)                         # f32 softmax (v5e-safe)
            att = att * pl.reciprocal(
                jnp.sum(att, axis=-1, keepdims=True), approx=True)

            # y_h[d, t] = sum_s v_h[d, s] * att[t, s]  -> (HD, N)
            y_heads.append(jax.lax.dot_general(
                v_h, att.astype(jnp.bfloat16), (((1,), (1,)), ((), ())),
                preferred_element_type=jnp.float32))

        y = jnp.concatenate(y_heads, axis=0)           # (C, N) sublane concat

        # output projection + residual (attn/resid dropout = identity)
        x = x + jnp.dot(wp_ref[l], y.astype(jnp.bfloat16),
                        preferred_element_type=jnp.float32) + bp_ref[l]

        # ----------------------------- MLP -------------------------------
        xn = _layernorm_cm(x, ln2w_ref[l], ln2b_ref[l])
        h1 = jnp.dot(w1_ref[l], xn.astype(jnp.bfloat16),
                     preferred_element_type=jnp.float32) + b1_ref[l]   # (H, N)
        h1 = jnp.maximum(h1, 0.0)                                       # ReLU
        x = x + jnp.dot(w2_ref[l], h1.astype(jnp.bfloat16),
                        preferred_element_type=jnp.float32) + b2_ref[l]

    x = _layernorm_cm(x, lnfw_ref[...], lnfb_ref[...])
    out_ref[...] = x                                    # one lane-dense store


# ----------------------------- params ----------------------------------------
def init_params(key):
    ks = jax.random.split(key, 4)

    def lin_w(k, shape):
        return GPT_LINEAR_INIT_MEAN + GPT_LINEAR_INIT_STD * jax.random.normal(
            k, shape, jnp.float32)

    L, C, H = N_LAYER, N_EMBD, HIDDEN
    params = dict(
        # pos_emb stored transposed (C, T); nn.Parameter(zeros) in the module
        pos_emb=jnp.zeros((C, T_TOTAL), jnp.float32),
        ln1_w=jnp.full((L, C, 1), GPT_LN_INIT_WEIGHT, jnp.float32),
        ln1_b=jnp.zeros((L, C, 1), jnp.float32),
        # fused QKV weight, PyTorch (out, in) orientation, rows = [q; k; v]
        w_qkv=lin_w(ks[0], (L, 3 * C, C)),
        b_qkv=jnp.zeros((L, 3 * C, 1), jnp.float32),
        wp=lin_w(ks[1], (L, C, C)),
        bp=jnp.zeros((L, C, 1), jnp.float32),
        ln2_w=jnp.full((L, C, 1), GPT_LN_INIT_WEIGHT, jnp.float32),
        ln2_b=jnp.zeros((L, C, 1), jnp.float32),
        w1=lin_w(ks[2], (L, H, C)),
        b1=jnp.zeros((L, H, 1), jnp.float32),
        w2=lin_w(ks[3], (L, C, H)),
        b2=jnp.zeros((L, C, 1), jnp.float32),
        lnf_w=jnp.full((C, 1), GPT_LN_INIT_WEIGHT, jnp.float32),
        lnf_b=jnp.zeros((C, 1), jnp.float32),
    )
    return params


# ----------------------------- wrapper ----------------------------------------
def _whole(shape):
    n = len(shape)
    return pl.BlockSpec(shape, lambda i, n=n: (0,) * n)


def gpt_forward(image_tensor, radar_tensor, params):
    bz, C = radar_tensor.shape[0], image_tensor.shape[1]
    img_h, img_w = image_tensor.shape[2], image_tensor.shape[3]
    rad_h, rad_w = radar_tensor.shape[2], radar_tensor.shape[3]
    assert C == N_EMBD and bz == BZ
    assert img_h * img_w == N_IMG_TOK and rad_h * rad_w == N_RAD_TOK

    # ---- XLA-side glue: everything here touches only ~KB-sized arrays ----
    # NCHW -> channel-major tokens, concat image|radar per batch, add pos-emb,
    # merge the batch into the lane axis: lanes = [b0 tokens | b1 tokens].
    img_tok = image_tensor.reshape(bz, C, N_IMG_TOK)
    rad_tok = radar_tensor.reshape(bz, C, N_RAD_TOK)
    tok = jnp.concatenate([img_tok, rad_tok], axis=-1)          # (bz, C, T)
    tok = tok + params["pos_emb"][None]                         # embd dropout = id
    x_in = jnp.transpose(tok, (1, 0, 2)).reshape(C, N_TOK)      # (C, 48)

    # additive attention bias: block-diagonal over batches (kernel keeps all
    # batches on one lane axis, so cross-batch scores are masked to ~-inf).
    tok_batch = jnp.arange(N_TOK, dtype=jnp.int32) // T_TOTAL
    attn_bias = jnp.where(tok_batch[:, None] == tok_batch[None, :],
                          0.0, NEG_INF).astype(jnp.float32)      # (48, 48)

    # pre-cast weights to bf16 (MXU operands) and fold 1/sqrt(HD) into q rows.
    scale = 1.0 / math.sqrt(HEAD_DIM)
    w_qkv = params["w_qkv"].at[:, :C, :].multiply(scale).astype(jnp.bfloat16)
    b_qkv = params["b_qkv"].at[:, :C, :].multiply(scale)         # f32 bias
    wp = params["wp"].astype(jnp.bfloat16)
    w1 = params["w1"].astype(jnp.bfloat16)
    w2 = params["w2"].astype(jnp.bfloat16)

    L, H = N_LAYER, HIDDEN
    in_specs = [
        _whole((C, N_TOK)),                            # token slab (pos-emb added)
        _whole((N_TOK, N_TOK)),                        # attention bias
        _whole((L, C, 1)), _whole((L, C, 1)),          # ln1 w/b
        _whole((L, 3 * C, C)), _whole((L, 3 * C, 1)),  # fused QKV w/b
        _whole((L, C, C)), _whole((L, C, 1)),          # proj w/b
        _whole((L, C, 1)), _whole((L, C, 1)),          # ln2 w/b
        _whole((L, H, C)), _whole((L, H, 1)),          # mlp fc1 w/b
        _whole((L, C, H)), _whole((L, C, 1)),          # mlp fc2 w/b
        _whole((C, 1)), _whole((C, 1)),                # ln_f w/b
    ]

    out = pl.pallas_call(
        gpt_kernel,
        out_shape=jax.ShapeDtypeStruct((C, N_TOK), jnp.float32),
        grid_spec=pltpu.PrefetchScalarGridSpec(
            num_scalar_prefetch=0,
            grid=(1,),                       # single step: whole batch merged
            in_specs=in_specs,
            out_specs=_whole((C, N_TOK)),    # single lane-dense output
        ),
        compiler_params=pltpu.CompilerParams(
            dimension_semantics=("arbitrary",)),
    )(x_in, attn_bias,
      params["ln1_w"], params["ln1_b"],
      w_qkv, b_qkv, wp, params["bp"],
      params["ln2_w"], params["ln2_b"],
      w1, params["b1"], w2, params["b2"],
      params["lnf_w"], params["lnf_b"])

    # split the single (C, 48) slab back into NCHW outputs (tiny XLA glue).
    out3 = jnp.transpose(out.reshape(C, bz, T_TOTAL), (1, 0, 2))  # (bz, C, T)
    image_out = out3[:, :, :N_IMG_TOK].reshape(bz * SEQ_LEN, C, img_h, img_w)
    radar_out = out3[:, :, N_IMG_TOK:].reshape(bz, C, rad_h, rad_w)
    return image_out, radar_out


# ----------------------------- pure-JAX reference ------------------------------
def gpt_reference(image_tensor, radar_tensor, p):
    bz = radar_tensor.shape[0]
    C = N_EMBD
    img_h, img_w = image_tensor.shape[2], image_tensor.shape[3]
    rad_h, rad_w = radar_tensor.shape[2], radar_tensor.shape[3]
    img_tok = jnp.transpose(image_tensor, (0, 2, 3, 1)).reshape(bz, -1, C)
    rad_tok = jnp.transpose(radar_tensor, (0, 2, 3, 1)).reshape(bz, -1, C)
    x = jnp.concatenate([img_tok, rad_tok], axis=1) + p["pos_emb"].T[None]

    def ln(x, w, b):
        w = w.reshape(-1)
        b = b.reshape(-1)
        mu = jnp.mean(x, axis=-1, keepdims=True)
        var = jnp.mean((x - mu) ** 2, axis=-1, keepdims=True)
        return (x - mu) / jnp.sqrt(var + LN_EPS) * w + b

    for l in range(N_LAYER):
        xn = ln(x, p["ln1_w"][l], p["ln1_b"][l])
        wq, wk, wv = (p["w_qkv"][l][:C], p["w_qkv"][l][C:2 * C],
                      p["w_qkv"][l][2 * C:])
        bq, bk, bv = (p["b_qkv"][l][:C, 0], p["b_qkv"][l][C:2 * C, 0],
                      p["b_qkv"][l][2 * C:, 0])
        q = xn @ wq.T + bq
        k = xn @ wk.T + bk
        v = xn @ wv.T + bv
        q = q.reshape(bz, T_TOTAL, N_HEAD, HEAD_DIM).transpose(0, 2, 1, 3)
        k = k.reshape(bz, T_TOTAL, N_HEAD, HEAD_DIM).transpose(0, 2, 1, 3)
        v = v.reshape(bz, T_TOTAL, N_HEAD, HEAD_DIM).transpose(0, 2, 1, 3)
        att = jnp.einsum("bhtd,bhsd->bhts", q, k) / math.sqrt(HEAD_DIM)
        att = jax.nn.softmax(att, axis=-1)
        y = jnp.einsum("bhts,bhsd->bhtd", att, v)
        y = y.transpose(0, 2, 1, 3).reshape(bz, T_TOTAL, C)
        x = x + (y @ p["wp"][l].T + p["bp"][l][:, 0])
        xn = ln(x, p["ln2_w"][l], p["ln2_b"][l])
        h = jax.nn.relu(xn @ p["w1"][l].T + p["b1"][l][:, 0])
        x = x + (h @ p["w2"][l].T + p["b2"][l][:, 0])
    x = ln(x, p["lnf_w"], p["lnf_b"])
    image_out = jnp.transpose(
        x[:, :N_IMG_TOK, :].reshape(bz, img_h, img_w, C), (0, 3, 1, 2))
    radar_out = jnp.transpose(
        x[:, N_IMG_TOK:, :].reshape(bz, rad_h, rad_w, C), (0, 3, 1, 2))
    return image_out, radar_out


# ----------------------------- main --------------------------------------------
if __name__ == "__main__":
    key = jax.random.PRNGKey(0)
    k_img, k_rad, k_par = jax.random.split(key, 3)

    # image_tensor: (B*4*seq_len collapsed == bz, C, H, W); radar: (bz, C, H, W)
    image_tensor = jax.random.normal(
        k_img, (BZ, N_EMBD, IMG_VERT_ANCHORS, IMG_HORZ_ANCHORS), jnp.float32)
    radar_tensor = jax.random.normal(
        k_rad, (BZ, N_EMBD, LIDAR_VERT_ANCHORS, LIDAR_HORZ_ANCHORS), jnp.float32)

    params = init_params(k_par)

    fwd = jax.jit(gpt_forward)
    img_out, rad_out = fwd(image_tensor, radar_tensor, params)
    jax.block_until_ready((img_out, rad_out))

    # sanity check against a pure-JAX f32 reference (tolerance covers the
    # bf16 MXU operands and the approx reciprocal in the softmax).
    ref_img, ref_rad = gpt_reference(image_tensor, radar_tensor, params)
    err = max(float(jnp.max(jnp.abs(img_out - ref_img))),
              float(jnp.max(jnp.abs(rad_out - ref_rad))))
    assert err < 2e-2, f"kernel/reference mismatch: max abs err {err}"

    print("KERNEL_OK")
</pallas_src>

<mosaic_0001>
module attributes {stable_mosaic.version = 11 : i64} {
  func.func @gpt_kernel(%arg0: i32, %arg1: memref<32x48xf32, #tpu.memory_space<vmem>>, %arg2: memref<48x48xf32, #tpu.memory_space<vmem>>, %arg3: memref<2x32x1xf32, #tpu.memory_space<vmem>>, %arg4: memref<2x32x1xf32, #tpu.memory_space<vmem>>, %arg5: memref<2x96x32xbf16, #tpu.memory_space<vmem>>, %arg6: memref<2x96x1xf32, #tpu.memory_space<vmem>>, %arg7: memref<2x32x32xbf16, #tpu.memory_space<vmem>>, %arg8: memref<2x32x1xf32, #tpu.memory_space<vmem>>, %arg9: memref<2x32x1xf32, #tpu.memory_space<vmem>>, %arg10: memref<2x32x1xf32, #tpu.memory_space<vmem>>, %arg11: memref<2x128x32xbf16, #tpu.memory_space<vmem>>, %arg12: memref<2x128x1xf32, #tpu.memory_space<vmem>>, %arg13: memref<2x32x128xbf16, #tpu.memory_space<vmem>>, %arg14: memref<2x32x1xf32, #tpu.memory_space<vmem>>, %arg15: memref<32x1xf32, #tpu.memory_space<vmem>>, %arg16: memref<32x1xf32, #tpu.memory_space<vmem>>, %arg17: memref<32x48xf32, #tpu.memory_space<vmem>>) attributes {dimension_semantics = [#tpu.dimension_semantics<arbitrary>], iteration_bounds = array<i64: 1>, scalar_prefetch = 0 : i64, scratch_operands = 0 : i64, tpu.core_type = #tpu.core_type<tc>, window_params = [{pipeline_mode = #tpu.pipeline_mode<synchronous>, transform_indices = @transform_0, window_bounds = array<i64: 32, 48>}, {pipeline_mode = #tpu.pipeline_mode<synchronous>, transform_indices = @transform_1, window_bounds = array<i64: 48, 48>}, {pipeline_mode = #tpu.pipeline_mode<synchronous>, transform_indices = @transform_2, window_bounds = array<i64: 2, 32, 1>}, {pipeline_mode = #tpu.pipeline_mode<synchronous>, transform_indices = @transform_3, window_bounds = array<i64: 2, 32, 1>}, {pipeline_mode = #tpu.pipeline_mode<synchronous>, transform_indices = @transform_4, window_bounds = array<i64: 2, 96, 32>}, {pipeline_mode = #tpu.pipeline_mode<synchronous>, transform_indices = @transform_5, window_bounds = array<i64: 2, 96, 1>}, {pipeline_mode = #tpu.pipeline_mode<synchronous>, transform_indices = @transform_6, window_bounds = array<i64: 2, 32, 32>}, {pipeline_mode = #tpu.pipeline_mode<synchronous>, transform_indices = @transform_7, window_bounds = array<i64: 2, 32, 1>}, {pipeline_mode = #tpu.pipeline_mode<synchronous>, transform_indices = @transform_8, window_bounds = array<i64: 2, 32, 1>}, {pipeline_mode = #tpu.pipeline_mode<synchronous>, transform_indices = @transform_9, window_bounds = array<i64: 2, 32, 1>}, {pipeline_mode = #tpu.pipeline_mode<synchronous>, transform_indices = @transform_10, window_bounds = array<i64: 2, 128, 32>}, {pipeline_mode = #tpu.pipeline_mode<synchronous>, transform_indices = @transform_11, window_bounds = array<i64: 2, 128, 1>}, {pipeline_mode = #tpu.pipeline_mode<synchronous>, transform_indices = @transform_12, window_bounds = array<i64: 2, 32, 128>}, {pipeline_mode = #tpu.pipeline_mode<synchronous>, transform_indices = @transform_13, window_bounds = array<i64: 2, 32, 1>}, {pipeline_mode = #tpu.pipeline_mode<synchronous>, transform_indices = @transform_14, window_bounds = array<i64: 32, 1>}, {pipeline_mode = #tpu.pipeline_mode<synchronous>, transform_indices = @transform_15, window_bounds = array<i64: 32, 1>}, {pipeline_mode = #tpu.pipeline_mode<synchronous>, transform_indices = @transform_16, window_bounds = array<i64: 32, 48>}]} {
    %c0 = arith.constant 0 : index
    %c0_0 = arith.constant 0 : index
    %0 = vector.load %arg1[%c0, %c0_0] : memref<32x48xf32, #tpu.memory_space<vmem>>, vector<32x48xf32>
    %c0_1 = arith.constant 0 : index
    %c0_2 = arith.constant 0 : index
    %1 = vector.load %arg2[%c0_1, %c0_2] : memref<48x48xf32, #tpu.memory_space<vmem>>, vector<48x48xf32>
    %c0_3 = arith.constant 0 : index
    %c0_4 = arith.constant 0 : index
    %c0_5 = arith.constant 0 : index
    %2 = vector.load %arg3[%c0_3, %c0_4, %c0_5] : memref<2x32x1xf32, #tpu.memory_space<vmem>>, vector<1x32x1xf32>
    %3 = vector.shape_cast %2 : vector<1x32x1xf32> to vector<32x1xf32>
    %c0_6 = arith.constant 0 : index
    %c0_7 = arith.constant 0 : index
    %c0_8 = arith.constant 0 : index
    %4 = vector.load %arg4[%c0_6, %c0_7, %c0_8] : memref<2x32x1xf32, #tpu.memory_space<vmem>>, vector<1x32x1xf32>
    %5 = vector.shape_cast %4 : vector<1x32x1xf32> to vector<32x1xf32>
    %cst = arith.constant dense<0.000000e+00> : vector<48xf32>
    %6 = vector.multi_reduction <add>, %0, %cst [0] : vector<32x48xf32> to vector<48xf32>
    %7 = vector.shape_cast %6 : vector<48xf32> to vector<1x48xf32>
    %cst_9 = arith.constant 3.200000e+01 : f32
    %8 = vector.broadcast %cst_9 : f32 to vector<1x48xf32>
    %9 = arith.divf %7, %8 : vector<1x48xf32>
    %10 = vector.broadcast %9 : vector<1x48xf32> to vector<32x48xf32>
    %11 = arith.subf %0, %10 : vector<32x48xf32>
    %12 = arith.mulf %11, %11 : vector<32x48xf32>
    %cst_10 = arith.constant dense<0.000000e+00> : vector<48xf32>
    %13 = vector.multi_reduction <add>, %12, %cst_10 [0] : vector<32x48xf32> to vector<48xf32>
    %14 = vector.shape_cast %13 : vector<48xf32> to vector<1x48xf32>
    %cst_11 = arith.constant 3.200000e+01 : f32
    %15 = vector.broadcast %cst_11 : f32 to vector<1x48xf32>
    %16 = arith.divf %14, %15 : vector<1x48xf32>
    %17 = vector.broadcast %9 : vector<1x48xf32> to vector<32x48xf32>
    %18 = arith.subf %0, %17 : vector<32x48xf32>
    %cst_12 = arith.constant 9.99999974E-6 : f32
    %19 = vector.broadcast %cst_12 : f32 to vector<1x48xf32>
    %20 = arith.addf %16, %19 : vector<1x48xf32>
    %21 = math.rsqrt %20 : vector<1x48xf32>
    %22 = vector.broadcast %21 : vector<1x48xf32> to vector<32x48xf32>
    %23 = arith.mulf %18, %22 : vector<32x48xf32>
    %24 = vector.broadcast %3 : vector<32x1xf32> to vector<32x48xf32>
    %25 = arith.mulf %23, %24 : vector<32x48xf32>
    %26 = vector.broadcast %5 : vector<32x1xf32> to vector<32x48xf32>
    %27 = arith.addf %25, %26 : vector<32x48xf32>
    %c0_13 = arith.constant 0 : index
    %c0_14 = arith.constant 0 : index
    %c0_15 = arith.constant 0 : index
    %28 = vector.load %arg5[%c0_13, %c0_14, %c0_15] : memref<2x96x32xbf16, #tpu.memory_space<vmem>>, vector<1x96x32xbf16>
    %29 = vector.shape_cast %28 : vector<1x96x32xbf16> to vector<96x32xbf16>
    %30 = arith.truncf %27 : vector<32x48xf32> to vector<32x48xbf16>
    %cst_16 = arith.constant dense<0.000000e+00> : vector<96x48xf32>
    %31 = tpu.matmul %29, %30, %cst_16 {dimension_numbers = #tpu.dot_dimension_numbers<[1], [0], [0], [1], [0, 0, 1, 1], [], []>} : vector<96x32xbf16>, vector<32x48xbf16>, vector<96x48xf32> -> vector<96x48xf32>
    %c0_17 = arith.constant 0 : index
    %c0_18 = arith.constant 0 : index
    %c0_19 = arith.constant 0 : index
    %32 = vector.load %arg6[%c0_17, %c0_18, %c0_19] : memref<2x96x1xf32, #tpu.memory_space<vmem>>, vector<1x96x1xf32>
    %33 = vector.shape_cast %32 : vector<1x96x1xf32> to vector<96x1xf32>
    %34 = vector.broadcast %33 : vector<96x1xf32> to vector<96x48xf32>
    %35 = arith.addf %31, %34 : vector<96x48xf32>
    %36 = vector.extract_strided_slice %35 {offsets = [0, 0], sizes = [8, 48], strides = [1, 1]} : vector<96x48xf32> to vector<8x48xf32>
    %37 = arith.truncf %36 : vector<8x48xf32> to vector<8x48xbf16>
    %38 = vector.extract_strided_slice %35 {offsets = [32, 0], sizes = [8, 48], strides = [1, 1]} : vector<96x48xf32> to vector<8x48xf32>
    %39 = arith.truncf %38 : vector<8x48xf32> to vector<8x48xbf16>
    %40 = vector.extract_strided_slice %35 {offsets = [64, 0], sizes = [8, 48], strides = [1, 1]} : vector<96x48xf32> to vector<8x48xf32>
    %41 = arith.truncf %40 : vector<8x48xf32> to vector<8x48xbf16>
    %cst_20 = arith.constant dense<0.000000e+00> : vector<48x48xf32>
    %42 = tpu.matmul %37, %39, %cst_20 {dimension_numbers = #tpu.dot_dimension_numbers<[0], [0], [1], [1], [0, 1, 1, 1], [], []>} : vector<8x48xbf16>, vector<8x48xbf16>, vector<48x48xf32> -> vector<48x48xf32>
    %43 = arith.addf %42, %1 : vector<48x48xf32>
    %cst_21 = arith.constant dense<0xFF800000> : vector<48xf32>
    %44 = vector.multi_reduction <maximumf>, %43, %cst_21 [1] : vector<48x48xf32> to vector<48xf32>
    %45 = vector.shape_cast %44 : vector<48xf32> to vector<48x1xf32>
    %46 = vector.broadcast %45 : vector<48x1xf32> to vector<48x48xf32>
    %47 = arith.subf %43, %46 : vector<48x48xf32>
    %48 = math.exp %47 : vector<48x48xf32>
    %cst_22 = arith.constant dense<0.000000e+00> : vector<48xf32>
    %49 = vector.multi_reduction <add>, %48, %cst_22 [1] : vector<48x48xf32> to vector<48xf32>
    %50 = vector.shape_cast %49 : vector<48xf32> to vector<48x1xf32>
    %51 = tpu.reciprocal %50 {approx = true} : vector<48x1xf32> -> vector<48x1xf32>
    %52 = vector.broadcast %51 : vector<48x1xf32> to vector<48x48xf32>
    %53 = arith.mulf %48, %52 : vector<48x48xf32>
    %54 = arith.truncf %53 : vector<48x48xf32> to vector<48x48xbf16>
    %cst_23 = arith.constant dense<0.000000e+00> : vector<8x48xf32>
    %55 = tpu.matmul %41, %54, %cst_23 {dimension_numbers = #tpu.dot_dimension_numbers<[1], [1], [0], [0], [0, 0, 1, 0], [], []>} : vector<8x48xbf16>, vector<48x48xbf16>, vector<8x48xf32> -> vector<8x48xf32>
    %56 = vector.extract_strided_slice %35 {offsets = [8, 0], sizes = [8, 48], strides = [1, 1]} : vector<96x48xf32> to vector<8x48xf32>
    %57 = arith.truncf %56 : vector<8x48xf32> to vector<8x48xbf16>
    %58 = vector.extract_strided_slice %35 {offsets = [40, 0], sizes = [8, 48], strides = [1, 1]} : vector<96x48xf32> to vector<8x48xf32>
    %59 = arith.truncf %58 : vector<8x48xf32> to vector<8x48xbf16>
    %60 = vector.extract_strided_slice %35 {offsets = [72, 0], sizes = [8, 48], strides = [1, 1]} : vector<96x48xf32> to vector<8x48xf32>
    %61 = arith.truncf %60 : vector<8x48xf32> to vector<8x48xbf16>
    %cst_24 = arith.constant dense<0.000000e+00> : vector<48x48xf32>
    %62 = tpu.matmul %57, %59, %cst_24 {dimension_numbers = #tpu.dot_dimension_numbers<[0], [0], [1], [1], [0, 1, 1, 1], [], []>} : vector<8x48xbf16>, vector<8x48xbf16>, vector<48x48xf32> -> vector<48x48xf32>
    %63 = arith.addf %62, %1 : vector<48x48xf32>
    %cst_25 = arith.constant dense<0xFF800000> : vector<48xf32>
    %64 = vector.multi_reduction <maximumf>, %63, %cst_25 [1] : vector<48x48xf32> to vector<48xf32>
    %65 = vector.shape_cast %64 : vector<48xf32> to vector<48x1xf32>
    %66 = vector.broadcast %65 : vector<48x1xf32> to vector<48x48xf32>
    %67 = arith.subf %63, %66 : vector<48x48xf32>
    %68 = math.exp %67 : vector<48x48xf32>
    %cst_26 = arith.constant dense<0.000000e+00> : vector<48xf32>
    %69 = vector.multi_reduction <add>, %68, %cst_26 [1] : vector<48x48xf32> to vector<48xf32>
    %70 = vector.shape_cast %69 : vector<48xf32> to vector<48x1xf32>
    %71 = tpu.reciprocal %70 {approx = true} : vector<48x1xf32> -> vector<48x1xf32>
    %72 = vector.broadcast %71 : vector<48x1xf32> to vector<48x48xf32>
    %73 = arith.mulf %68, %72 : vector<48x48xf32>
    %74 = arith.truncf %73 : vector<48x48xf32> to vector<48x48xbf16>
    %cst_27 = arith.constant dense<0.000000e+00> : vector<8x48xf32>
    %75 = tpu.matmul %61, %74, %cst_27 {dimension_numbers = #tpu.dot_dimension_numbers<[1], [1], [0], [0], [0, 0, 1, 0], [], []>} : vector<8x48xbf16>, vector<48x48xbf16>, vector<8x48xf32> -> vector<8x48xf32>
    %76 = vector.extract_strided_slice %35 {offsets = [16, 0], sizes = [8, 48], strides = [1, 1]} : vector<96x48xf32> to vector<8x48xf32>
    %77 = arith.truncf %76 : vector<8x48xf32> to vector<8x48xbf16>
    %78 = vector.extract_strided_slice %35 {offsets = [48, 0], sizes = [8, 48], strides = [1, 1]} : vector<96x48xf32> to vector<8x48xf32>
    %79 = arith.truncf %78 : vector<8x48xf32> to vector<8x48xbf16>
    %80 = vector.extract_strided_slice %35 {offsets = [80, 0], sizes = [8, 48], strides = [1, 1]} : vector<96x48xf32> to vector<8x48xf32>
    %81 = arith.truncf %80 : vector<8x48xf32> to vector<8x48xbf16>
    %cst_28 = arith.constant dense<0.000000e+00> : vector<48x48xf32>
    %82 = tpu.matmul %77, %79, %cst_28 {dimension_numbers = #tpu.dot_dimension_numbers<[0], [0], [1], [1], [0, 1, 1, 1], [], []>} : vector<8x48xbf16>, vector<8x48xbf16>, vector<48x48xf32> -> vector<48x48xf32>
    %83 = arith.addf %82, %1 : vector<48x48xf32>
    %cst_29 = arith.constant dense<0xFF800000> : vector<48xf32>
    %84 = vector.multi_reduction <maximumf>, %83, %cst_29 [1] : vector<48x48xf32> to vector<48xf32>
    %85 = vector.shape_cast %84 : vector<48xf32> to vector<48x1xf32>
    %86 = vector.broadcast %85 : vector<48x1xf32> to vector<48x48xf32>
    %87 = arith.subf %83, %86 : vector<48x48xf32>
    %88 = math.exp %87 : vector<48x48xf32>
    %cst_30 = arith.constant dense<0.000000e+00> : vector<48xf32>
    %89 = vector.multi_reduction <add>, %88, %cst_30 [1] : vector<48x48xf32> to vector<48xf32>
    %90 = vector.shape_cast %89 : vector<48xf32> to vector<48x1xf32>
    %91 = tpu.reciprocal %90 {approx = true} : vector<48x1xf32> -> vector<48x1xf32>
    %92 = vector.broadcast %91 : vector<48x1xf32> to vector<48x48xf32>
    %93 = arith.mulf %88, %92 : vector<48x48xf32>
    %94 = arith.truncf %93 : vector<48x48xf32> to vector<48x48xbf16>
    %cst_31 = arith.constant dense<0.000000e+00> : vector<8x48xf32>
    %95 = tpu.matmul %81, %94, %cst_31 {dimension_numbers = #tpu.dot_dimension_numbers<[1], [1], [0], [0], [0, 0, 1, 0], [], []>} : vector<8x48xbf16>, vector<48x48xbf16>, vector<8x48xf32> -> vector<8x48xf32>
    %96 = vector.extract_strided_slice %35 {offsets = [24, 0], sizes = [8, 48], strides = [1, 1]} : vector<96x48xf32> to vector<8x48xf32>
    %97 = arith.truncf %96 : vector<8x48xf32> to vector<8x48xbf16>
    %98 = vector.extract_strided_slice %35 {offsets = [56, 0], sizes = [8, 48], strides = [1, 1]} : vector<96x48xf32> to vector<8x48xf32>
    %99 = arith.truncf %98 : vector<8x48xf32> to vector<8x48xbf16>
    %100 = vector.extract_strided_slice %35 {offsets = [88, 0], sizes = [8, 48], strides = [1, 1]} : vector<96x48xf32> to vector<8x48xf32>
    %101 = arith.truncf %100 : vector<8x48xf32> to vector<8x48xbf16>
    %cst_32 = arith.constant dense<0.000000e+00> : vector<48x48xf32>
    %102 = tpu.matmul %97, %99, %cst_32 {dimension_numbers = #tpu.dot_dimension_numbers<[0], [0], [1], [1], [0, 1, 1, 1], [], []>} : vector<8x48xbf16>, vector<8x48xbf16>, vector<48x48xf32> -> vector<48x48xf32>
    %103 = arith.addf %102, %1 : vector<48x48xf32>
    %cst_33 = arith.constant dense<0xFF800000> : vector<48xf32>
    %104 = vector.multi_reduction <maximumf>, %103, %cst_33 [1] : vector<48x48xf32> to vector<48xf32>
    %105 = vector.shape_cast %104 : vector<48xf32> to vector<48x1xf32>
    %106 = vector.broadcast %105 : vector<48x1xf32> to vector<48x48xf32>
    %107 = arith.subf %103, %106 : vector<48x48xf32>
    %108 = math.exp %107 : vector<48x48xf32>
    %cst_34 = arith.constant dense<0.000000e+00> : vector<48xf32>
    %109 = vector.multi_reduction <add>, %108, %cst_34 [1] : vector<48x48xf32> to vector<48xf32>
    %110 = vector.shape_cast %109 : vector<48xf32> to vector<48x1xf32>
    %111 = tpu.reciprocal %110 {approx = true} : vector<48x1xf32> -> vector<48x1xf32>
    %112 = vector.broadcast %111 : vector<48x1xf32> to vector<48x48xf32>
    %113 = arith.mulf %108, %112 : vector<48x48xf32>
    %114 = arith.truncf %113 : vector<48x48xf32> to vector<48x48xbf16>
    %cst_35 = arith.constant dense<0.000000e+00> : vector<8x48xf32>
    %115 = tpu.matmul %101, %114, %cst_35 {dimension_numbers = #tpu.dot_dimension_numbers<[1], [1], [0], [0], [0, 0, 1, 0], [], []>} : vector<8x48xbf16>, vector<48x48xbf16>, vector<8x48xf32> -> vector<8x48xf32>
    %116 = tpu.concatenate %55, %75, %95, %115 in 0 : vector<8x48xf32>, vector<8x48xf32>, vector<8x48xf32>, vector<8x48xf32> -> vector<32x48xf32>
    %c0_36 = arith.constant 0 : index
    %c0_37 = arith.constant 0 : index
    %c0_38 = arith.constant 0 : index
    %117 = vector.load %arg7[%c0_36, %c0_37, %c0_38] : memref<2x32x32xbf16, #tpu.memory_space<vmem>>, vector<1x32x32xbf16>
    %118 = vector.shape_cast %117 : vector<1x32x32xbf16> to vector<32x32xbf16>
    %119 = arith.truncf %116 : vector<32x48xf32> to vector<32x48xbf16>
    %cst_39 = arith.constant dense<0.000000e+00> : vector<32x48xf32>
    %120 = tpu.matmul %118, %119, %cst_39 {dimension_numbers = #tpu.dot_dimension_numbers<[1], [0], [0], [1], [0, 0, 1, 1], [], []>} : vector<32x32xbf16>, vector<32x48xbf16>, vector<32x48xf32> -> vector<32x48xf32>
    %121 = arith.addf %0, %120 : vector<32x48xf32>
    %c0_40 = arith.constant 0 : index
    %c0_41 = arith.constant 0 : index
    %c0_42 = arith.constant 0 : index
    %122 = vector.load %arg8[%c0_40, %c0_41, %c0_42] : memref<2x32x1xf32, #tpu.memory_space<vmem>>, vector<1x32x1xf32>
    %123 = vector.shape_cast %122 : vector<1x32x1xf32> to vector<32x1xf32>
    %124 = vector.broadcast %123 : vector<32x1xf32> to vector<32x48xf32>
    %125 = arith.addf %121, %124 : vector<32x48xf32>
    %c0_43 = arith.constant 0 : index
    %c0_44 = arith.constant 0 : index
    %c0_45 = arith.constant 0 : index
    %126 = vector.load %arg9[%c0_43, %c0_44, %c0_45] : memref<2x32x1xf32, #tpu.memory_space<vmem>>, vector<1x32x1xf32>
    %127 = vector.shape_cast %126 : vector<1x32x1xf32> to vector<32x1xf32>
    %c0_46 = arith.constant 0 : index
    %c0_47 = arith.constant 0 : index
    %c0_48 = arith.constant 0 : index
    %128 = vector.load %arg10[%c0_46, %c0_47, %c0_48] : memref<2x32x1xf32, #tpu.memory_space<vmem>>, vector<1x32x1xf32>
    %129 = vector.shape_cast %128 : vector<1x32x1xf32> to vector<32x1xf32>
    %cst_49 = arith.constant dense<0.000000e+00> : vector<48xf32>
    %130 = vector.multi_reduction <add>, %125, %cst_49 [0] : vector<32x48xf32> to vector<48xf32>
    %131 = vector.shape_cast %130 : vector<48xf32> to vector<1x48xf32>
    %cst_50 = arith.constant 3.200000e+01 : f32
    %132 = vector.broadcast %cst_50 : f32 to vector<1x48xf32>
    %133 = arith.divf %131, %132 : vector<1x48xf32>
    %134 = vector.broadcast %133 : vector<1x48xf32> to vector<32x48xf32>
    %135 = arith.subf %125, %134 : vector<32x48xf32>
    %136 = arith.mulf %135, %135 : vector<32x48xf32>
    %cst_51 = arith.constant dense<0.000000e+00> : vector<48xf32>
    %137 = vector.multi_reduction <add>, %136, %cst_51 [0] : vector<32x48xf32> to vector<48xf32>
    %138 = vector.shape_cast %137 : vector<48xf32> to vector<1x48xf32>
    %cst_52 = arith.constant 3.200000e+01 : f32
    %139 = vector.broadcast %cst_52 : f32 to vector<1x48xf32>
    %140 = arith.divf %138, %139 : vector<1x48xf32>
    %141 = vector.broadcast %133 : vector<1x48xf32> to vector<32x48xf32>
    %142 = arith.subf %125, %141 : vector<32x48xf32>
    %cst_53 = arith.constant 9.99999974E-6 : f32
    %143 = vector.broadcast %cst_53 : f32 to vector<1x48xf32>
    %144 = arith.addf %140, %143 : vector<1x48xf32>
    %145 = math.rsqrt %144 : vector<1x48xf32>
    %146 = vector.broadcast %145 : vector<1x48xf32> to vector<32x48xf32>
    %147 = arith.mulf %142, %146 : vector<32x48xf32>
    %148 = vector.broadcast %127 : vector<32x1xf32> to vector<32x48xf32>
    %149 = arith.mulf %147, %148 : vector<32x48xf32>
    %150 = vector.broadcast %129 : vector<32x1xf32> to vector<32x48xf32>
    %151 = arith.addf %149, %150 : vector<32x48xf32>
    %c0_54 = arith.constant 0 : index
    %c0_55 = arith.constant 0 : index
    %c0_56 = arith.constant 0 : index
    %152 = vector.load %arg11[%c0_54, %c0_55, %c0_56] : memref<2x128x32xbf16, #tpu.memory_space<vmem>>, vector<1x128x32xbf16>
    %153 = vector.shape_cast %152 : vector<1x128x32xbf16> to vector<128x32xbf16>
    %154 = arith.truncf %151 : vector<32x48xf32> to vector<32x48xbf16>
    %cst_57 = arith.constant dense<0.000000e+00> : vector<128x48xf32>
    %155 = tpu.matmul %153, %154, %cst_57 {dimension_numbers = #tpu.dot_dimension_numbers<[1], [0], [0], [1], [0, 0, 1, 1], [], []>} : vector<128x32xbf16>, vector<32x48xbf16>, vector<128x48xf32> -> vector<128x48xf32>
    %c0_58 = arith.constant 0 : index
    %c0_59 = arith.constant 0 : index
    %c0_60 = arith.constant 0 : index
    %156 = vector.load %arg12[%c0_58, %c0_59, %c0_60] : memref<2x128x1xf32, #tpu.memory_space<vmem>>, vector<1x128x1xf32>
    %157 = vector.shape_cast %156 : vector<1x128x1xf32> to vector<128x1xf32>
    %158 = vector.broadcast %157 : vector<128x1xf32> to vector<128x48xf32>
    %159 = arith.addf %155, %158 : vector<128x48xf32>
    %cst_61 = arith.constant 0.000000e+00 : f32
    %160 = vector.broadcast %cst_61 : f32 to vector<128x48xf32>
    %161 = arith.maximumf %159, %160 : vector<128x48xf32>
    %c0_62 = arith.constant 0 : index
    %c0_63 = arith.constant 0 : index
    %c0_64 = arith.constant 0 : index
    %162 = vector.load %arg13[%c0_62, %c0_63, %c0_64] : memref<2x32x128xbf16, #tpu.memory_space<vmem>>, vector<1x32x128xbf16>
    %163 = vector.shape_cast %162 : vector<1x32x128xbf16> to vector<32x128xbf16>
    %164 = arith.truncf %161 : vector<128x48xf32> to vector<128x48xbf16>
    %cst_65 = arith.constant dense<0.000000e+00> : vector<32x48xf32>
    %165 = tpu.matmul %163, %164, %cst_65 {dimension_numbers = #tpu.dot_dimension_numbers<[1], [0], [0], [1], [0, 0, 1, 1], [], []>} : vector<32x128xbf16>, vector<128x48xbf16>, vector<32x48xf32> -> vector<32x48xf32>
    %166 = arith.addf %125, %165 : vector<32x48xf32>
    %c0_66 = arith.constant 0 : index
    %c0_67 = arith.constant 0 : index
    %c0_68 = arith.constant 0 : index
    %167 = vector.load %arg14[%c0_66, %c0_67, %c0_68] : memref<2x32x1xf32, #tpu.memory_space<vmem>>, vector<1x32x1xf32>
    %168 = vector.shape_cast %167 : vector<1x32x1xf32> to vector<32x1xf32>
    %169 = vector.broadcast %168 : vector<32x1xf32> to vector<32x48xf32>
    %170 = arith.addf %166, %169 : vector<32x48xf32>
    %c1 = arith.constant 1 : index
    %c0_69 = arith.constant 0 : index
    %c0_70 = arith.constant 0 : index
    %171 = vector.load %arg3[%c1, %c0_69, %c0_70] : memref<2x32x1xf32, #tpu.memory_space<vmem>>, vector<1x32x1xf32>
    %172 = vector.shape_cast %171 : vector<1x32x1xf32> to vector<32x1xf32>
    %c1_71 = arith.constant 1 : index
    %c0_72 = arith.constant 0 : index
    %c0_73 = arith.constant 0 : index
    %173 = vector.load %arg4[%c1_71, %c0_72, %c0_73] : memref<2x32x1xf32, #tpu.memory_space<vmem>>, vector<1x32x1xf32>
    %174 = vector.shape_cast %173 : vector<1x32x1xf32> to vector<32x1xf32>
    %cst_74 = arith.constant dense<0.000000e+00> : vector<48xf32>
    %175 = vector.multi_reduction <add>, %170, %cst_74 [0] : vector<32x48xf32> to vector<48xf32>
    %176 = vector.shape_cast %175 : vector<48xf32> to vector<1x48xf32>
    %cst_75 = arith.constant 3.200000e+01 : f32
    %177 = vector.broadcast %cst_75 : f32 to vector<1x48xf32>
    %178 = arith.divf %176, %177 : vector<1x48xf32>
    %179 = vector.broadcast %178 : vector<1x48xf32> to vector<32x48xf32>
    %180 = arith.subf %170, %179 : vector<32x48xf32>
    %181 = arith.mulf %180, %180 : vector<32x48xf32>
    %cst_76 = arith.constant dense<0.000000e+00> : vector<48xf32>
    %182 = vector.multi_reduction <add>, %181, %cst_76 [0] : vector<32x48xf32> to vector<48xf32>
    %183 = vector.shape_cast %182 : vector<48xf32> to vector<1x48xf32>
    %cst_77 = arith.constant 3.200000e+01 : f32
    %184 = vector.broadcast %cst_77 : f32 to vector<1x48xf32>
    %185 = arith.divf %183, %184 : vector<1x48xf32>
    %186 = vector.broadcast %178 : vector<1x48xf32> to vector<32x48xf32>
    %187 = arith.subf %170, %186 : vector<32x48xf32>
    %cst_78 = arith.constant 9.99999974E-6 : f32
    %188 = vector.broadcast %cst_78 : f32 to vector<1x48xf32>
    %189 = arith.addf %185, %188 : vector<1x48xf32>
    %190 = math.rsqrt %189 : vector<1x48xf32>
    %191 = vector.broadcast %190 : vector<1x48xf32> to vector<32x48xf32>
    %192 = arith.mulf %187, %191 : vector<32x48xf32>
    %193 = vector.broadcast %172 : vector<32x1xf32> to vector<32x48xf32>
    %194 = arith.mulf %192, %193 : vector<32x48xf32>
    %195 = vector.broadcast %174 : vector<32x1xf32> to vector<32x48xf32>
    %196 = arith.addf %194, %195 : vector<32x48xf32>
    %c1_79 = arith.constant 1 : index
    %c0_80 = arith.constant 0 : index
    %c0_81 = arith.constant 0 : index
    %197 = vector.load %arg5[%c1_79, %c0_80, %c0_81] : memref<2x96x32xbf16, #tpu.memory_space<vmem>>, vector<1x96x32xbf16>
    %198 = vector.shape_cast %197 : vector<1x96x32xbf16> to vector<96x32xbf16>
    %199 = arith.truncf %196 : vector<32x48xf32> to vector<32x48xbf16>
    %cst_82 = arith.constant dense<0.000000e+00> : vector<96x48xf32>
    %200 = tpu.matmul %198, %199, %cst_82 {dimension_numbers = #tpu.dot_dimension_numbers<[1], [0], [0], [1], [0, 0, 1, 1], [], []>} : vector<96x32xbf16>, vector<32x48xbf16>, vector<96x48xf32> -> vector<96x48xf32>
    %c1_83 = arith.constant 1 : index
    %c0_84 = arith.constant 0 : index
    %c0_85 = arith.constant 0 : index
    %201 = vector.load %arg6[%c1_83, %c0_84, %c0_85] : memref<2x96x1xf32, #tpu.memory_space<vmem>>, vector<1x96x1xf32>
    %202 = vector.shape_cast %201 : vector<1x96x1xf32> to vector<96x1xf32>
    %203 = vector.broadcast %202 : vector<96x1xf32> to vector<96x48xf32>
    %204 = arith.addf %200, %203 : vector<96x48xf32>
    %205 = vector.extract_strided_slice %204 {offsets = [0, 0], sizes = [8, 48], strides = [1, 1]} : vector<96x48xf32> to vector<8x48xf32>
    %206 = arith.truncf %205 : vector<8x48xf32> to vector<8x48xbf16>
    %207 = vector.extract_strided_slice %204 {offsets = [32, 0], sizes = [8, 48], strides = [1, 1]} : vector<96x48xf32> to vector<8x48xf32>
    %208 = arith.truncf %207 : vector<8x48xf32> to vector<8x48xbf16>
    %209 = vector.extract_strided_slice %204 {offsets = [64, 0], sizes = [8, 48], strides = [1, 1]} : vector<96x48xf32> to vector<8x48xf32>
    %210 = arith.truncf %209 : vector<8x48xf32> to vector<8x48xbf16>
    %cst_86 = arith.constant dense<0.000000e+00> : vector<48x48xf32>
    %211 = tpu.matmul %206, %208, %cst_86 {dimension_numbers = #tpu.dot_dimension_numbers<[0], [0], [1], [1], [0, 1, 1, 1], [], []>} : vector<8x48xbf16>, vector<8x48xbf16>, vector<48x48xf32> -> vector<48x48xf32>
    %212 = arith.addf %211, %1 : vector<48x48xf32>
    %cst_87 = arith.constant dense<0xFF800000> : vector<48xf32>
    %213 = vector.multi_reduction <maximumf>, %212, %cst_87 [1] : vector<48x48xf32> to vector<48xf32>
    %214 = vector.shape_cast %213 : vector<48xf32> to vector<48x1xf32>
    %215 = vector.broadcast %214 : vector<48x1xf32> to vector<48x48xf32>
    %216 = arith.subf %212, %215 : vector<48x48xf32>
    %217 = math.exp %216 : vector<48x48xf32>
    %cst_88 = arith.constant dense<0.000000e+00> : vector<48xf32>
    %218 = vector.multi_reduction <add>, %217, %cst_88 [1] : vector<48x48xf32> to vector<48xf32>
    %219 = vector.shape_cast %218 : vector<48xf32> to vector<48x1xf32>
    %220 = tpu.reciprocal %219 {approx = true} : vector<48x1xf32> -> vector<48x1xf32>
    %221 = vector.broadcast %220 : vector<48x1xf32> to vector<48x48xf32>
    %222 = arith.mulf %217, %221 : vector<48x48xf32>
    %223 = arith.truncf %222 : vector<48x48xf32> to vector<48x48xbf16>
    %cst_89 = arith.constant dense<0.000000e+00> : vector<8x48xf32>
    %224 = tpu.matmul %210, %223, %cst_89 {dimension_numbers = #tpu.dot_dimension_numbers<[1], [1], [0], [0], [0, 0, 1, 0], [], []>} : vector<8x48xbf16>, vector<48x48xbf16>, vector<8x48xf32> -> vector<8x48xf32>
    %225 = vector.extract_strided_slice %204 {offsets = [8, 0], sizes = [8, 48], strides = [1, 1]} : vector<96x48xf32> to vector<8x48xf32>
    %226 = arith.truncf %225 : vector<8x48xf32> to vector<8x48xbf16>
    %227 = vector.extract_strided_slice %204 {offsets = [40, 0], sizes = [8, 48], strides = [1, 1]} : vector<96x48xf32> to vector<8x48xf32>
    %228 = arith.truncf %227 : vector<8x48xf32> to vector<8x48xbf16>
    %229 = vector.extract_strided_slice %204 {offsets = [72, 0], sizes = [8, 48], strides = [1, 1]} : vector<96x48xf32> to vector<8x48xf32>
    %230 = arith.truncf %229 : vector<8x48xf32> to vector<8x48xbf16>
    %cst_90 = arith.constant dense<0.000000e+00> : vector<48x48xf32>
    %231 = tpu.matmul %226, %228, %cst_90 {dimension_numbers = #tpu.dot_dimension_numbers<[0], [0], [1], [1], [0, 1, 1, 1], [], []>} : vector<8x48xbf16>, vector<8x48xbf16>, vector<48x48xf32> -> vector<48x48xf32>
    %232 = arith.addf %231, %1 : vector<48x48xf32>
    %cst_91 = arith.constant dense<0xFF800000> : vector<48xf32>
    %233 = vector.multi_reduction <maximumf>, %232, %cst_91 [1] : vector<48x48xf32> to vector<48xf32>
    %234 = vector.shape_cast %233 : vector<48xf32> to vector<48x1xf32>
    %235 = vector.broadcast %234 : vector<48x1xf32> to vector<48x48xf32>
    %236 = arith.subf %232, %235 : vector<48x48xf32>
    %237 = math.exp %236 : vector<48x48xf32>
    %cst_92 = arith.constant dense<0.000000e+00> : vector<48xf32>
    %238 = vector.multi_reduction <add>, %237, %cst_92 [1] : vector<48x48xf32> to vector<48xf32>
    %239 = vector.shape_cast %238 : vector<48xf32> to vector<48x1xf32>
    %240 = tpu.reciprocal %239 {approx = true} : vector<48x1xf32> -> vector<48x1xf32>
    %241 = vector.broadcast %240 : vector<48x1xf32> to vector<48x48xf32>
    %242 = arith.mulf %237, %241 : vector<48x48xf32>
    %243 = arith.truncf %242 : vector<48x48xf32> to vector<48x48xbf16>
    %cst_93 = arith.constant dense<0.000000e+00> : vector<8x48xf32>
    %244 = tpu.matmul %230, %243, %cst_93 {dimension_numbers = #tpu.dot_dimension_numbers<[1], [1], [0], [0], [0, 0, 1, 0], [], []>} : vector<8x48xbf16>, vector<48x48xbf16>, vector<8x48xf32> -> vector<8x48xf32>
    %245 = vector.extract_strided_slice %204 {offsets = [16, 0], sizes = [8, 48], strides = [1, 1]} : vector<96x48xf32> to vector<8x48xf32>
    %246 = arith.truncf %245 : vector<8x48xf32> to vector<8x48xbf16>
    %247 = vector.extract_strided_slice %204 {offsets = [48, 0], sizes = [8, 48], strides = [1, 1]} : vector<96x48xf32> to vector<8x48xf32>
    %248 = arith.truncf %247 : vector<8x48xf32> to vector<8x48xbf16>
    %249 = vector.extract_strided_slice %204 {offsets = [80, 0], sizes = [8, 48], strides = [1, 1]} : vector<96x48xf32> to vector<8x48xf32>
    %250 = arith.truncf %249 : vector<8x48xf32> to vector<8x48xbf16>
    %cst_94 = arith.constant dense<0.000000e+00> : vector<48x48xf32>
    %251 = tpu.matmul %246, %248, %cst_94 {dimension_numbers = #tpu.dot_dimension_numbers<[0], [0], [1], [1], [0, 1, 1, 1], [], []>} : vector<8x48xbf16>, vector<8x48xbf16>, vector<48x48xf32> -> vector<48x48xf32>
    %252 = arith.addf %251, %1 : vector<48x48xf32>
    %cst_95 = arith.constant dense<0xFF800000> : vector<48xf32>
    %253 = vector.multi_reduction <maximumf>, %252, %cst_95 [1] : vector<48x48xf32> to vector<48xf32>
    %254 = vector.shape_cast %253 : vector<48xf32> to vector<48x1xf32>
    %255 = vector.broadcast %254 : vector<48x1xf32> to vector<48x48xf32>
    %256 = arith.subf %252, %255 : vector<48x48xf32>
    %257 = math.exp %256 : vector<48x48xf32>
    %cst_96 = arith.constant dense<0.000000e+00> : vector<48xf32>
    %258 = vector.multi_reduction <add>, %257, %cst_96 [1] : vector<48x48xf32> to vector<48xf32>
    %259 = vector.shape_cast %258 : vector<48xf32> to vector<48x1xf32>
    %260 = tpu.reciprocal %259 {approx = true} : vector<48x1xf32> -> vector<48x1xf32>
    %261 = vector.broadcast %260 : vector<48x1xf32> to vector<48x48xf32>
    %262 = arith.mulf %257, %261 : vector<48x48xf32>
    %263 = arith.truncf %262 : vector<48x48xf32> to vector<48x48xbf16>
    %cst_97 = arith.constant dense<0.000000e+00> : vector<8x48xf32>
    %264 = tpu.matmul %250, %263, %cst_97 {dimension_numbers = #tpu.dot_dimension_numbers<[1], [1], [0], [0], [0, 0, 1, 0], [], []>} : vector<8x48xbf16>, vector<48x48xbf16>, vector<8x48xf32> -> vector<8x48xf32>
    %265 = vector.extract_strided_slice %204 {offsets = [24, 0], sizes = [8, 48], strides = [1, 1]} : vector<96x48xf32> to vector<8x48xf32>
    %266 = arith.truncf %265 : vector<8x48xf32> to vector<8x48xbf16>
    %267 = vector.extract_strided_slice %204 {offsets = [56, 0], sizes = [8, 48], strides = [1, 1]} : vector<96x48xf32> to vector<8x48xf32>
    %268 = arith.truncf %267 : vector<8x48xf32> to vector<8x48xbf16>
    %269 = vector.extract_strided_slice %204 {offsets = [88, 0], sizes = [8, 48], strides = [1, 1]} : vector<96x48xf32> to vector<8x48xf32>
    %270 = arith.truncf %269 : vector<8x48xf32> to vector<8x48xbf16>
    %cst_98 = arith.constant dense<0.000000e+00> : vector<48x48xf32>
    %271 = tpu.matmul %266, %268, %cst_98 {dimension_numbers = #tpu.dot_dimension_numbers<[0], [0], [1], [1], [0, 1, 1, 1], [], []>} : vector<8x48xbf16>, vector<8x48xbf16>, vector<48x48xf32> -> vector<48x48xf32>
    %272 = arith.addf %271, %1 : vector<48x48xf32>
    %cst_99 = arith.constant dense<0xFF800000> : vector<48xf32>
    %273 = vector.multi_reduction <maximumf>, %272, %cst_99 [1] : vector<48x48xf32> to vector<48xf32>
    %274 = vector.shape_cast %273 : vector<48xf32> to vector<48x1xf32>
    %275 = vector.broadcast %274 : vector<48x1xf32> to vector<48x48xf32>
    %276 = arith.subf %272, %275 : vector<48x48xf32>
    %277 = math.exp %276 : vector<48x48xf32>
    %cst_100 = arith.constant dense<0.000000e+00> : vector<48xf32>
    %278 = vector.multi_reduction <add>, %277, %cst_100 [1] : vector<48x48xf32> to vector<48xf32>
    %279 = vector.shape_cast %278 : vector<48xf32> to vector<48x1xf32>
    %280 = tpu.reciprocal %279 {approx = true} : vector<48x1xf32> -> vector<48x1xf32>
    %281 = vector.broadcast %280 : vector<48x1xf32> to vector<48x48xf32>
    %282 = arith.mulf %277, %281 : vector<48x48xf32>
    %283 = arith.truncf %282 : vector<48x48xf32> to vector<48x48xbf16>
    %cst_101 = arith.constant dense<0.000000e+00> : vector<8x48xf32>
    %284 = tpu.matmul %270, %283, %cst_101 {dimension_numbers = #tpu.dot_dimension_numbers<[1], [1], [0], [0], [0, 0, 1, 0], [], []>} : vector<8x48xbf16>, vector<48x48xbf16>, vector<8x48xf32> -> vector<8x48xf32>
    %285 = tpu.concatenate %224, %244, %264, %284 in 0 : vector<8x48xf32>, vector<8x48xf32>, vector<8x48xf32>, vector<8x48xf32> -> vector<32x48xf32>
    %c1_102 = arith.constant 1 : index
    %c0_103 = arith.constant 0 : index
    %c0_104 = arith.constant 0 : index
    %286 = vector.load %arg7[%c1_102, %c0_103, %c0_104] : memref<2x32x32xbf16, #tpu.memory_space<vmem>>, vector<1x32x32xbf16>
    %287 = vector.shape_cast %286 : vector<1x32x32xbf16> to vector<32x32xbf16>
    %288 = arith.truncf %285 : vector<32x48xf32> to vector<32x48xbf16>
    %cst_105 = arith.constant dense<0.000000e+00> : vector<32x48xf32>
    %289 = tpu.matmul %287, %288, %cst_105 {dimension_numbers = #tpu.dot_dimension_numbers<[1], [0], [0], [1], [0, 0, 1, 1], [], []>} : vector<32x32xbf16>, vector<32x48xbf16>, vector<32x48xf32> -> vector<32x48xf32>
    %290 = arith.addf %170, %289 : vector<32x48xf32>
    %c1_106 = arith.constant 1 : index
    %c0_107 = arith.constant 0 : index
    %c0_108 = arith.constant 0 : index
    %291 = vector.load %arg8[%c1_106, %c0_107, %c0_108] : memref<2x32x1xf32, #tpu.memory_space<vmem>>, vector<1x32x1xf32>
    %292 = vector.shape_cast %291 : vector<1x32x1xf32> to vector<32x1xf32>
    %293 = vector.broadcast %292 : vector<32x1xf32> to vector<32x48xf32>
    %294 = arith.addf %290, %293 : vector<32x48xf32>
    %c1_109 = arith.constant 1 : index
    %c0_110 = arith.constant 0 : index
    %c0_111 = arith.constant 0 : index
    %295 = vector.load %arg9[%c1_109, %c0_110, %c0_111] : memref<2x32x1xf32, #tpu.memory_space<vmem>>, vector<1x32x1xf32>
    %296 = vector.shape_cast %295 : vector<1x32x1xf32> to vector<32x1xf32>
    %c1_112 = arith.constant 1 : index
    %c0_113 = arith.constant 0 : index
    %c0_114 = arith.constant 0 : index
    %297 = vector.load %arg10[%c1_112, %c0_113, %c0_114] : memref<2x32x1xf32, #tpu.memory_space<vmem>>, vector<1x32x1xf32>
    %298 = vector.shape_cast %297 : vector<1x32x1xf32> to vector<32x1xf32>
    %cst_115 = arith.constant dense<0.000000e+00> : vector<48xf32>
    %299 = vector.multi_reduction <add>, %294, %cst_115 [0] : vector<32x48xf32> to vector<48xf32>
    %300 = vector.shape_cast %299 : vector<48xf32> to vector<1x48xf32>
    %cst_116 = arith.constant 3.200000e+01 : f32
    %301 = vector.broadcast %cst_116 : f32 to vector<1x48xf32>
    %302 = arith.divf %300, %301 : vector<1x48xf32>
    %303 = vector.broadcast %302 : vector<1x48xf32> to vector<32x48xf32>
    %304 = arith.subf %294, %303 : vector<32x48xf32>
    %305 = arith.mulf %304, %304 : vector<32x48xf32>
    %cst_117 = arith.constant dense<0.000000e+00> : vector<48xf32>
    %306 = vector.multi_reduction <add>, %305, %cst_117 [0] : vector<32x48xf32> to vector<48xf32>
    %307 = vector.shape_cast %306 : vector<48xf32> to vector<1x48xf32>
    %cst_118 = arith.constant 3.200000e+01 : f32
    %308 = vector.broadcast %cst_118 : f32 to vector<1x48xf32>
    %309 = arith.divf %307, %308 : vector<1x48xf32>
    %310 = vector.broadcast %302 : vector<1x48xf32> to vector<32x48xf32>
    %311 = arith.subf %294, %310 : vector<32x48xf32>
    %cst_119 = arith.constant 9.99999974E-6 : f32
    %312 = vector.broadcast %cst_119 : f32 to vector<1x48xf32>
    %313 = arith.addf %309, %312 : vector<1x48xf32>
    %314 = math.rsqrt %313 : vector<1x48xf32>
    %315 = vector.broadcast %314 : vector<1x48xf32> to vector<32x48xf32>
    %316 = arith.mulf %311, %315 : vector<32x48xf32>
    %317 = vector.broadcast %296 : vector<32x1xf32> to vector<32x48xf32>
    %318 = arith.mulf %316, %317 : vector<32x48xf32>
    %319 = vector.broadcast %298 : vector<32x1xf32> to vector<32x48xf32>
    %320 = arith.addf %318, %319 : vector<32x48xf32>
    %c1_120 = arith.constant 1 : index
    %c0_121 = arith.constant 0 : index
    %c0_122 = arith.constant 0 : index
    %321 = vector.load %arg11[%c1_120, %c0_121, %c0_122] : memref<2x128x32xbf16, #tpu.memory_space<vmem>>, vector<1x128x32xbf16>
    %322 = vector.shape_cast %321 : vector<1x128x32xbf16> to vector<128x32xbf16>
    %323 = arith.truncf %320 : vector<32x48xf32> to vector<32x48xbf16>
    %cst_123 = arith.constant dense<0.000000e+00> : vector<128x48xf32>
    %324 = tpu.matmul %322, %323, %cst_123 {dimension_numbers = #tpu.dot_dimension_numbers<[1], [0], [0], [1], [0, 0, 1, 1], [], []>} : vector<128x32xbf16>, vector<32x48xbf16>, vector<128x48xf32> -> vector<128x48xf32>
    %c1_124 = arith.constant 1 : index
    %c0_125 = arith.constant 0 : index
    %c0_126 = arith.constant 0 : index
    %325 = vector.load %arg12[%c1_124, %c0_125, %c0_126] : memref<2x128x1xf32, #tpu.memory_space<vmem>>, vector<1x128x1xf32>
    %326 = vector.shape_cast %325 : vector<1x128x1xf32> to vector<128x1xf32>
    %327 = vector.broadcast %326 : vector<128x1xf32> to vector<128x48xf32>
    %328 = arith.addf %324, %327 : vector<128x48xf32>
    %cst_127 = arith.constant 0.000000e+00 : f32
    %329 = vector.broadcast %cst_127 : f32 to vector<128x48xf32>
    %330 = arith.maximumf %328, %329 : vector<128x48xf32>
    %c1_128 = arith.constant 1 : index
    %c0_129 = arith.constant 0 : index
    %c0_130 = arith.constant 0 : index
    %331 = vector.load %arg13[%c1_128, %c0_129, %c0_130] : memref<2x32x128xbf16, #tpu.memory_space<vmem>>, vector<1x32x128xbf16>
    %332 = vector.shape_cast %331 : vector<1x32x128xbf16> to vector<32x128xbf16>
    %333 = arith.truncf %330 : vector<128x48xf32> to vector<128x48xbf16>
    %cst_131 = arith.constant dense<0.000000e+00> : vector<32x48xf32>
    %334 = tpu.matmul %332, %333, %cst_131 {dimension_numbers = #tpu.dot_dimension_numbers<[1], [0], [0], [1], [0, 0, 1, 1], [], []>} : vector<32x128xbf16>, vector<128x48xbf16>, vector<32x48xf32> -> vector<32x48xf32>
    %335 = arith.addf %294, %334 : vector<32x48xf32>
    %c1_132 = arith.constant 1 : index
    %c0_133 = arith.constant 0 : index
    %c0_134 = arith.constant 0 : index
    %336 = vector.load %arg14[%c1_132, %c0_133, %c0_134] : memref<2x32x1xf32, #tpu.memory_space<vmem>>, vector<1x32x1xf32>
    %337 = vector.shape_cast %336 : vector<1x32x1xf32> to vector<32x1xf32>
    %338 = vector.broadcast %337 : vector<32x1xf32> to vector<32x48xf32>
    %339 = arith.addf %335, %338 : vector<32x48xf32>
    %c0_135 = arith.constant 0 : index
    %c0_136 = arith.constant 0 : index
    %340 = vector.load %arg15[%c0_135, %c0_136] : memref<32x1xf32, #tpu.memory_space<vmem>>, vector<32x1xf32>
    %c0_137 = arith.constant 0 : index
    %c0_138 = arith.constant 0 : index
    %341 = vector.load %arg16[%c0_137, %c0_138] : memref<32x1xf32, #tpu.memory_space<vmem>>, vector<32x1xf32>
    %cst_139 = arith.constant dense<0.000000e+00> : vector<48xf32>
    %342 = vector.multi_reduction <add>, %339, %cst_139 [0] : vector<32x48xf32> to vector<48xf32>
    %343 = vector.shape_cast %342 : vector<48xf32> to vector<1x48xf32>
    %cst_140 = arith.constant 3.200000e+01 : f32
    %344 = vector.broadcast %cst_140 : f32 to vector<1x48xf32>
    %345 = arith.divf %343, %344 : vector<1x48xf32>
    %346 = vector.broadcast %345 : vector<1x48xf32> to vector<32x48xf32>
    %347 = arith.subf %339, %346 : vector<32x48xf32>
    %348 = arith.mulf %347, %347 : vector<32x48xf32>
    %cst_141 = arith.constant dense<0.000000e+00> : vector<48xf32>
    %349 = vector.multi_reduction <add>, %348, %cst_141 [0] : vector<32x48xf32> to vector<48xf32>
    %350 = vector.shape_cast %349 : vector<48xf32> to vector<1x48xf32>
    %cst_142 = arith.constant 3.200000e+01 : f32
    %351 = vector.broadcast %cst_142 : f32 to vector<1x48xf32>
    %352 = arith.divf %350, %351 : vector<1x48xf32>
    %353 = vector.broadcast %345 : vector<1x48xf32> to vector<32x48xf32>
    %354 = arith.subf %339, %353 : vector<32x48xf32>
    %cst_143 = arith.constant 9.99999974E-6 : f32
    %355 = vector.broadcast %cst_143 : f32 to vector<1x48xf32>
    %356 = arith.addf %352, %355 : vector<1x48xf32>
    %357 = math.rsqrt %356 : vector<1x48xf32>
    %358 = vector.broadcast %357 : vector<1x48xf32> to vector<32x48xf32>
    %359 = arith.mulf %354, %358 : vector<32x48xf32>
    %360 = vector.broadcast %340 : vector<32x1xf32> to vector<32x48xf32>
    %361 = arith.mulf %359, %360 : vector<32x48xf32>
    %362 = vector.broadcast %341 : vector<32x1xf32> to vector<32x48xf32>
    %363 = arith.addf %361, %362 : vector<32x48xf32>
    %c0_144 = arith.constant 0 : index
    %c0_145 = arith.constant 0 : index
    %364 = vector.load %arg17[%c0_144, %c0_145] : memref<32x48xf32, #tpu.memory_space<vmem>>, vector<32x48xf32>
    tpu.vector_store %arg17[%c0_144, %c0_145], %363 {strides = array<i32>} : memref<32x48xf32, #tpu.memory_space<vmem>>, vector<32x48xf32>,
    return
  }
  func.func @transform_0(%arg0: i32) -> (i32, i32) {
    %c0_i32 = arith.constant 0 : i32
    %c0_i32_0 = arith.constant 0 : i32
    %c0_i32_1 = arith.constant 0 : i32
    return %c0_i32, %c0_i32_0 : i32, i32
  }
  func.func @transform_1(%arg0: i32) -> (i32, i32) {
    %c0_i32 = arith.constant 0 : i32
    %c0_i32_0 = arith.constant 0 : i32
    %c0_i32_1 = arith.constant 0 : i32
    return %c0_i32, %c0_i32_0 : i32, i32
  }
  func.func @transform_2(%arg0: i32) -> (i32, i32, i32) {
    %c0_i32 = arith.constant 0 : i32
    %c0_i32_0 = arith.constant 0 : i32
    %c0_i32_1 = arith.constant 0 : i32
    %c0_i32_2 = arith.constant 0 : i32
    return %c0_i32, %c0_i32_0, %c0_i32_1 : i32, i32, i32
  }
  func.func @transform_3(%arg0: i32) -> (i32, i32, i32) {
    %c0_i32 = arith.constant 0 : i32
    %c0_i32_0 = arith.constant 0 : i32
    %c0_i32_1 = arith.constant 0 : i32
    %c0_i32_2 = arith.constant 0 : i32
    return %c0_i32, %c0_i32_0, %c0_i32_1 : i32, i32, i32
  }
  func.func @transform_4(%arg0: i32) -> (i32, i32, i32) {
    %c0_i32 = arith.constant 0 : i32
    %c0_i32_0 = arith.constant 0 : i32
    %c0_i32_1 = arith.constant 0 : i32
    %c0_i32_2 = arith.constant 0 : i32
    return %c0_i32, %c0_i32_0, %c0_i32_1 : i32, i32, i32
  }
  func.func @transform_5(%arg0: i32) -> (i32, i32, i32) {
    %c0_i32 = arith.constant 0 : i32
    %c0_i32_0 = arith.constant 0 : i32
    %c0_i32_1 = arith.constant 0 : i32
    %c0_i32_2 = arith.constant 0 : i32
    return %c0_i32, %c0_i32_0, %c0_i32_1 : i32, i32, i32
  }
  func.func @transform_6(%arg0: i32) -> (i32, i32, i32) {
    %c0_i32 = arith.constant 0 : i32
    %c0_i32_0 = arith.constant 0 : i32
    %c0_i32_1 = arith.constant 0 : i32
    %c0_i32_2 = arith.constant 0 : i32
    return %c0_i32, %c0_i32_0, %c0_i32_1 : i32, i32, i32
  }
  func.func @transform_7(%arg0: i32) -> (i32, i32, i32) {
    %c0_i32 = arith.constant 0 : i32
    %c0_i32_0 = arith.constant 0 : i32
    %c0_i32_1 = arith.constant 0 : i32
    %c0_i32_2 = arith.constant 0 : i32
    return %c0_i32, %c0_i32_0, %c0_i32_1 : i32, i32, i32
  }
  func.func @transform_8(%arg0: i32) -> (i32, i32, i32) {
    %c0_i32 = arith.constant 0 : i32
    %c0_i32_0 = arith.constant 0 : i32
    %c0_i32_1 = arith.constant 0 : i32
    %c0_i32_2 = arith.constant 0 : i32
    return %c0_i32, %c0_i32_0, %c0_i32_1 : i32, i32, i32
  }
  func.func @transform_9(%arg0: i32) -> (i32, i32, i32) {
    %c0_i32 = arith.constant 0 : i32
    %c0_i32_0 = arith.constant 0 : i32
    %c0_i32_1 = arith.constant 0 : i32
    %c0_i32_2 = arith.constant 0 : i32
    return %c0_i32, %c0_i32_0, %c0_i32_1 : i32, i32, i32
  }
  func.func @transform_10(%arg0: i32) -> (i32, i32, i32) {
    %c0_i32 = arith.constant 0 : i32
    %c0_i32_0 = arith.constant 0 : i32
    %c0_i32_1 = arith.constant 0 : i32
    %c0_i32_2 = arith.constant 0 : i32
    return %c0_i32, %c0_i32_0, %c0_i32_1 : i32, i32, i32
  }
  func.func @transform_11(%arg0: i32) -> (i32, i32, i32) {
    %c0_i32 = arith.constant 0 : i32
    %c0_i32_0 = arith.constant 0 : i32
    %c0_i32_1 = arith.constant 0 : i32
    %c0_i32_2 = arith.constant 0 : i32
    return %c0_i32, %c0_i32_0, %c0_i32_1 : i32, i32, i32
  }
  func.func @transform_12(%arg0: i32) -> (i32, i32, i32) {
    %c0_i32 = arith.constant 0 : i32
    %c0_i32_0 = arith.constant 0 : i32
    %c0_i32_1 = arith.constant 0 : i32
    %c0_i32_2 = arith.constant 0 : i32
    return %c0_i32, %c0_i32_0, %c0_i32_1 : i32, i32, i32
  }
  func.func @transform_13(%arg0: i32) -> (i32, i32, i32) {
    %c0_i32 = arith.constant 0 : i32
    %c0_i32_0 = arith.constant 0 : i32
    %c0_i32_1 = arith.constant 0 : i32
    %c0_i32_2 = arith.constant 0 : i32
    return %c0_i32, %c0_i32_0, %c0_i32_1 : i32, i32, i32
  }
  func.func @transform_14(%arg0: i32) -> (i32, i32) {
    %c0_i32 = arith.constant 0 : i32
    %c0_i32_0 = arith.constant 0 : i32
    %c0_i32_1 = arith.constant 0 : i32
    return %c0_i32, %c0_i32_0 : i32, i32
  }
  func.func @transform_15(%arg0: i32) -> (i32, i32) {
    %c0_i32 = arith.constant 0 : i32
    %c0_i32_0 = arith.constant 0 : i32
    %c0_i32_1 = arith.constant 0 : i32
    return %c0_i32, %c0_i32_0 : i32, i32
  }
  func.func @transform_16(%arg0: i32) -> (i32, i32) {
    %c0_i32 = arith.constant 0 : i32
    %c0_i32_0 = arith.constant 0 : i32
    %c0_i32_1 = arith.constant 0 : i32
    return %c0_i32, %c0_i32_0 : i32, i32
  }
}

</mosaic_0001>

<bundles_post_ra>
// kernel: gpt_forward.1
= control target key start
LH: loop header
LB: loop body
LE: loop exit
PB: predicated region body
PF: predicated region fallthrough
CT: control target
= control target key end

     0   :  { %v4568_v0 = vmov 0   ;;  %vm72_vm0 = vcmask 392192   ;;  %vm280_vm1 = vcmask 261120   ;;  %vm4570_vm2 = vmmov 0   ;;  %s6074_s3 = inlined_call_operand.vmem [shape: f32[2,32,1], index: 3, kind: input, shape index: {}]   ;;  %s6075_s2 = inlined_call_operand.vmem [shape: f32[2,32,1], index: 2, kind: input, shape index: {}]   ;;  %s6076_s0 = inlined_call_operand.vmem [shape: f32[32,48], index: 0, kind: input, shape index: {}]   ;;  %s6077_s5 = inlined_call_operand.vmem [shape: f32[2,96,1], index: 5, kind: input, shape index: {}]   ;;  %s6078_s4 = inlined_call_operand.vmem [shape: bf16[2,96,32], index: 4, kind: input, shape index: {}]   ;;  %s6079_s1 = inlined_call_operand.vmem [shape: f32[48,48], index: 1, kind: input, shape index: {}]   ;;  %s6080_s7 = inlined_call_operand.vmem [shape: f32[2,32,1], index: 7, kind: input, shape index: {}]   ;;  %s6081_s8 = inlined_call_operand.vmem [shape: f32[2,32,1], index: 8, kind: input, shape index: {}]   ;;  %s6082_s9 = inlined_call_operand.vmem [shape: f32[2,32,1], index: 9, kind: input, shape index: {}]   ;;  %s6083_s11 = inlined_call_operand.vmem [shape: f32[2,128,1], index: 11, kind: input, shape index: {}]   ;;  %s6084_s13 = inlined_call_operand.vmem [shape: f32[2,32,1], index: 13, kind: input, shape index: {}]   ;;  %s6085_s6 = inlined_call_operand.vmem [shape: bf16[2,32,32], index: 6, kind: input, shape index: {}]   ;;  %s6086_s10 = inlined_call_operand.vmem [shape: bf16[2,128,32], index: 10, kind: input, shape index: {}]   ;;  %s6087_s12 = inlined_call_operand.vmem [shape: bf16[2,32,128], index: 12, kind: input, shape index: {}]   ;;  %s6088_s14 = inlined_call_operand.vmem [shape: f32[32,1], index: 14, kind: input, shape index: {}]   ;;  %s6089_s15 = inlined_call_operand.vmem [shape: f32[32,1], index: 15, kind: input, shape index: {}]   ;;  %s6090_s16 = inlined_call_operand.vmem [shape: f32[32,48], index: 16, kind: output, shape index: {}]  }
   0x1   :  { %6092 = sst [smem:[#allocation2_spill]] %s6074_s3  ;;  %4319 = vset.pattern.permute.xlu1 %v4568_v0  ;;  %4318 = vset.pattern.permute.xlu0 %v4568_v0  ;;  %v66_v2 = vld [vmem:[%s6075_s2 + $0x10] sm:$0xff]  ;;  %v67_v4 = vld [vmem:[%s6075_s2 + $0x18] sm:$0xff]  ;;  %v65_v5 = vld [vmem:[%s6075_s2 + $0x8] sm:$0xff]  ;;  %vm409_vm3 = vcmask 1043456   ;;  %vm399_vm4 = vcmask 64512  }
   0x2   :  { %s6093_s23 = sld [smem:[#allocation2_spill]]  ;;  %128 = vperm.xlu0 %4318, %v66_v2   ;;  %v64_v6 = vld [vmem:[%s6075_s2] sm:$0xff]  ;;  %v55_v8 = vld [vmem:[%s6076_s0 + $0x8] sm:$0xff]  ;;  %v56_v13 = vld [vmem:[%s6076_s0 + $0x10] sm:$0xff] }
   0x3   :  { %v54_v7 = vld [vmem:[%s6076_s0] sm:$0xff]  ;;  %v74_v10 = vsel %vm72_vm0, %v55_v8, 0.0  ;;  %v179_v15 = vld [vmem:[%s6077_s5 + $0x8] sm:$0xff]  ;;  %v57_v17 = vld [vmem:[%s6076_s0 + $0x18] sm:$0xff]  ;;  %v76_v18 = vsel %vm72_vm0, %v56_v13, 0.0 }
   0x4   :  { %v73_v9 = vsel %vm72_vm0, %v54_v7, 0.0  ;;  %v178_v16 = vld [vmem:[%s6077_s5] sm:$0xff]  ;;  %v180_v20 = vld [vmem:[%s6077_s5 + $0x10] sm:$0xff]  ;;  %v78_v23 = vsel %vm72_vm0, %v57_v17, 0.0  ;;  %v183_v25 = vld [vmem:[%s6077_s5 + $0x28] sm:$0xff] }
   0x5   :  { %v75_v14 = vadd.f32 %v74_v10, %v73_v9  ;;  %v4320_v19 = vld [vmem:[%s6078_s4] sm:$0xff]   ;;  %v181_v27 = vld [vmem:[%s6077_s5 + $0x18] sm:$0xff]  ;;  %v184_v29 = vld [vmem:[%s6077_s5 + $0x30] sm:$0xff] }
   0x6   :  { %133 = vperm.xlu0 %4318, %v67_v4   ;;  %3999 = vmatprep.mubr.msk.bf16.mxu0 %vm280_vm1, %v4320_v19  ;;  %v182_v22 = vld [vmem:[%s6077_s5 + $0x20] sm:$0xff]  ;;  %v4323_v19 = vld [vmem:[%s6078_s4 + $0x18] sm:$0xff]  }
   0x7   :  { %v77_v21 = vadd.f32 %v76_v18, %v75_v14  ;;  %v4322_v18 = vld [vmem:[%s6078_s4 + $0x10] sm:$0xff]  }
   0x8   :  { %v70_v1 = vld [vmem:[%s6093_s23 + $0x10] sm:$0xff]  ;;  %v71_v3 = vld [vmem:[%s6093_s23 + $0x18] sm:$0xff]  ;;  %v69_v11 = vld [vmem:[%s6093_s23 + $0x8] sm:$0xff] }
   0x9   :  { %152 = vperm.xlu1 %4319, %v70_v1   ;;  %v68_v12 = vld [vmem:[%s6093_s23] sm:$0xff]  ;;  %v79_v24 = vadd.f32 %v78_v23, %v77_v21 }
   0xa   :  { %118 = vperm.xlu0 %4318, %v64_v6   ;;  %v4324_v21 = vld [vmem:[%s6078_s4 + $0x20] sm:$0xff]  }
   0xb   :  { %v80_v26 = vrot.slane %v79_v24, 4 }
   0xd   :  { %157 = vperm.xlu1 %4319, %v71_v3   ;;  %v81_v28 = vadd.f32 %v80_v26, %v79_v24 }
   0xe   :  { %142 = vperm.xlu0 %4318, %v68_v12  }
   0xf   :  { %v82_v30 = vrot.slane %v81_v28, 2 }
  0x11   :  { %123 = vperm.xlu1 %4319, %v65_v5   ;;  %v83_v31 = vadd.f32 %v82_v30, %v81_v28 }
  0x12   :  { %192 = vperm.xlu0 %4318, %v178_v16  }
  0x13   :  { %v84_v32 = vrot.slane %v83_v31, 1 }
  0x15   :  { %147 = vperm.xlu1 %4319, %v69_v11   ;;  %v85_v33 = vadd.f32 %v84_v32, %v83_v31 }
  0x16   :  { %212 = vperm.xlu0 %4318, %v182_v22   ;;  %v4325_v22 = vld [vmem:[%s6078_s4 + $0x28] sm:$0xff]  }
  0x17   :  { %v87_v34 = vmul.f32 0.03125, %v85_v33 }
  0x19   :  { %197 = vperm.xlu1 %4319, %v179_v15   ;;  %v88_v35 = vsub.f32 %v54_v7, %v87_v34  ;;  %v89_v36 = vsub.f32 %v55_v8, %v87_v34  ;;  %v90_v37 = vsub.f32 %v56_v13, %v87_v34  ;;  %v91_v40 = vsub.f32 %v57_v17, %v87_v34  ;;  %v4321_v17 = vld [vmem:[%s6078_s4 + $0x8] sm:$0xff]  }
  0x1a   :  { %217 = vperm.xlu0 %4318, %v183_v25  }
  0x1b   :  { %v92_v38 = vmul.f32 %v88_v35, %v88_v35  ;;  %v93_v39 = vmul.f32 %v89_v36, %v89_v36  ;;  %v94_v41 = vmul.f32 %v90_v37, %v90_v37  ;;  %v95_v45 = vmul.f32 %v91_v40, %v91_v40 }
  0x1d   :  { %202 = vperm.xlu1 %4319, %v180_v20   ;;  %v96_v42 = vsel %vm72_vm0, %v92_v38, 0.0  ;;  %v97_v43 = vsel %vm72_vm0, %v93_v39, 0.0  ;;  %v99_v46 = vsel %vm72_vm0, %v94_v41, 0.0  ;;  %v101_v48 = vsel %vm72_vm0, %v95_v45, 0.0  ;;  %v185_v45 = vld [vmem:[%s6077_s5 + $0x38] sm:$0xff] }
  0x1e   :  { %207 = vperm.xlu0 %4318, %v181_v27   ;;  %v98_v44 = vadd.f32 %v97_v43, %v96_v42  ;;  %v4569_v20 = vmov 0.0  }
  0x1f   :  { %4011 = vmatprep.subr.bf16.mxu1 %v4569_v20  ;;  %4013 = vmatprep.mubr.msk.bf16.mxu1 %vm4570_vm2, %v4569_v20 }
  0x20   :  { %v100_v47 = vadd.f32 %v99_v46, %v98_v44 }
  0x22   :  { %222 = vperm.xlu0 %4318, %v184_v29   ;;  %v102_v49 = vadd.f32 %v101_v48, %v100_v47 }
  0x24   :  { %v103_v50 = vrot.slane %v102_v49, 4 }
  0x26   :  { %v104_v51 = vadd.f32 %v103_v50, %v102_v49 }
  0x28   :  { %v105_v52 = vrot.slane %v104_v51, 2 }
  0x2a   :  { %v106_v53 = vadd.f32 %v105_v52, %v104_v51 }
  0x2c   :  { %v107_v54 = vrot.slane %v106_v53, 1 }
  0x2e   :  { %v108_v55 = vadd.f32 %v107_v54, %v106_v53 }
  0x30   :  { %v109_v56 = vmul.f32 0.03125, %v108_v55 }
  0x32   :  { %v110_v57 = vadd.f32 1e-05, %v109_v56 }
  0x34   :  { %4356 = vrsqrt.f32 %v110_v57 }
  0x41   :  { %v4357_v58 = vpop.eup %4356 }
  0x42   :  { %v114_v59 = vmul.f32 %v4357_v58, %v90_v37  ;;  %v115_v62 = vmul.f32 %v4357_v58, %v91_v40  ;;  %v113_v3 = vmul.f32 %v4357_v58, %v89_v36  ;;  %v112_v4 = vmul.f32 %v4357_v58, %v88_v35 }
  0x7d   :  { %v129_v61 = vpop.permute.xlu0 %128 }
  0x7e   :  { %v138_v63 = vmul.f32 %v129_v61, %v114_v59 }
  0x81   :  { %v134_v1 = vpop.permute.xlu0 %133 }
  0x82   :  { %v139_v2 = vmul.f32 %v134_v1, %v115_v62 }
  0x84   :  { %v153_v60 = vpop.permute.xlu1 %152 }
  0x85   :  { %v162_v5 = vadd.f32 %v153_v60, %v138_v63  ;;  %v119_v8 = vpop.permute.xlu0 %118 }
  0x86   :  { %v136_v11 = vmul.f32 %v119_v8, %v112_v4 }
  0x88   :  { %v158_v0 = vpop.permute.xlu1 %157 }
  0x89   :  { %v163_v6 = vadd.f32 %v158_v0, %v139_v2  ;;  %v143_v13 = vpop.permute.xlu0 %142 }
  0x8a   :  { %v160_v15 = vadd.f32 %v143_v13, %v136_v11  ;;  %v4804_v11 = vld [vmem:[%s6079_s1] sm:$0xff] }
  0x8b   :  { %v177_v9 = vpack.c.bf16 %v163_v6, %v162_v5 }
  0x8c   :  { %v124_v7 = vpop.permute.xlu1 %123 }
  0x8d   :  { %v137_v10 = vmul.f32 %v124_v7, %v113_v3  ;;  %3995 = vmatprep.subr.bf16.mxu0 %v177_v9  ;;  %v193_v24 = vpop.permute.xlu0 %192 }
  0x8e   :  { %3996 = vmatpush3.bf16.msra.mxu0 %v177_v9 }
  0x90   :  { %v148_v12 = vpop.permute.xlu1 %147 }
  0x91   :  { %v161_v14 = vadd.f32 %v148_v12, %v137_v10  ;;  %v213_v32 = vpop.permute.xlu0 %212 }
  0x93   :  { %v176_v16 = vpack.c.bf16 %v161_v14, %v160_v15 }
  0x94   :  { %v198_v29 = vpop.permute.xlu1 %197 }
  0x95   :  { %3997 = vmatprep.subr.bf16.mxu0 %v176_v16  ;;  %v218_v40 = vpop.permute.xlu0 %217 }
  0x96   :  { %3998 = vmatpush3.bf16.msra.mxu0 %v176_v16 }
  0x97   :  { %4035 = vmatprep.subr.bf16.mxu0 %v4569_v20 }
  0x98   :  { %v203_v38 = vpop.permute.xlu1 %202 }
  0x99   :  { %4000 = vmatmul.mubr.msk.bf16.vlgmr.msra.gmra.mxu0 %vm280_vm1, %v4321_v17  ;;  %v208_v49 = vpop.permute.xlu0 %207 }
  0x9a   :  { %4003 = vmatprep.mubr.msk.bf16.mxu0 %vm280_vm1, %v4322_v18 }
  0x9d   :  { %v223_v52 = vpop.permute.xlu0 %222 }
  0xa1   :  { %4004 = vmatmul.mubr.msk.bf16.gmra.mxu0 %vm280_vm1, %v4323_v19 }
  0xa2   :  { %4007 = vmatprep.mubr.msk.bf16.mxu0 %vm280_vm1, %v4324_v21 }
  0xa9   :  { %4008 = vmatmul.mubr.msk.bf16.gmra.mxu0 %vm280_vm1, %v4325_v22 }
  0xaa   :  { %4037 = vmatprep.mubr.msk.bf16.mxu0 %vm4570_vm2, %v4569_v20 }
 0x159   :  { %v4001_v23 = vpop.f32.mrf.mxu0 }
 0x15a   :  { %v342_v41 = vadd.f32 %v4001_v23, %v203_v38  ;;  %v4831_v38 = vld [vmem:[%s6079_s1 + $0x28] sm:$0xff] }
 0x15b   :  { %v333_v25 = vpop.f32.mrf.mxu0 }
 0x15c   :  { %v334_v26 = vadd.f32 %v333_v25, %v193_v24  ;;  %v800_v47 = vpack.c.bf16 %v342_v41, %v342_v41 }
 0x15d   :  { %v4002_v27 = vpop.f32.mrf.mxu0 }
 0x15e   :  { %v380_v28 = vpack.c.bf16 %v334_v26, %v334_v26  ;;  %v345_v50 = vadd.f32 %v4002_v27, %v208_v49 }
 0x15f   :  { %v336_v30 = vpop.f32.mrf.mxu0 }
 0x160   :  { %v337_v31 = vadd.f32 %v336_v30, %v198_v29  ;;  %383 = vxpose.xlu1.c.b16.start.end [1/1] (short) (narrow) %v380_v28, 48  ;;  %v1009_v51 = vpack.c.bf16 %v345_v50, %v345_v50 }
 0x161   :  { %v4005_v33 = vpop.f32.mrf.mxu0 }
 0x162   :  { %v591_v34 = vpack.c.bf16 %v337_v31, %v337_v31  ;;  %v358_v53 = vadd.f32 %v4005_v33, %v223_v52 }
 0x163   :  { %v349_v35 = vpop.f32.mrf.mxu0 }
 0x164   :  { %v350_v36 = vadd.f32 %v349_v35, %v213_v32  ;;  %594 = vxpose.xlu0.c.b16.start.end [1/1] (short) (narrow) %v591_v34, 48  ;;  %v801_v55 = vpack.c.bf16 %v358_v53, %v358_v53  ;;  %v4823_v32 = vld [vmem:[%s6079_s1 + $0x20] sm:$0xff]  ;;  %v4861_v53 = vld [vmem:[%s6079_s1 + $0x8] sm:$0xff] }
 0x165   :  { %v4006_v37 = vpop.f32.mrf.mxu0 }
 0x166   :  { %v381_v39 = vpack.c.bf16 %v350_v36, %v350_v36  ;;  %v829_v57 = vsel %vm409_vm3, %v801_v55, 0 }
 0x167   :  { %v352_v42 = vpop.f32.mrf.mxu0 }
 0x168   :  { %v353_v43 = vadd.f32 %v352_v42, %v218_v40  ;;  %v411_v44 = vsel %vm409_vm3, %v381_v39, 0  ;;  %v4838_v40 = vld [vmem:[%s6079_s1 + $0x10] sm:$0xff] }
 0x169   :  { %4012 = vmatpush3.bf16.msra.mxu1 %v411_v44  ;;  %v4795_v8 = vpop.f32.mrf.mxu0 }
 0x16a   :  { %v592_v46 = vpack.c.bf16 %v353_v43, %v353_v43  ;;  %4025 = vmatprep.subr.bf16.mxu1 %v4569_v20 }
 0x16b   :  { %v4797_v9 = vpop.f32.mrf.mxu0 }
 0x16c   :  { %v620_v48 = vsel %vm409_vm3, %v592_v46, 0  ;;  %227 = vperm.xlu1 %4319, %v185_v45  }
 0x16d   :  { %4036 = vmatpush3.bf16.msra.mxu0 %v620_v48  ;;  %803 = vxpose.xlu0.c.b16.start.end [1/1] (short) (narrow) %v800_v47, 48  ;;  %v4799_v10 = vpop.f32.mrf.mxu0  ;;  %v4851_v48 = vld [vmem:[%s6079_s1 + $0x18] sm:$0xff] }
 0x16e   :  { %4059 = vmatprep.subr.bf16.mxu0 %v4569_v20 }
 0x16f   :  { %v4806_v13 = vpop.f32.mrf.mxu0 }
 0x18f   :  { %1012 = vxpose.xlu1.c.b16.start.end [1/1] (short) (narrow) %v1009_v51, 48 }
 0x1c2   :  { %v391_v54 = vpop.trf.xlu1 }
 0x1c3   :  { %4014 = vmatmul.mubr.msk.bf16.vlgmr.msra.gmra.mxu1 %vm399_vm4, %v391_v54 }
 0x1c4   :  { %4017 = vmatprep.mubr.msk.bf16.mxu1 %vm4570_vm2, %v4569_v20 }
 0x1c6   :  { %v602_v56 = vpop.trf.xlu0  ;;  %v392_v58 = vpop.trf.xlu1 }
 0x1c7   :  { %4038 = vmatmul.mubr.msk.bf16.vlgmr.msra.gmra.mxu0 %vm399_vm4, %v602_v56 }
 0x1c8   :  { %4060 = vmatpush3.bf16.msra.mxu0 %v829_v57  ;;  %4041 = vmatprep.mubr.msk.bf16.mxu0 %vm4570_vm2, %v4569_v20 }
 0x1c9   :  { %4083 = vmatprep.subr.bf16.mxu0 %v4569_v20 }
 0x1ca   :  { %v603_v59 = vpop.trf.xlu0  ;;  %v393_v60 = vpop.trf.xlu1 }
 0x1cb   :  { %4018 = vmatmul.mubr.msk.bf16.gmra.mxu1 %vm399_vm4, %v392_v58 }
 0x1cc   :  { %4021 = vmatprep.mubr.msk.bf16.mxu1 %vm4570_vm2, %v4569_v20 }
 0x1ce   :  { %v604_v61 = vpop.trf.xlu0 }
 0x1cf   :  { %4042 = vmatmul.mubr.msk.bf16.gmra.mxu0 %vm399_vm4, %v603_v59 }
 0x1d0   :  { %4045 = vmatprep.mubr.msk.bf16.mxu0 %vm4570_vm2, %v4569_v20 }
 0x1d2   :  { %v811_v62 = vpop.trf.xlu0 }
 0x1d3   :  { %4022 = vmatmul.mubr.msk.bf16.gmra.mxu1 %vm399_vm4, %v393_v60 }
 0x1d4   :  { %4031 = vmatprep.mubr.msk.bf16.mxu1 %vm4570_vm2, %v4569_v20 }
 0x1d6   :  { %v812_v63 = vpop.trf.xlu0 }
 0x1d7   :  { %4046 = vmatmul.mubr.msk.bf16.gmra.mxu0 %vm399_vm4, %v604_v61 }
 0x1d8   :  { %4061 = vmatprep.mubr.msk.bf16.mxu0 %vm4570_vm2, %v4569_v20 }
 0x1da   :  { %v813_v4 = vpop.trf.xlu0 }
 0x1df   :  { %4062 = vmatmul.mubr.msk.bf16.vlgmr.msra.gmra.mxu0 %vm399_vm4, %v811_v62 }
 0x1e0   :  { %4065 = vmatprep.mubr.msk.bf16.mxu0 %vm4570_vm2, %v4569_v20 }
 0x1e7   :  { %4066 = vmatmul.mubr.msk.bf16.gmra.mxu0 %vm399_vm4, %v812_v63  ;;  %v228_v0 = vpop.permute.xlu1 %227 }
 0x1e8   :  { %v361_v1 = vadd.f32 %v4006_v37, %v228_v0  ;;  %4069 = vmatprep.mubr.msk.bf16.mxu0 %vm4570_vm2, %v4569_v20 }
 0x1ea   :  { %v1010_v2 = vpack.c.bf16 %v361_v1, %v361_v1 }
 0x1ec   :  { %v1038_v3 = vsel %vm409_vm3, %v1010_v2, 0 }
 0x1ed   :  { %4084 = vmatpush3.bf16.msra.mxu0 %v1038_v3 }
 0x1ef   :  { %4070 = vmatmul.mubr.msk.bf16.gmra.mxu0 %vm399_vm4, %v813_v4 }
 0x1f0   :  { %4085 = vmatprep.mubr.msk.bf16.mxu0 %vm4570_vm2, %v4569_v20 }
 0x1f1   :  { %v1020_v5 = vpop.trf.xlu1 }
 0x1f5   :  { %v1021_v6 = vpop.trf.xlu1 }
 0x1f7   :  { %4086 = vmatmul.mubr.msk.bf16.vlgmr.msra.gmra.mxu0 %vm399_vm4, %v1020_v5 }
 0x1f8   :  { %4089 = vmatprep.mubr.msk.bf16.mxu0 %vm4570_vm2, %v4569_v20 }
 0x1f9   :  { %v1022_v7 = vpop.trf.xlu1 }
 0x1ff   :  { %4090 = vmatmul.mubr.msk.bf16.gmra.mxu0 %vm399_vm4, %v1021_v6 }
 0x200   :  { %4093 = vmatprep.mubr.msk.bf16.mxu0 %vm4570_vm2, %v4569_v20 }
 0x207   :  { %4094 = vmatmul.mubr.msk.bf16.gmra.mxu0 %vm399_vm4, %v1022_v7 }
 0x283   :  { %v447_v12 = vpop.f32.mrf.mxu1 }
 0x284   :  { %v4809_v14 = vadd.f32 %v447_v12, %v4804_v11 }
 0x285   :  { %v4015_v15 = vpop.f32.mrf.mxu1 }
 0x286   :  { %v470_v16 = vsel %vm72_vm0, %v4809_v14, -inf }
 0x287   :  { %v656_v17 = vpop.f32.mrf.mxu0  ;;  %471 = vmax.xlane.f32.xlu1 %v470_v16  ;;  %v450_v18 = vpop.f32.mrf.mxu1 }
 0x288   :  { %v4814_v19 = vadd.f32 %v656_v17, %v4804_v11  ;;  %v4867_v57 = vadd.f32 %v450_v18, %v4861_v53 }
 0x289   :  { %v4016_v21 = vpop.f32.mrf.mxu1  ;;  %v4039_v22 = vpop.f32.mrf.mxu0 }
 0x28a   :  { %v679_v23 = vsel %vm72_vm0, %v4814_v19, -inf  ;;  %v473_v63 = vsel %vm72_vm0, %v4867_v57, -inf }
 0x28b   :  { %v4818_v24 = vpop.f32.mrf.mxu0  ;;  %680 = vmax.xlane.f32.xlu1 %v679_v23  ;;  %v455_v25 = vpop.f32.mrf.mxu1 }
 0x28c   :  { %v4844_v46 = vadd.f32 %v455_v25, %v4838_v40 }
 0x28d   :  { %v4019_v26 = vpop.f32.mrf.mxu1  ;;  %v4040_v27 = vpop.f32.mrf.mxu0 }
 0x28e   :  { %v476_v52 = vsel %vm72_vm0, %v4844_v46, -inf  ;;  %v4905_v27 = vadd.f32 %v4818_v24, %v4861_v53 }
 0x28f   :  { %v458_v28 = vpop.f32.mrf.mxu1  ;;  %v664_v29 = vpop.f32.mrf.mxu0 }
 0x290   :  { %v4854_v51 = vadd.f32 %v458_v28, %v4851_v48  ;;  %v4889_v12 = vadd.f32 %v664_v29, %v4838_v40 }
 0x291   :  { %v4020_v30 = vpop.f32.mrf.mxu1  ;;  %v4043_v31 = vpop.f32.mrf.mxu0 }
 0x292   :  { %v479_v59 = vsel %vm72_vm0, %v4854_v51, -inf  ;;  %v685_v23 = vsel %vm72_vm0, %v4889_v12, -inf }
 0x293   :  { %v463_v33 = vpop.f32.mrf.mxu1  ;;  %v667_v34 = vpop.f32.mrf.mxu0 }
 0x294   :  { %v4826_v35 = vadd.f32 %v463_v33, %v4823_v32  ;;  %v4897_v21 = vadd.f32 %v667_v34, %v4851_v48  ;;  %v682_v34 = vsel %vm72_vm0, %v4905_v27, -inf }
 0x295   :  { %v4023_v36 = vpop.f32.mrf.mxu1  ;;  %v4044_v37 = vpop.f32.mrf.mxu0 }
 0x296   :  { %v482_v39 = vsel %vm72_vm0, %v4826_v35, -inf  ;;  %v688_v28 = vsel %vm72_vm0, %v4897_v21, -inf }
 0x297   :  { %v672_v41 = vpop.f32.mrf.mxu0  ;;  %483 = vmax.xlane.f32.xlu0 %v482_v39  ;;  %v466_v42 = vpop.f32.mrf.mxu1 }
 0x298   :  { %v4841_v43 = vadd.f32 %v466_v42, %v4831_v38  ;;  %v4874_v61 = vadd.f32 %v672_v41, %v4823_v32 }
 0x299   :  { %v4024_v44 = vpop.f32.mrf.mxu1  ;;  %v4047_v45 = vpop.f32.mrf.mxu0 }
 0x29a   :  { %v485_v47 = vsel %vm72_vm0, %v4841_v43, -inf  ;;  %v691_v2 = vsel %vm72_vm0, %v4874_v61, -inf }
 0x29b   :  { %v675_v49 = vpop.f32.mrf.mxu0  ;;  %486 = vmax.xlane.f32.xlu0 %v485_v47 }
 0x29c   :  { %v4884_v4 = vadd.f32 %v675_v49, %v4831_v38 }
 0x29d   :  { %v4048_v50 = vpop.f32.mrf.mxu0 }
 0x29e   :  { %v694_v15 = vsel %vm72_vm0, %v4884_v4, -inf }
 0x29f   :  { %v865_v54 = vpop.f32.mrf.mxu0  ;;  %477 = vmax.xlane.f32.xlu0 %v476_v52 }
 0x2a0   :  { %v4864_v55 = vadd.f32 %v865_v54, %v4804_v11 }
 0x2a1   :  { %v4063_v56 = vpop.f32.mrf.mxu0 }
 0x2a2   :  { %v888_v58 = vsel %vm72_vm0, %v4864_v55, -inf }
 0x2a3   :  { %v868_v60 = vpop.f32.mrf.mxu0  ;;  %889 = vmax.xlane.f32.xlu1 %v888_v58  ;;  %480 = vmax.xlane.f32.xlu0 %v479_v59 }
 0x2a4   :  { %v4925_v42 = vadd.f32 %v868_v60, %v4861_v53 }
 0x2a5   :  { %v4064_v62 = vpop.f32.mrf.mxu0 }
 0x2a6   :  { %v891_v54 = vsel %vm72_vm0, %v4925_v42, -inf }
 0x2a7   :  { %v873_v0 = vpop.f32.mrf.mxu0  ;;  %474 = vmax.xlane.f32.xlu0 %v473_v63 }
 0x2a8   :  { %v4879_v1 = vadd.f32 %v873_v0, %v4838_v40 }
 0x2a9   :  { %v4067_v3 = vpop.f32.mrf.mxu0 }
 0x2aa   :  { %v894_v5 = vsel %vm72_vm0, %v4879_v1, -inf }
 0x2ab   :  { %v876_v6 = vpop.f32.mrf.mxu0  ;;  %895 = vmax.xlane.f32.xlu1 %v894_v5  ;;  %692 = vmax.xlane.f32.xlu0 %v691_v2 }
 0x2ac   :  { %v4910_v30 = vadd.f32 %v876_v6, %v4851_v48 }
 0x2ad   :  { %v4068_v7 = vpop.f32.mrf.mxu0 }
 0x2ae   :  { %v897_v39 = vsel %vm72_vm0, %v4910_v30, -inf }
 0x2af   :  { %v881_v16 = vpop.f32.mrf.mxu0  ;;  %695 = vmax.xlane.f32.xlu0 %v694_v15 }
 0x2b0   :  { %v4894_v17 = vadd.f32 %v881_v16, %v4823_v32 }
 0x2b1   :  { %v4071_v18 = vpop.f32.mrf.mxu0 }
 0x2b2   :  { %v900_v22 = vsel %vm72_vm0, %v4894_v17, -inf }
 0x2b3   :  { %v884_v25 = vpop.f32.mrf.mxu0  ;;  %901 = vmax.xlane.f32.xlu1 %v900_v22  ;;  %686 = vmax.xlane.f32.xlu0 %v685_v23 }
 0x2b4   :  { %v4920_v37 = vadd.f32 %v884_v25, %v4831_v38 }
 0x2b5   :  { %v4072_v26 = vpop.f32.mrf.mxu0 }
 0x2b6   :  { %v903_v45 = vsel %vm72_vm0, %v4920_v37, -inf }
 0x2b7   :  { %689 = vmax.xlane.f32.xlu0 %v688_v28  ;;  %v1074_v29 = vpop.f32.mrf.mxu0 }
 0x2b8   :  { %v4913_v31 = vadd.f32 %v1074_v29, %v4804_v11 }
 0x2b9   :  { %v4087_v33 = vpop.f32.mrf.mxu0 }
 0x2ba   :  { %v1097_v36 = vsel %vm72_vm0, %v4913_v31, -inf }
 0x2bb   :  { %683 = vmax.xlane.f32.xlu0 %v682_v34  ;;  %1098 = vmax.xlane.f32.xlu1 %v1097_v36  ;;  %v1077_v24 = vpop.f32.mrf.mxu0 }
 0x2bc   :  { %v4935_v52 = vadd.f32 %v1077_v24, %v4861_v53 }
 0x2bd   :  { %v4088_v41 = vpop.f32.mrf.mxu0 }
 0x2be   :  { %v1100_v60 = vsel %vm72_vm0, %v4935_v52, -inf }
 0x2bf   :  { %898 = vmax.xlane.f32.xlu0 %v897_v39  ;;  %v1082_v11 = vpop.f32.mrf.mxu0 }
 0x2c0   :  { %v4928_v44 = vadd.f32 %v1082_v11, %v4838_v40 }
 0x2c1   :  { %v4091_v47 = vpop.f32.mrf.mxu0 }
 0x2c2   :  { %v1103_v49 = vsel %vm72_vm0, %v4928_v44, -inf }
 0x2c3   :  { %904 = vmax.xlane.f32.xlu0 %v903_v45  ;;  %1104 = vmax.xlane.f32.xlu1 %v1103_v49  ;;  %v1085_v50 = vpop.f32.mrf.mxu0 }
 0x2c4   :  { %v4940_v58 = vadd.f32 %v1085_v50, %v4851_v48 }
 0x2c5   :  { %v4092_v56 = vpop.f32.mrf.mxu0 }
 0x2c6   :  { %v1106_v0 = vsel %vm72_vm0, %v4940_v58, -inf }
 0x2c7   :  { %892 = vmax.xlane.f32.xlu0 %v891_v54  ;;  %v1090_v40 = vpop.f32.mrf.mxu0 }
 0x2c8   :  { %v4943_v59 = vadd.f32 %v1090_v40, %v4823_v32 }
 0x2c9   :  { %v4095_v62 = vpop.f32.mrf.mxu0 }
 0x2ca   :  { %v1109_v53 = vsel %vm72_vm0, %v4943_v59, -inf }
 0x2cb   :  { %1101 = vmax.xlane.f32.xlu0 %v1100_v60  ;;  %1110 = vmax.xlane.f32.xlu1 %v1109_v53  ;;  %v1093_v63 = vpop.f32.mrf.mxu0 }
 0x2cc   :  { %v4952_v2 = vadd.f32 %v1093_v63, %v4831_v38 }
 0x2cd   :  { %v4096_v48 = vpop.f32.mrf.mxu0 }
 0x2ce   :  { %v1112_v32 = vsel %vm72_vm0, %v4952_v2, -inf }
 0x2cf   :  { %1107 = vmax.xlane.f32.xlu0 %v1106_v0 }
 0x2d3   :  { %1113 = vmax.xlane.f32.xlu0 %v1112_v32 }
 0x310   :  { %v472_v3 = vpop.xlane.xlu1 %471 }
 0x311   :  { %v488_v5 = vsub.f32 %v4809_v14, %v472_v3 }
 0x313   :  { %v494_v6 = vmul.f32 1.442695, %v488_v5 }
 0x314   :  { %v681_v7 = vpop.xlane.xlu1 %680 }
 0x315   :  { %4358 = vpow2.f32 %v494_v6  ;;  %v697_v15 = vsub.f32 %v4814_v19, %v681_v7 }
 0x317   :  { %v703_v16 = vmul.f32 1.442695, %v697_v15 }
 0x319   :  { %4360 = vpow2.f32 %v703_v16 }
 0x320   :  { %v484_v18 = vpop.xlane.xlu0 %483 }
 0x321   :  { %v492_v11 = vsub.f32 %v4826_v35, %v484_v18 }
 0x322   :  { %v4958_v22 = vpop.eup %4358 }
 0x323   :  { %v506_v38 = vsel %vm72_vm0, %v4958_v22, 0.0  ;;  %v502_v49 = vmul.f32 1.442695, %v492_v11 }
 0x324   :  { %v487_v23 = vpop.xlane.xlu0 %486  ;;  %507 = vadd.xlane.f32.xlu1 %v506_v38 }
 0x325   :  { %v493_v0 = vsub.f32 %v4841_v43, %v487_v23 }
 0x326   :  { %v4962_v25 = vpop.eup %4360 }
 0x327   :  { %v715_v14 = vsel %vm72_vm0, %v4962_v25, 0.0 }
 0x328   :  { %v478_v26 = vpop.xlane.xlu0 %477  ;;  %716 = vadd.xlane.f32.xlu1 %v715_v14 }
 0x329   :  { %v490_v28 = vsub.f32 %v4844_v46, %v478_v26 }
 0x32b   :  { %v498_v19 = vmul.f32 1.442695, %v490_v28 }
 0x32c   :  { %v481_v29 = vpop.xlane.xlu0 %480  ;;  %v890_v3 = vpop.xlane.xlu1 %889 }
 0x32d   :  { %4362 = vpow2.f32 %v498_v19  ;;  %v491_v40 = vsub.f32 %v4854_v51, %v481_v29  ;;  %v504_v51 = vmul.f32 1.442695, %v493_v0 }
 0x330   :  { %v475_v33 = vpop.xlane.xlu0 %474 }
 0x331   :  { %v489_v34 = vsub.f32 %v4867_v57, %v475_v33 }
 0x333   :  { %v496_v36 = vmul.f32 1.442695, %v489_v34 }
 0x334   :  { %v693_v24 = vpop.xlane.xlu0 %692  ;;  %v896_v16 = vpop.xlane.xlu1 %895 }
 0x335   :  { %4364 = vpow2.f32 %v496_v36  ;;  %v701_v50 = vsub.f32 %v4874_v61, %v693_v24  ;;  %v908_v38 = vsub.f32 %v4879_v1, %v896_v16 }
 0x337   :  { %v711_v60 = vmul.f32 1.442695, %v701_v50  ;;  %v916_v28 = vmul.f32 1.442695, %v908_v38 }
 0x338   :  { %v696_v39 = vpop.xlane.xlu0 %695 }
 0x339   :  { %v702_v5 = vsub.f32 %v4884_v4, %v696_v39 }
 0x33a   :  { %v4968_v41 = vpop.eup %4362 }
 0x33b   :  { %v512_v45 = vsel %vm72_vm0, %v4968_v41, 0.0  ;;  %v713_v7 = vmul.f32 1.442695, %v702_v5 }
 0x33c   :  { %v687_v47 = vpop.xlane.xlu0 %686  ;;  %513 = vadd.xlane.f32.xlu1 %v512_v45  ;;  %v902_v33 = vpop.xlane.xlu1 %901 }
 0x33d   :  { %v699_v46 = vsub.f32 %v4889_v12, %v687_v47  ;;  %v500_v12 = vmul.f32 1.442695, %v491_v40  ;;  %v910_v34 = vsub.f32 %v4894_v17, %v902_v33  ;;  %v186_v17 = vld [vmem:[%s6077_s5 + $0x40] sm:$0xff] }
 0x33f   :  { %v707_v54 = vmul.f32 1.442695, %v699_v46  ;;  %v920_v45 = vmul.f32 1.442695, %v910_v34 }
 0x340   :  { %v690_v57 = vpop.xlane.xlu0 %689 }
 0x341   :  { %4366 = vpow2.f32 %v707_v54  ;;  %v700_v61 = vsub.f32 %v4897_v21, %v690_v57  ;;  %v906_v21 = vsub.f32 %v4864_v55, %v890_v3 }
 0x342   :  { %v4975_v56 = vpop.eup %4364  ;;  %4368 = vpow2.f32 %v502_v49 }
 0x343   :  { %v509_v35 = vsel %vm72_vm0, %v4975_v56, 0.0  ;;  %4370 = vpow2.f32 %v711_v60  ;;  %v709_v48 = vmul.f32 1.442695, %v700_v61  ;;  %v912_v4 = vmul.f32 1.442695, %v906_v21 }
 0x344   :  { %v684_v62 = vpop.xlane.xlu0 %683  ;;  %510 = vadd.xlane.f32.xlu0 %v509_v35 }
 0x345   :  { %v698_v53 = vsub.f32 %v4905_v27, %v684_v62  ;;  %v1099_v62 = vpop.xlane.xlu1 %1098 }
 0x347   :  { %v705_v63 = vmul.f32 1.442695, %v698_v53 }
 0x348   :  { %v899_v26 = vpop.xlane.xlu0 %898 }
 0x349   :  { %4372 = vpow2.f32 %v705_v63  ;;  %v909_v19 = vsub.f32 %v4910_v30, %v899_v26 }
 0x34a   :  { %4374 = vpow2.f32 %v500_v12 }
 0x34b   :  { %4376 = vpow2.f32 %v709_v48  ;;  %v918_v36 = vmul.f32 1.442695, %v909_v19 }
 0x34c   :  { %4378 = vpow2.f32 %v504_v51  ;;  %v905_v11 = vpop.xlane.xlu0 %904  ;;  %v1105_v0 = vpop.xlane.xlu1 %1104 }
 0x34d   :  { %4380 = vpow2.f32 %v713_v7  ;;  %v911_v30 = vsub.f32 %v4920_v37, %v905_v11  ;;  %v1117_v3 = vsub.f32 %v4928_v44, %v1105_v0  ;;  %v1295_v0 = vld [vmem:[%s6080_s7 + $0x10] sm:$0xff] }
 0x34e   :  { %v4983_v32 = vpop.eup %4366  ;;  %4382 = vpow2.f32 %v912_v4 }
 0x34f   :  { %v721_v27 = vsel %vm72_vm0, %v4983_v32, 0.0  ;;  %v4988_v6 = vpop.eup %4368  ;;  %4384 = vpow2.f32 %v916_v28  ;;  %v922_v49 = vmul.f32 1.442695, %v911_v30  ;;  %v1125_v7 = vmul.f32 1.442695, %v1117_v3  ;;  %v1323_v3 = vld [vmem:[%s6081_s8 + $0x10] sm:$0xff] }
 0x350   :  { %722 = vadd.xlane.f32.xlu1 %v721_v27  ;;  %v518_v43 = vsel %vm72_vm0, %v4988_v6, 0.0  ;;  %v4993_v15 = vpop.eup %4370  ;;  %4386 = vpow2.f32 %v918_v36  ;;  %v893_v40 = vpop.xlane.xlu0 %892 }
 0x351   :  { %v727_v55 = vsel %vm72_vm0, %v4993_v15, 0.0  ;;  %4388 = vpow2.f32 %v920_v45  ;;  %v907_v63 = vsub.f32 %v4925_v42, %v893_v40  ;;  %v1115_v42 = vsub.f32 %v4913_v31, %v1099_v62  ;;  %v187_v31 = vld [vmem:[%s6077_s5 + $0x48] sm:$0xff]  ;;  %v1324_v62 = vld [vmem:[%s6081_s8 + $0x18] sm:$0xff] }
 0x352   :  { %4390 = vpow2.f32 %v922_v49  ;;  %v1294_v40 = vld [vmem:[%s6080_s7 + $0x8] sm:$0xff] }
 0x353   :  { %v914_v5 = vmul.f32 1.442695, %v907_v63  ;;  %v1121_v4 = vmul.f32 1.442695, %v1115_v42  ;;  %v1322_v63 = vld [vmem:[%s6081_s8 + $0x8] sm:$0xff]  ;;  %v1448_v42 = vld [vmem:[%s6083_s11 + $0x58] sm:$0xff] }
 0x354   :  { %519 = vadd.xlane.f32.xlu1 %v518_v43  ;;  %v1102_v53 = vpop.xlane.xlu0 %1101  ;;  %v1111_v34 = vpop.xlane.xlu1 %1110 }
 0x355   :  { %4392 = vpow2.f32 %v914_v5  ;;  %v1116_v38 = vsub.f32 %v4935_v52, %v1102_v53  ;;  %v1119_v36 = vsub.f32 %v4943_v59, %v1111_v34  ;;  %v188_v59 = vld [vmem:[%s6077_s5 + $0x50] sm:$0xff]  ;;  %v1328_v53 = vld [vmem:[%s6082_s9 + $0x18] sm:$0xff] }
 0x356   :  { %v4995_v18 = vpop.eup %4372  ;;  %4394 = vpow2.f32 %v1125_v7  ;;  %v1452_v5 = vld [vmem:[%s6083_s11 + $0x78] sm:$0xff]  ;;  %v1321_v7 = vld [vmem:[%s6081_s8] sm:$0xff]  ;;  %v1447_v34 = vld [vmem:[%s6083_s11 + $0x50] sm:$0xff] }
 0x357   :  { %v718_v23 = vsel %vm72_vm0, %v4995_v18, 0.0  ;;  %v5002_v14 = vpop.eup %4374  ;;  %v1129_v45 = vmul.f32 1.442695, %v1119_v36 }
 0x358   :  { %719 = vadd.xlane.f32.xlu0 %v718_v23  ;;  %728 = vadd.xlane.f32.xlu1 %v727_v55  ;;  %v515_v29 = vsel %vm72_vm0, %v5002_v14, 0.0  ;;  %v5007_v1 = vpop.eup %4376  ;;  %v1108_v27 = vpop.xlane.xlu0 %1107  ;;  %v1123_v23 = vmul.f32 1.442695, %v1116_v38  ;;  %v1446_v38 = vld [vmem:[%s6083_s11 + $0x48] sm:$0xff] }
 0x359   :  { %v724_v24 = vsel %vm72_vm0, %v5007_v1, 0.0  ;;  %v5012_v39 = vpop.eup %4378  ;;  %v1118_v43 = vsub.f32 %v4940_v58, %v1108_v27  ;;  %v1327_v27 = vld [vmem:[%s6082_s9 + $0x10] sm:$0xff] }
 0x35a   :  { %v521_v47 = vsel %vm72_vm0, %v5012_v39, 0.0  ;;  %v5017_v46 = vpop.eup %4380 }
 0x35b   :  { %v730_v50 = vsel %vm72_vm0, %v5017_v46, 0.0  ;;  %v5024_v54 = vpop.eup %4382  ;;  %v1127_v16 = vmul.f32 1.442695, %v1118_v43 }
 0x35c   :  { %516 = vadd.xlane.f32.xlu0 %v515_v29  ;;  %v924_v37 = vsel %vm72_vm0, %v5024_v54, 0.0  ;;  %v5028_v57 = vpop.eup %4384  ;;  %v1114_v44 = vpop.xlane.xlu0 %1113 }
 0x35d   :  { %v930_v60 = vsel %vm72_vm0, %v5028_v57, 0.0  ;;  %v5032_v35 = vpop.eup %4386  ;;  %4396 = vpow2.f32 %v1127_v16  ;;  %v1120_v55 = vsub.f32 %v4952_v2, %v1114_v44  ;;  %v1325_v16 = vld [vmem:[%s6082_s9] sm:$0xff]  ;;  %v1451_v44 = vld [vmem:[%s6083_s11 + $0x70] sm:$0xff] }
 0x35e   :  { %v933_v12 = vsel %vm72_vm0, %v5032_v35, 0.0  ;;  %v5036_v61 = vpop.eup %4388  ;;  %4398 = vpow2.f32 %v1121_v4 }
 0x35f   :  { %v936_v48 = vsel %vm72_vm0, %v5036_v61, 0.0  ;;  %v5041_v51 = vpop.eup %4390  ;;  %4400 = vpow2.f32 %v1123_v23  ;;  %v1131_v28 = vmul.f32 1.442695, %v1120_v55 }
 0x360   :  { %725 = vadd.xlane.f32.xlu0 %v724_v24  ;;  %v939_v21 = vsel %vm72_vm0, %v5041_v51, 0.0 }
 0x361   :  { %4402 = vpow2.f32 %v1131_v28  ;;  %v1444_v28 = vld [vmem:[%s6083_s11 + $0x38] sm:$0xff] }
 0x362   :  { %v5050_v26 = vpop.eup %4392  ;;  %4404 = vpow2.f32 %v1129_v45  ;;  %v1445_v45 = vld [vmem:[%s6083_s11 + $0x40] sm:$0xff] }
 0x363   :  { %v927_v58 = vsel %vm72_vm0, %v5050_v26, 0.0  ;;  %v5054_v19 = vpop.eup %4394 }
 0x364   :  { %522 = vadd.xlane.f32.xlu0 %v521_v47  ;;  %v1139_v52 = vsel %vm72_vm0, %v5054_v19, 0.0 }
 0x368   :  { %731 = vadd.xlane.f32.xlu0 %v730_v50 }
 0x369   :  { %232 = vperm.xlu1 %4319, %v186_v17  }
 0x36a   :  { %v5061_v29 = vpop.eup %4396 }
 0x36b   :  { %v1142_v2 = vsel %vm72_vm0, %v5061_v29, 0.0  ;;  %v5065_v33 = vpop.eup %4398 }
 0x36c   :  { %925 = vadd.xlane.f32.xlu0 %v924_v37  ;;  %v1133_v24 = vsel %vm72_vm0, %v5065_v33, 0.0  ;;  %v5070_v11 = vpop.eup %4400  ;;  %v1293_v37 = vld [vmem:[%s6080_s7] sm:$0xff] }
 0x36d   :  { %v1136_v30 = vsel %vm72_vm0, %v5070_v11, 0.0 }
 0x36e   :  { %v5074_v47 = vpop.eup %4402 }
 0x36f   :  { %v1148_v17 = vsel %vm72_vm0, %v5074_v47, 0.0  ;;  %v5078_v49 = vpop.eup %4404 }
 0x370   :  { %931 = vadd.xlane.f32.xlu0 %v930_v60  ;;  %v1145_v50 = vsel %vm72_vm0, %v5078_v49, 0.0  ;;  %v1296_v60 = vld [vmem:[%s6080_s7 + $0x18] sm:$0xff] }
 0x374   :  { %934 = vadd.xlane.f32.xlu0 %v933_v12  ;;  %v189_v12 = vld [vmem:[%s6077_s5 + $0x58] sm:$0xff] }
 0x378   :  { %937 = vadd.xlane.f32.xlu0 %v936_v48  ;;  %v1326_v48 = vld [vmem:[%s6082_s9 + $0x8] sm:$0xff] }
 0x37c   :  { %940 = vadd.xlane.f32.xlu0 %v939_v21  ;;  %v1450_v21 = vld [vmem:[%s6083_s11 + $0x68] sm:$0xff] }
 0x38d   :  { %928 = vadd.xlane.f32.xlu1 %v927_v58  ;;  %v1449_v58 = vld [vmem:[%s6083_s11 + $0x60] sm:$0xff] }
 0x391   :  { %1140 = vadd.xlane.f32.xlu1 %v1139_v52 }
 0x392   :  { %237 = vperm.xlu0 %4318, %v187_v31  }
 0x395   :  { %1143 = vadd.xlane.f32.xlu1 %v1142_v2  ;;  %v1442_v2 = vld [vmem:[%s6083_s11 + $0x28] sm:$0xff] }
 0x399   :  { %1134 = vadd.xlane.f32.xlu1 %v1133_v24  ;;  %v1440_v24 = vld [vmem:[%s6083_s11 + $0x18] sm:$0xff] }
 0x39d   :  { %1137 = vadd.xlane.f32.xlu1 %v1136_v30 }
 0x3a1   :  { %1149 = vadd.xlane.f32.xlu1 %v1148_v17 }
 0x3ad   :  { %v508_v43 = vpop.xlane.xlu1 %507 }
 0x3b1   :  { %1146 = vadd.xlane.f32.xlu0 %v1145_v50  ;;  %v5133_v4 = vpop.xlane.xlu1 %716  ;;  %v1443_v50 = vld [vmem:[%s6083_s11 + $0x30] sm:$0xff] }
 0x3b2   :  { %242 = vperm.xlu1 %4319, %v188_v59   ;;  %v1438_v59 = vld [vmem:[%s6083_s11 + $0x8] sm:$0xff] }
 0x3b6   :  { %1299 = vperm.xlu1 %4319, %v1293_v37  }
 0x3ba   :  { %1304 = vperm.xlu1 %4319, %v1294_v40   ;;  %v1788_v40 = vld [vmem:[%s6084_s13 + $0x8] sm:$0xff] }
 0x3be   :  { %1314 = vperm.xlu1 %4319, %v1296_v60   ;;  %v1441_v60 = vld [vmem:[%s6083_s11 + $0x20] sm:$0xff] }
 0x3c2   :  { %1388 = vperm.xlu1 %4319, %v1324_v62   ;;  %v1790_v62 = vld [vmem:[%s6084_s13 + $0x18] sm:$0xff] }
 0x3c5   :  { %v514_v55 = vpop.xlane.xlu1 %513 }
 0x3c6   :  { %1412 = vperm.xlu1 %4319, %v1328_v53   ;;  %v1439_v53 = vld [vmem:[%s6083_s11 + $0x10] sm:$0xff] }
 0x3c7   :  { %247 = vperm.xlu0 %4318, %v189_v12  }
 0x3ca   :  { %1378 = vperm.xlu1 %4319, %v1322_v63   ;;  %v3732_v63 = vld [vmem:[%s6075_s2 + $0x38] sm:$0xff] }
 0x3cb   :  { %1309 = vperm.xlu0 %4318, %v1295_v0   ;;  %v1437_v0 = vld [vmem:[%s6083_s11] sm:$0xff] }
 0x3cd   :  { %v511_v23 = vpop.xlane.xlu0 %510 }
 0x3ce   :  { %1402 = vperm.xlu1 %4319, %v1326_v48  }
 0x3cf   :  { %1383 = vperm.xlu0 %4318, %v1323_v3  }
 0x3d2   :  { %1530 = vperm.xlu1 %4319, %v1452_v5   ;;  %v3736_v5 = vld [vmem:[%s6093_s23 + $0x38] sm:$0xff] }
 0x3d3   :  { %1407 = vperm.xlu0 %4318, %v1327_v27   ;;  %v1787_v27 = vld [vmem:[%s6084_s13] sm:$0xff] }
 0x3d6   :  { %1520 = vperm.xlu1 %4319, %v1450_v21  }
 0x3d7   :  { %1373 = vperm.xlu0 %4318, %v1321_v7  }
 0x3d9   :  { %v5149_v52 = vpop.xlane.xlu1 %722 }
 0x3da   :  { %1510 = vperm.xlu1 %4319, %v1448_v42  }
 0x3db   :  { %1397 = vperm.xlu0 %4318, %v1325_v16  }
 0x3dd   :  { %v520_v30 = vpop.xlane.xlu1 %519 }
 0x3de   :  { %1500 = vperm.xlu1 %4319, %v1446_v38   ;;  %4406 = vrcp.f32 %v520_v30  ;;  %v3735_v30 = vld [vmem:[%s6093_s23 + $0x30] sm:$0xff] }
 0x3df   :  { %1525 = vperm.xlu0 %4318, %v1451_v44  }
 0x3e1   :  { %v5147_v31 = vpop.xlane.xlu0 %719  ;;  %v729_v44 = vpop.xlane.xlu1 %728 }
 0x3e2   :  { %1490 = vperm.xlu1 %4319, %v1444_v28  }
 0x3e3   :  { %1515 = vperm.xlu0 %4318, %v1449_v58  }
 0x3e5   :  { %v517_v36 = vpop.xlane.xlu0 %516 }
 0x3e6   :  { %1480 = vperm.xlu1 %4319, %v1442_v2   ;;  %v3734_v2 = vld [vmem:[%s6093_s23 + $0x28] sm:$0xff] }
 0x3e7   :  { %1505 = vperm.xlu0 %4318, %v1447_v34   ;;  %v3731_v34 = vld [vmem:[%s6075_s2 + $0x30] sm:$0xff] }
 0x3e9   :  { %v726_v17 = vpop.xlane.xlu0 %725 }
 0x3ea   :  { %1470 = vperm.xlu1 %4319, %v1440_v24  }
 0x3eb   :  { %1495 = vperm.xlu0 %4318, %v1445_v45   ;;  %v4407_v48 = vpop.eup %4406 }
 0x3ec   :  { %v534_v21 = vmul.f32 %v4407_v48, %v4988_v6  ;;  %v1789_v6 = vld [vmem:[%s6084_s13 + $0x10] sm:$0xff] }
 0x3ed   :  { %v523_v37 = vpop.xlane.xlu0 %522 }
 0x3ee   :  { %4408 = vrcp.f32 %v523_v37  ;;  %1460 = vperm.xlu1 %4319, %v1438_v59  }
 0x3ef   :  { %1485 = vperm.xlu0 %4318, %v1443_v50   ;;  %4410 = vrcp.f32 %v517_v36 }
 0x3f0   :  { %4412 = vrcp.f32 %v514_v55 }
 0x3f1   :  { %v732_v12 = vpop.xlane.xlu0 %731  ;;  %4414 = vrcp.f32 %v511_v23  ;;  %v3730_v23 = vld [vmem:[%s6075_s2 + $0x28] sm:$0xff] }
 0x3f2   :  { %1798 = vperm.xlu1 %4319, %v1788_v40   ;;  %4416 = vrcp.f32 %v508_v43  ;;  %v3729_v40 = vld [vmem:[%s6075_s2 + $0x20] sm:$0xff] }
 0x3f3   :  { %1475 = vperm.xlu0 %4318, %v1441_v60   ;;  %4418 = vrcp.f32 %v732_v12  ;;  %v3733_v12 = vld [vmem:[%s6093_s23 + $0x20] sm:$0xff] }
 0x3f4   :  { %4420 = vrcp.f32 %v729_v44 }
 0x3f5   :  { %v5195_v16 = vpop.xlane.xlu0 %925  ;;  %4422 = vrcp.f32 %v726_v17  ;;  %v3751_v17 = vld [vmem:[%s6077_s5 + $0x70] sm:$0xff] }
 0x3f6   :  { %1808 = vperm.xlu1 %4319, %v1790_v62   ;;  %4424 = vrcp.f32 %v5149_v52 }
 0x3f7   :  { %1465 = vperm.xlu0 %4318, %v1439_v53   ;;  %v233_v53 = vpop.permute.xlu1 %232  ;;  %4426 = vrcp.f32 %v5147_v31  ;;  %v3749_v31 = vld [vmem:[%s6077_s5 + $0x60] sm:$0xff] }
 0x3f8   :  { %4428 = vrcp.f32 %v5133_v4 }
 0x3f9   :  { %v5207_v58 = vpop.xlane.xlu0 %931 }
 0x3fa   :  { %1884 = vperm.xlu1 %4319, %v3732_v63  }
 0x3fb   :  { %v4409_v3 = vpop.eup %4408  ;;  %1455 = vperm.xlu0 %4318, %v1437_v0   ;;  %v366_v0 = vadd.f32 %v4797_v9, %v233_v53 }
 0x3fc   :  { %v535_v7 = vmul.f32 %v4409_v3, %v5012_v39  ;;  %v4411_v42 = vpop.eup %4410 }
 0x3fd   :  { %v4413_v38 = vpop.eup %4412  ;;  %v533_v39 = vmul.f32 %v4411_v42, %v5002_v14  ;;  %v935_v50 = vpop.xlane.xlu0 %934 }
 0x3fe   :  { %1908 = vperm.xlu1 %4319, %v3736_v5   ;;  %v538_v43 = vpack.c.bf16 %v535_v7, %v534_v21  ;;  %v532_v28 = vmul.f32 %v4413_v38, %v4968_v41  ;;  %v4415_v14 = vpop.eup %4414  ;;  %v3750_v41 = vld [vmem:[%s6077_s5 + $0x68] sm:$0xff]  ;;  %v382_v21 = vpack.c.bf16 %v366_v0, %v366_v0 }
 0x3ff   :  { %1793 = vperm.xlu0 %4318, %v1787_v27   ;;  %v4417_v24 = vpop.eup %4416  ;;  %v531_v59 = vmul.f32 %v4415_v14, %v4975_v56 }
 0x400   :  { %v549_v55 = vsel %vm72_vm0, %v538_v43, 0  ;;  %v537_v36 = vpack.c.bf16 %v533_v39, %v532_v28  ;;  %v530_v37 = vmul.f32 %v4417_v24, %v4958_v22  ;;  %v4419_v56 = vpop.eup %4418  ;;  %v3754_v43 = vld [vmem:[%s6077_s5 + $0x88] sm:$0xff] }
 0x401   :  { %4026 = vmatpush3.bf16.xpose.msra.mxu1 %v549_v55  ;;  %v4421_v62 = vpop.eup %4420  ;;  %v938_v52 = vpop.xlane.xlu0 %937  ;;  %v744_v63 = vmul.f32 %v4419_v56, %v5017_v46 }
 0x402   :  { %1874 = vperm.xlu1 %4319, %v3730_v23   ;;  %4027 = vmatprep.subr.bf16.mxu1 %v4569_v20  ;;  %v546_v45 = vsel %vm72_vm0, %v537_v36, 0  ;;  %v536_v60 = vpack.c.bf16 %v531_v59, %v530_v37  ;;  %v743_v48 = vmul.f32 %v4421_v62, %v4993_v15  ;;  %v4423_v5 = vpop.eup %4422  ;;  %v3753_v15 = vld [vmem:[%s6077_s5 + $0x80] sm:$0xff] }
 0x403   :  { %1803 = vperm.xlu0 %4318, %v1789_v6   ;;  %v4425_v7 = vpop.eup %4424  ;;  %v742_v4 = vmul.f32 %v4423_v5, %v5007_v1  ;;  %v3752_v6 = vld [vmem:[%s6077_s5 + $0x78] sm:$0xff] }
 0x404   :  { %v543_v22 = vsel %vm72_vm0, %v536_v60, 0  ;;  %v747_v3 = vpack.c.bf16 %v744_v63, %v743_v48  ;;  %v741_v42 = vmul.f32 %v4425_v7, %v4983_v32  ;;  %v4427_v44 = vpop.eup %4426 }
 0x405   :  { %v941_v27 = vpop.xlane.xlu0 %940  ;;  %v4429_v55 = vpop.eup %4428  ;;  %v740_v39 = vmul.f32 %v4427_v44, %v4995_v18  ;;  %v4326_v44 = vld [vmem:[%s6085_s6] sm:$0xff]  }
 0x406   :  { %1898 = vperm.xlu1 %4319, %v3734_v2   ;;  %4430 = vrcp.f32 %v941_v27  ;;  %v758_v9 = vsel %vm72_vm0, %v747_v3, 0  ;;  %v746_v38 = vpack.c.bf16 %v742_v4, %v741_v42  ;;  %v739_v32 = vmul.f32 %v4429_v55, %v4962_v25  ;;  %v3755_v2 = vld [vmem:[%s6077_s5 + $0x90] sm:$0xff]  ;;  %4111 = vmatprep.mubr.msk.bf16.mxu0 %vm280_vm1, %v4326_v44 }
 0x407   :  { %1879 = vperm.xlu0 %4318, %v3731_v34   ;;  %4432 = vrcp.f32 %v938_v52 }
 0x408   :  { %4434 = vrcp.f32 %v935_v50  ;;  %v755_v1 = vsel %vm72_vm0, %v746_v38, 0  ;;  %v745_v34 = vpack.c.bf16 %v740_v39, %v739_v32 }
 0x409   :  { %4028 = vmatpush3.bf16.xpose.msra.mxu1 %v546_v45  ;;  %4436 = vrcp.f32 %v5207_v58 }
 0x40a   :  { %1950 = vperm.xlu1 %4319, %v3750_v41   ;;  %4029 = vmatprep.subr.bf16.mxu1 %v4569_v20  ;;  %v752_v18 = vsel %vm72_vm0, %v745_v34, 0 }
 0x40b   :  { %1903 = vperm.xlu0 %4318, %v3735_v30  }
 0x40d   :  { %v238_v24 = vpop.permute.xlu0 %237 }
 0x40e   :  { %1955 = vperm.xlu1 %4319, %v3751_v17   ;;  %v369_v25 = vadd.f32 %v4806_v13, %v238_v24 }
 0x40f   :  { %1869 = vperm.xlu0 %4318, %v3729_v40  }
 0x410   :  { %v593_v50 = vpack.c.bf16 %v369_v25, %v369_v25 }
 0x411   :  { %4030 = vmatpush3.bf16.xpose.msra.mxu1 %v543_v22 }
 0x412   :  { %4049 = vmatprep.subr.bf16.mxu1 %v4569_v20 }
 0x413   :  { %1893 = vperm.xlu0 %4318, %v3733_v12   ;;  %v4431_v36 = vpop.eup %4430 }
 0x414   :  { %v4433_v14 = vpop.eup %4432  ;;  %v953_v58 = vmul.f32 %v4431_v36, %v5041_v51 }
 0x415   :  { %v952_v45 = vmul.f32 %v4433_v14, %v5036_v61  ;;  %v4435_v59 = vpop.eup %4434 }
 0x416   :  { %v929_v46 = vpop.xlane.xlu1 %928  ;;  %v4437_v37 = vpop.eup %4436  ;;  %v951_v51 = vmul.f32 %v4435_v59, %v5032_v35 }
 0x417   :  { %1945 = vperm.xlu0 %4318, %v3749_v31   ;;  %4438 = vrcp.f32 %v929_v46  ;;  %v956_v30 = vpack.c.bf16 %v953_v58, %v952_v45  ;;  %v950_v13 = vmul.f32 %v4437_v37, %v5028_v57  ;;  %v4328_v45 = vld [vmem:[%s6086_s10] sm:$0xff]  }
 0x418   :  { %4032 = vmatmul.mubr.msk.bf16.vlgmr.msra.gmra.mxu1 %vm72_vm0, %v382_v21  ;;  %4440 = vrcp.f32 %v5195_v16  ;;  %v4558_v37 = vld [vmem:[%s6076_s0] sm:$0xff] }
 0x419   :  { %4050 = vmatpush3.bf16.xpose.msra.mxu1 %v758_v9  ;;  %4055 = vmatprep.mubr.msk.bf16.mxu1 %vm4570_vm2, %v4569_v20  ;;  %v967_v40 = vsel %vm72_vm0, %v956_v30, 0  ;;  %v955_v61 = vpack.c.bf16 %v951_v51, %v950_v13  ;;  %v4559_v13 = vld [vmem:[%s6076_s0 + $0x10] sm:$0xff] }
 0x41a   :  { %4051 = vmatprep.subr.bf16.mxu1 %v4569_v20  ;;  %v1141_v23 = vpop.xlane.xlu1 %1140 }
 0x41b   :  { %1965 = vperm.xlu0 %4318, %v3753_v15   ;;  %v964_v62 = vsel %vm72_vm0, %v955_v61, 0 }
 0x41e   :  { %v1144_v28 = vpop.xlane.xlu1 %1143 }
 0x41f   :  { %1970 = vperm.xlu0 %4318, %v3754_v43  }
 0x421   :  { %4052 = vmatpush3.bf16.xpose.msra.mxu1 %v755_v1 }
 0x422   :  { %4053 = vmatprep.subr.bf16.mxu1 %v4569_v20  ;;  %v1135_v41 = vpop.xlane.xlu1 %1134 }
 0x423   :  { %1960 = vperm.xlu0 %4318, %v3752_v6  }
 0x424   :  { %v4439_v16 = vpop.eup %4438 }
 0x425   :  { %v4441_v56 = vpop.eup %4440  ;;  %v949_v53 = vmul.f32 %v4439_v16, %v5050_v26 }
 0x426   :  { %v1138_v17 = vpop.xlane.xlu1 %1137  ;;  %v948_v35 = vmul.f32 %v4441_v56, %v5024_v54  ;;  %v4560_v56 = vld [vmem:[%s6076_s0 + $0x18] sm:$0xff] }
 0x427   :  { %1975 = vperm.xlu0 %4318, %v3755_v2  }
 0x428   :  { %v954_v22 = vpack.c.bf16 %v949_v53, %v948_v35  ;;  %v4561_v53 = vld [vmem:[%s6076_s0 + $0x8] sm:$0xff] }
 0x429   :  { %4054 = vmatpush3.bf16.xpose.msra.mxu1 %v752_v18 }
 0x42a   :  { %4073 = vmatprep.subr.bf16.mxu1 %v4569_v20  ;;  %v1150_v60 = vpop.xlane.xlu1 %1149  ;;  %v961_v12 = vsel %vm72_vm0, %v954_v22, 0 }
 0x42b   :  { %4442 = vrcp.f32 %v1150_v60 }
 0x42e   :  { %v243_v57 = vpop.permute.xlu1 %242 }
 0x42f   :  { %v374_v63 = vadd.f32 %v4795_v8, %v243_v57 }
 0x430   :  { %4056 = vmatmul.mubr.msk.bf16.vlgmr.msra.gmra.mxu1 %vm72_vm0, %v593_v50 }
 0x431   :  { %4074 = vmatpush3.bf16.xpose.msra.mxu1 %v967_v40  ;;  %4079 = vmatprep.mubr.msk.bf16.mxu1 %vm4570_vm2, %v4569_v20  ;;  %v802_v0 = vpack.c.bf16 %v374_v63, %v374_v63 }
 0x432   :  { %4075 = vmatprep.subr.bf16.mxu1 %v4569_v20  ;;  %v1300_v30 = vpop.permute.xlu1 %1299 }
 0x436   :  { %v1305_v40 = vpop.permute.xlu1 %1304 }
 0x438   :  { %v4443_v26 = vpop.eup %4442 }
 0x439   :  { %4076 = vmatpush3.bf16.xpose.msra.mxu1 %v964_v62  ;;  %v1162_v31 = vmul.f32 %v4443_v26, %v5074_v47 }
 0x43a   :  { %v1147_v52 = vpop.xlane.xlu0 %1146  ;;  %4077 = vmatprep.subr.bf16.mxu1 %v4569_v20 }
 0x43b   :  { %4444 = vrcp.f32 %v1147_v52 }
 0x43c   :  { %4446 = vrcp.f32 %v1144_v28 }
 0x43d   :  { %4448 = vrcp.f32 %v1141_v23 }
 0x43e   :  { %4450 = vrcp.f32 %v1138_v17 }
 0x43f   :  { %4452 = vrcp.f32 %v1135_v41  ;;  %v4327_v41 = vld [vmem:[%s6085_s6 + $0x8] sm:$0xff]  }
 0x441   :  { %4078 = vmatpush3.bf16.xpose.msra.mxu1 %v961_v12  ;;  %v1315_v12 = vpop.permute.xlu1 %1314 }
 0x442   :  { %4097 = vmatprep.subr.bf16.mxu1 %v4569_v20  ;;  %v248_v43 = vpop.permute.xlu0 %247 }
 0x443   :  { %v377_v38 = vadd.f32 %v4799_v10, %v248_v43 }
 0x446   :  { %v1310_v35 = vpop.permute.xlu0 %1309 }
 0x448   :  { %v4445_v48 = vpop.eup %4444  ;;  %4080 = vmatmul.mubr.msk.bf16.vlgmr.msra.gmra.mxu1 %vm72_vm0, %v802_v0 }
 0x449   :  { %v1161_v54 = vmul.f32 %v4445_v48, %v5078_v49  ;;  %4103 = vmatprep.mubr.msk.bf16.mxu1 %vm4570_vm2, %v4569_v20  ;;  %v4447_v3 = vpop.eup %4446 }
 0x44a   :  { %v4449_v27 = vpop.eup %4448  ;;  %v1160_v21 = vmul.f32 %v4447_v3, %v5061_v29 }
 0x44b   :  { %v1165_v5 = vpack.c.bf16 %v1162_v31, %v1161_v54  ;;  %v1159_v7 = vmul.f32 %v4449_v27, %v5054_v19  ;;  %v4451_v9 = vpop.eup %4450  ;;  %v1011_v19 = vpack.c.bf16 %v377_v38, %v377_v38 }
 0x44c   :  { %v4453_v49 = vpop.eup %4452  ;;  %v1158_v15 = vmul.f32 %v4451_v9, %v5070_v11 }
 0x44d   :  { %v1176_v8 = vsel %vm72_vm0, %v1165_v5, 0  ;;  %v1164_v46 = vpack.c.bf16 %v1160_v21, %v1159_v7  ;;  %v1157_v4 = vmul.f32 %v4453_v49, %v5065_v33 }
 0x44e   :  { %4098 = vmatpush3.bf16.xpose.msra.mxu1 %v1176_v8 }
 0x44f   :  { %4099 = vmatprep.subr.bf16.mxu1 %v4569_v20  ;;  %v1173_v47 = vsel %vm72_vm0, %v1164_v46, 0  ;;  %v1163_v42 = vpack.c.bf16 %v1158_v15, %v1157_v4 }
 0x451   :  { %v1170_v29 = vsel %vm72_vm0, %v1163_v42, 0 }
 0x456   :  { %4100 = vmatpush3.bf16.xpose.msra.mxu1 %v1173_v47 }
 0x457   :  { %4101 = vmatprep.subr.bf16.mxu1 %v4569_v20 }
 0x45e   :  { %4102 = vmatpush3.bf16.xpose.msra.mxu1 %v1170_v29 }
 0x465   :  { %4104 = vmatmul.mubr.msk.bf16.vlgmr.msra.gmra.mxu1 %vm72_vm0, %v1011_v19 }
 0x466   :  { %4119 = vmatprep.mubr.msk.bf16.mxu1 %vm280_vm1, %v4328_v45 }
 0x4d8   :  { %v585_v11 = vpop.f32.mrf.mxu1 }
 0x4da   :  { %v4033_v23 = vpop.f32.mrf.mxu1 }
 0x4dc   :  { %v588_v55 = vpop.f32.mrf.mxu1 }
 0x4de   :  { %v4034_v33 = vpop.f32.mrf.mxu1 }
 0x4f0   :  { %v794_v1 = vpop.f32.mrf.mxu1 }
 0x4f1   :  { %v1222_v18 = vpack.c.bf16 %v794_v1, %v585_v11 }
 0x4f2   :  { %v4057_v6 = vpop.f32.mrf.mxu1 }
 0x4f4   :  { %v797_v39 = vpop.f32.mrf.mxu1 }
 0x4f6   :  { %v4058_v32 = vpop.f32.mrf.mxu1 }
 0x508   :  { %v1003_v28 = vpop.f32.mrf.mxu1 }
 0x50a   :  { %v4081_v2 = vpop.f32.mrf.mxu1 }
 0x50c   :  { %v1006_v10 = vpop.f32.mrf.mxu1 }
 0x50e   :  { %v4082_v34 = vpop.f32.mrf.mxu1 }
 0x525   :  { %v1212_v36 = vpop.f32.mrf.mxu1 }
 0x526   :  { %v1223_v14 = vpack.c.bf16 %v1212_v36, %v1003_v28 }
 0x527   :  { %v4105_v24 = vpop.f32.mrf.mxu1 }
 0x528   :  { %4107 = vmatprep.subr.bf16.mxu0 %v1223_v14  ;;  %v1389_v24 = vpop.permute.xlu1 %1388 }
 0x529   :  { %v1215_v58 = vpop.f32.mrf.mxu1  ;;  %4108 = vmatpush3.bf16.msra.mxu0 %v1223_v14 }
 0x52a   :  { %4109 = vmatprep.subr.bf16.mxu0 %v1222_v18 }
 0x52b   :  { %v4106_v25 = vpop.f32.mrf.mxu1 }
 0x52c   :  { %v1413_v58 = vpop.permute.xlu1 %1412 }
 0x52d   :  { %4110 = vmatpush3.bf16.msra.mxu0 %v1222_v18  ;;  %v1384_v18 = vpop.permute.xlu0 %1383 }
 0x530   :  { %4112 = vmatmul.mubr.msk.bf16.vlgmr.msra.gmra.mxu0 %vm280_vm1, %v4327_v41  ;;  %v1379_v41 = vpop.permute.xlu1 %1378 }
 0x531   :  { %v1408_v25 = vpop.permute.xlu0 %1407 }
 0x535   :  { %v1374_v45 = vpop.permute.xlu0 %1373 }
 0x5f0   :  { %v4113_v59 = vpop.f32.mrf.mxu0 }
 0x5f1   :  { %v1291_v61 = vadd.f32 %v4559_v13, %v4113_v59 }
 0x5f2   :  { %v1274_v50 = vpop.f32.mrf.mxu0 }
 0x5f3   :  { %v1289_v17 = vadd.f32 %v4558_v37, %v1274_v50  ;;  %v5331_v22 = vadd.f32 %v1310_v35, %v1291_v61 }
 0x5f4   :  { %v4114_v51 = vpop.f32.mrf.mxu0 }
 0x5f5   :  { %v5323_v60 = vadd.f32 %v1300_v30, %v1289_v17  ;;  %v1292_v62 = vadd.f32 %v4560_v56, %v4114_v51  ;;  %v1332_v54 = vsel %vm72_vm0, %v5331_v22, 0.0  ;;  %v1398_v56 = vpop.permute.xlu0 %1397 }
 0x5f6   :  { %v1277_v16 = vpop.f32.mrf.mxu0 }
 0x5f7   :  { %v1290_v52 = vadd.f32 %v4561_v53, %v1277_v16  ;;  %v1329_v63 = vsel %vm72_vm0, %v5323_v60, 0.0  ;;  %v5337_v26 = vadd.f32 %v1315_v12, %v1292_v62  ;;  %v1403_v16 = vpop.permute.xlu1 %1402 }
 0x5f9   :  { %v5333_v57 = vadd.f32 %v1305_v40, %v1290_v52  ;;  %v1334_v3 = vsel %vm72_vm0, %v5337_v26, 0.0 }
 0x5fb   :  { %v1330_v0 = vsel %vm72_vm0, %v5333_v57, 0.0 }
 0x5fc   :  { %v1331_v48 = vadd.f32 %v1330_v0, %v1329_v63  ;;  %v4329_v0 = vld [vmem:[%s6086_s10 + $0x8] sm:$0xff]  }
 0x5fe   :  { %v1333_v31 = vadd.f32 %v1332_v54, %v1331_v48  ;;  %v4330_v48 = vld [vmem:[%s6086_s10 + $0x10] sm:$0xff]   ;;  %v4331_v54 = vld [vmem:[%s6086_s10 + $0x18] sm:$0xff]  }
 0x600   :  { %v1335_v5 = vadd.f32 %v1334_v3, %v1333_v31  ;;  %v4332_v31 = vld [vmem:[%s6086_s10 + $0x20] sm:$0xff]   ;;  %v4333_v3 = vld [vmem:[%s6086_s10 + $0x28] sm:$0xff]  }
 0x602   :  { %v1336_v27 = vrot.slane %v1335_v5, 4 }
 0x604   :  { %v1337_v8 = vadd.f32 %v1336_v27, %v1335_v5  ;;  %v4334_v5 = vld [vmem:[%s6086_s10 + $0x30] sm:$0xff]   ;;  %v4335_v27 = vld [vmem:[%s6086_s10 + $0x38] sm:$0xff]  }
 0x606   :  { %v1338_v21 = vrot.slane %v1337_v8, 2 }
 0x608   :  { %v1339_v7 = vadd.f32 %v1338_v21, %v1337_v8  ;;  %v4336_v8 = vld [vmem:[%s6087_s12] sm:$0xff]  }
 0x609   :  { %4151 = vmatprep.mubr.bf16.mxu0 %v4336_v8 }
 0x60a   :  { %v1340_v46 = vrot.slane %v1339_v7, 1 }
 0x60c   :  { %v1341_v9 = vadd.f32 %v1340_v46, %v1339_v7 }
 0x60e   :  { %v1342_v49 = vmul.f32 0.03125, %v1341_v9 }
 0x610   :  { %v1343_v47 = vsub.f32 %v5323_v60, %v1342_v49  ;;  %v1344_v15 = vsub.f32 %v5333_v57, %v1342_v49  ;;  %v1345_v4 = vsub.f32 %v5331_v22, %v1342_v49  ;;  %v1346_v42 = vsub.f32 %v5337_v26, %v1342_v49  ;;  %v1531_v49 = vpop.permute.xlu1 %1530 }
 0x612   :  { %v1347_v43 = vmul.f32 %v1343_v47, %v1343_v47  ;;  %v1348_v29 = vmul.f32 %v1344_v15, %v1344_v15  ;;  %v1349_v38 = vmul.f32 %v1345_v4, %v1345_v4  ;;  %v1350_v19 = vmul.f32 %v1346_v42, %v1346_v42 }
 0x614   :  { %v1351_v44 = vsel %vm72_vm0, %v1347_v43, 0.0  ;;  %v1352_v11 = vsel %vm72_vm0, %v1348_v29, 0.0  ;;  %v1354_v55 = vsel %vm72_vm0, %v1349_v38, 0.0  ;;  %v1356_v1 = vsel %vm72_vm0, %v1350_v19, 0.0  ;;  %v1521_v43 = vpop.permute.xlu1 %1520 }
 0x615   :  { %v1353_v23 = vadd.f32 %v1352_v11, %v1351_v44 }
 0x617   :  { %v1355_v33 = vadd.f32 %v1354_v55, %v1353_v23 }
 0x618   :  { %v1511_v11 = vpop.permute.xlu1 %1510 }
 0x619   :  { %v1357_v6 = vadd.f32 %v1356_v1, %v1355_v33 }
 0x61b   :  { %v1358_v39 = vrot.slane %v1357_v6, 4 }
 0x61d   :  { %v1359_v32 = vadd.f32 %v1358_v39, %v1357_v6  ;;  %v1501_v6 = vpop.permute.xlu1 %1500 }
 0x61f   :  { %v1360_v28 = vrot.slane %v1359_v32, 2 }
 0x621   :  { %v1361_v2 = vadd.f32 %v1360_v28, %v1359_v32 }
 0x623   :  { %v1362_v10 = vrot.slane %v1361_v2, 1 }
 0x625   :  { %v1363_v34 = vadd.f32 %v1362_v10, %v1361_v2 }
 0x627   :  { %v1364_v36 = vmul.f32 0.03125, %v1363_v34 }
 0x629   :  { %v1365_v14 = vadd.f32 1e-05, %v1364_v36 }
 0x62b   :  { %4454 = vrsqrt.f32 %v1365_v14 }
 0x638   :  { %v4455_v30 = vpop.eup %4454 }
 0x639   :  { %v1368_v59 = vmul.f32 %v4455_v30, %v1344_v15  ;;  %v1369_v50 = vmul.f32 %v4455_v30, %v1345_v4  ;;  %v1370_v37 = vmul.f32 %v4455_v30, %v1346_v42  ;;  %v1367_v17 = vmul.f32 %v4455_v30, %v1343_v47  ;;  %v1526_v15 = vpop.permute.xlu0 %1525 }
 0x63b   :  { %v1393_v40 = vmul.f32 %v1384_v18, %v1369_v50  ;;  %v1394_v51 = vmul.f32 %v1389_v24, %v1370_v37  ;;  %v1391_v13 = vmul.f32 %v1374_v45, %v1367_v17  ;;  %v1392_v61 = vmul.f32 %v1379_v41, %v1368_v59 }
 0x63d   :  { %v1417_v62 = vadd.f32 %v1408_v25, %v1393_v40  ;;  %v1418_v53 = vadd.f32 %v1413_v58, %v1394_v51  ;;  %v1415_v52 = vadd.f32 %v1398_v56, %v1391_v13  ;;  %v1416_v35 = vadd.f32 %v1403_v16, %v1392_v61  ;;  %v1516_v38 = vpop.permute.xlu0 %1515  ;;  %v1491_v25 = vpop.permute.xlu1 %1490 }
 0x63f   :  { %v1436_v12 = vpack.c.bf16 %v1418_v53, %v1417_v62  ;;  %v1435_v63 = vpack.c.bf16 %v1416_v35, %v1415_v52 }
 0x641   :  { %4115 = vmatprep.subr.bf16.mxu1 %v1436_v12  ;;  %v1506_v55 = vpop.permute.xlu0 %1505  ;;  %v1481_v61 = vpop.permute.xlu1 %1480 }
 0x642   :  { %4116 = vmatpush3.bf16.msra.mxu1 %v1436_v12 }
 0x643   :  { %4117 = vmatprep.subr.bf16.mxu1 %v1435_v63 }
 0x645   :  { %v1496_v28 = vpop.permute.xlu0 %1495 }
 0x646   :  { %4118 = vmatpush3.bf16.msra.mxu1 %v1435_v63 }
 0x649   :  { %4120 = vmatmul.mubr.msk.bf16.vlgmr.msra.gmra.mxu1 %vm280_vm1, %v4329_v0  ;;  %v1486_v50 = vpop.permute.xlu0 %1485 }
 0x64a   :  { %4123 = vmatprep.mubr.msk.bf16.mxu1 %vm280_vm1, %v4330_v48  ;;  %v1471_v48 = vpop.permute.xlu1 %1470 }
 0x64d   :  { %v1476_v53 = vpop.permute.xlu0 %1475 }
 0x651   :  { %4124 = vmatmul.mubr.msk.bf16.gmra.mxu1 %vm280_vm1, %v4331_v54 }
 0x652   :  { %4127 = vmatprep.mubr.msk.bf16.mxu1 %vm280_vm1, %v4332_v31 }
 0x659   :  { %4128 = vmatmul.mubr.msk.bf16.gmra.mxu1 %vm280_vm1, %v4333_v3  ;;  %v1466_v3 = vpop.permute.xlu0 %1465 }
 0x65a   :  { %4131 = vmatprep.mubr.msk.bf16.mxu1 %vm280_vm1, %v4334_v5 }
 0x661   :  { %4132 = vmatmul.mubr.msk.bf16.gmra.mxu1 %vm280_vm1, %v4335_v27 }
 0x709   :  { %v5384_v21 = vpop.f32.mrf.mxu1 }
 0x70b   :  { %v5386_v7 = vpop.f32.mrf.mxu1 }
 0x70d   :  { %v4122_v46 = vpop.f32.mrf.mxu1 }
 0x70e   :  { %v1643_v5 = vadd.f32 %v4122_v46, %v1471_v48 }
 0x70f   :  { %v5388_v9 = vpop.f32.mrf.mxu1 }
 0x711   :  { %v4125_v47 = vpop.f32.mrf.mxu1 }
 0x712   :  { %v1656_v52 = vadd.f32 %v4125_v47, %v1486_v50  ;;  %v1461_v47 = vpop.permute.xlu1 %1460 }
 0x713   :  { %v1647_v4 = vpop.f32.mrf.mxu1 }
 0x714   :  { %v1700_v54 = vmax.f32 %v1656_v52, 0.0  ;;  %v1648_v31 = vadd.f32 %v1647_v4, %v1476_v53 }
 0x715   :  { %v4126_v42 = vpop.f32.mrf.mxu1 }
 0x716   :  { %v1659_v16 = vadd.f32 %v4126_v42, %v1491_v25  ;;  %v1697_v42 = vmax.f32 %v1643_v5, 0.0 }
 0x717   :  { %v1650_v29 = vpop.f32.mrf.mxu1 }
 0x718   :  { %v1701_v12 = vmax.f32 %v1659_v16, 0.0  ;;  %v1651_v63 = vadd.f32 %v1650_v29, %v1481_v61 }
 0x719   :  { %v4129_v19 = vpop.f32.mrf.mxu1 }
 0x71a   :  { %v1672_v41 = vadd.f32 %v4129_v19, %v1506_v55  ;;  %v1717_v27 = vpack.c.bf16 %v1701_v12, %v1700_v54  ;;  %v1699_v8 = vmax.f32 %v1651_v63, 0.0 }
 0x71b   :  { %v1663_v44 = vpop.f32.mrf.mxu1 }
 0x71c   :  { %v1704_v51 = vmax.f32 %v1672_v41, 0.0  ;;  %v1664_v13 = vadd.f32 %v1663_v44, %v1496_v28 }
 0x71d   :  { %v4130_v23 = vpop.f32.mrf.mxu1 }
 0x71e   :  { %v1675_v14 = vadd.f32 %v4130_v23, %v1511_v11  ;;  %v1702_v35 = vmax.f32 %v1664_v13, 0.0 }
 0x71f   :  { %v1666_v33 = vpop.f32.mrf.mxu1 }
 0x720   :  { %v1705_v37 = vmax.f32 %v1675_v14, 0.0  ;;  %v1667_v17 = vadd.f32 %v1666_v33, %v1501_v6  ;;  %v1799_v6 = vpop.permute.xlu1 %1798 }
 0x721   :  { %v4133_v1 = vpop.f32.mrf.mxu1 }
 0x722   :  { %v1688_v32 = vadd.f32 %v4133_v1, %v1526_v15  ;;  %v1719_v56 = vpack.c.bf16 %v1705_v37, %v1704_v51  ;;  %v1703_v62 = vmax.f32 %v1667_v17, 0.0  ;;  %v1698_v15 = vmax.f32 %v1648_v31, 0.0 }
 0x723   :  { %v1679_v39 = vpop.f32.mrf.mxu1 }
 0x724   :  { %v1680_v10 = vadd.f32 %v1679_v39, %v1516_v38  ;;  %v1708_v24 = vmax.f32 %v1688_v32, 0.0  ;;  %v1718_v0 = vpack.c.bf16 %v1703_v62, %v1702_v35  ;;  %v1716_v29 = vpack.c.bf16 %v1699_v8, %v1698_v15  ;;  %v1456_v38 = vpop.permute.xlu0 %1455 }
 0x725   :  { %v4134_v2 = vpop.f32.mrf.mxu1  ;;  %v1632_v4 = vadd.f32 %v5386_v7, %v1456_v38  ;;  %v4338_v7 = vld [vmem:[%s6078_s4 + $0x30] sm:$0xff]  }
 0x726   :  { %v1691_v34 = vadd.f32 %v4134_v2, %v1531_v49  ;;  %v1706_v45 = vmax.f32 %v1680_v10, 0.0  ;;  %v1640_v49 = vadd.f32 %v5384_v21, %v1466_v3  ;;  %v4337_v21 = vld [vmem:[%s6087_s12 + $0x8] sm:$0xff]   ;;  %4159 = vmatprep.mubr.msk.bf16.mxu1 %vm280_vm1, %v4338_v7 }
 0x727   :  { %v1682_v36 = vpop.f32.mrf.mxu1  ;;  %v1694_v11 = vmax.f32 %v1632_v4, 0.0 }
 0x728   :  { %v1709_v18 = vmax.f32 %v1691_v34, 0.0  ;;  %v1683_v58 = vadd.f32 %v1682_v36, %v1521_v43  ;;  %v1635_v43 = vadd.f32 %v5388_v9, %v1461_v47  ;;  %v1696_v19 = vmax.f32 %v1640_v49, 0.0  ;;  %v1794_v55 = vpop.permute.xlu0 %1793 }
 0x72a   :  { %v1721_v30 = vpack.c.bf16 %v1709_v18, %v1708_v24  ;;  %v1707_v59 = vmax.f32 %v1683_v58, 0.0  ;;  %v1715_v44 = vpack.c.bf16 %v1697_v42, %v1696_v19  ;;  %v1695_v46 = vmax.f32 %v1635_v43, 0.0  ;;  %v1809_v18 = vpop.permute.xlu1 %1808 }
 0x72c   :  { %v1720_v40 = vpack.c.bf16 %v1707_v59, %v1706_v45  ;;  %4135 = vmatprep.subr.bf16.mxu0 %v1721_v30  ;;  %v1714_v23 = vpack.c.bf16 %v1695_v46, %v1694_v11  ;;  %v1804_v36 = vpop.permute.xlu0 %1803 }
 0x72d   :  { %4136 = vmatpush3.bf16.msra.mxu0 %v1721_v30 }
 0x72e   :  { %4137 = vmatprep.subr.bf16.mxu0 %v1720_v40 }
 0x730   :  { %v1880_v38 = vpop.permute.xlu0 %1879 }
 0x731   :  { %4138 = vmatpush3.bf16.msra.mxu0 %v1720_v40 }
 0x732   :  { %4139 = vmatprep.subr.bf16.mxu0 %v1719_v56 }
 0x734   :  { %v1904_v4 = vpop.permute.xlu0 %1903 }
 0x735   :  { %4140 = vmatpush3.bf16.msra.mxu0 %v1719_v56 }
 0x736   :  { %4141 = vmatprep.subr.bf16.mxu0 %v1718_v0 }
 0x738   :  { %v1870_v46 = vpop.permute.xlu0 %1869 }
 0x739   :  { %4142 = vmatpush3.bf16.msra.mxu0 %v1718_v0 }
 0x73a   :  { %4143 = vmatprep.subr.bf16.mxu0 %v1717_v27 }
 0x73d   :  { %4144 = vmatpush3.bf16.msra.mxu0 %v1717_v27 }
 0x73e   :  { %4145 = vmatprep.subr.bf16.mxu0 %v1716_v29 }
 0x741   :  { %4146 = vmatpush3.bf16.msra.mxu0 %v1716_v29  ;;  %v1885_v29 = vpop.permute.xlu1 %1884 }
 0x742   :  { %4147 = vmatprep.subr.bf16.mxu0 %v1715_v44 }
 0x745   :  { %4148 = vmatpush3.bf16.msra.mxu0 %v1715_v44  ;;  %v1909_v19 = vpop.permute.xlu1 %1908 }
 0x746   :  { %4149 = vmatprep.subr.bf16.mxu0 %v1714_v23 }
 0x749   :  { %4150 = vmatpush3.bf16.msra.mxu0 %v1714_v23  ;;  %v1875_v44 = vpop.permute.xlu1 %1874 }
 0x74a   :  { %4171 = vmatprep.subr.bf16.mxu0 %v4569_v20 }
 0x74c   :  { %4152 = vmatmul.mubr.bf16.vlgmr.msra.gmra.mxu0 %v4337_v21 }
 0x74d   :  { %4173 = vmatprep.mubr.msk.bf16.mxu0 %vm4570_vm2, %v4569_v20 }
 0x80c   :  { %v4153_v9 = vpop.f32.mrf.mxu0 }
 0x80d   :  { %v1785_v32 = vadd.f32 %v4153_v9, %v5331_v22 }
 0x80e   :  { %v1768_v33 = vpop.f32.mrf.mxu0 }
 0x80f   :  { %v1783_v1 = vadd.f32 %v1768_v33, %v5323_v60  ;;  %v5409_v14 = vadd.f32 %v1804_v36, %v1785_v32  ;;  %v1894_v32 = vpop.permute.xlu0 %1893 }
 0x810   :  { %v4154_v39 = vpop.f32.mrf.mxu0 }
 0x811   :  { %v5405_v2 = vadd.f32 %v1794_v55, %v1783_v1  ;;  %v1786_v10 = vadd.f32 %v4154_v39, %v5337_v26  ;;  %v1828_v26 = vsel %vm72_vm0, %v5409_v14, 0.0  ;;  %v1899_v39 = vpop.permute.xlu1 %1898 }
 0x812   :  { %v1771_v28 = vpop.f32.mrf.mxu0 }
 0x813   :  { %v1784_v34 = vadd.f32 %v1771_v28, %v5333_v57  ;;  %v1825_v60 = vsel %vm72_vm0, %v5405_v2, 0.0  ;;  %v5415_v58 = vadd.f32 %v1809_v18, %v1786_v10 }
 0x815   :  { %v5411_v24 = vadd.f32 %v1799_v6, %v1784_v34  ;;  %v1830_v57 = vsel %vm72_vm0, %v5415_v58, 0.0 }
 0x817   :  { %v1826_v22 = vsel %vm72_vm0, %v5411_v24, 0.0 }
 0x818   :  { %v1827_v25 = vadd.f32 %v1826_v22, %v1825_v60  ;;  %v4339_v22 = vld [vmem:[%s6078_s4 + $0x38] sm:$0xff]  }
 0x81a   :  { %v1829_v41 = vadd.f32 %v1828_v26, %v1827_v25  ;;  %v4340_v25 = vld [vmem:[%s6078_s4 + $0x40] sm:$0xff]   ;;  %v4341_v26 = vld [vmem:[%s6078_s4 + $0x48] sm:$0xff]  }
 0x81c   :  { %v1831_v45 = vadd.f32 %v1830_v57, %v1829_v41  ;;  %v1946_v57 = vpop.permute.xlu0 %1945 }
 0x81e   :  { %v1832_v30 = vrot.slane %v1831_v45, 4 }
 0x820   :  { %v1833_v59 = vadd.f32 %v1832_v30, %v1831_v45 }
 0x822   :  { %v1834_v50 = vrot.slane %v1833_v59, 2 }
 0x824   :  { %v1835_v37 = vadd.f32 %v1834_v50, %v1833_v59 }
 0x826   :  { %v1836_v17 = vrot.slane %v1835_v37, 1 }
 0x828   :  { %v1837_v40 = vadd.f32 %v1836_v17, %v1835_v37  ;;  %v1951_v37 = vpop.permute.xlu1 %1950 }
 0x82a   :  { %v1838_v51 = vmul.f32 0.03125, %v1837_v40 }
 0x82c   :  { %v1839_v13 = vsub.f32 %v5405_v2, %v1838_v51  ;;  %v1840_v61 = vsub.f32 %v5411_v24, %v1838_v51  ;;  %v1841_v16 = vsub.f32 %v5409_v14, %v1838_v51  ;;  %v1842_v56 = vsub.f32 %v5415_v58, %v1838_v51 }
 0x82e   :  { %v1843_v62 = vmul.f32 %v1839_v13, %v1839_v13  ;;  %v1844_v53 = vmul.f32 %v1840_v61, %v1840_v61  ;;  %v1845_v52 = vmul.f32 %v1841_v16, %v1841_v16  ;;  %v1846_v35 = vmul.f32 %v1842_v56, %v1842_v56 }
 0x830   :  { %v1847_v12 = vsel %vm72_vm0, %v1843_v62, 0.0  ;;  %v1848_v63 = vsel %vm72_vm0, %v1844_v53, 0.0  ;;  %v1850_v48 = vsel %vm72_vm0, %v1845_v52, 0.0  ;;  %v1852_v31 = vsel %vm72_vm0, %v1846_v35, 0.0  ;;  %v1956_v62 = vpop.permute.xlu1 %1955 }
 0x831   :  { %v1849_v0 = vadd.f32 %v1848_v63, %v1847_v12  ;;  %v3756_v12 = vld [vmem:[%s6077_s5 + $0x98] sm:$0xff] }
 0x833   :  { %v1851_v54 = vadd.f32 %v1850_v48, %v1849_v0 }
 0x835   :  { %v1853_v3 = vadd.f32 %v1852_v31, %v1851_v54 }
 0x837   :  { %v1854_v5 = vrot.slane %v1853_v3, 4 }
 0x839   :  { %v1855_v27 = vadd.f32 %v1854_v5, %v1853_v3 }
 0x83b   :  { %v1856_v8 = vrot.slane %v1855_v27, 2 }
 0x83d   :  { %v1857_v49 = vadd.f32 %v1856_v8, %v1855_v27 }
 0x83f   :  { %v1858_v15 = vrot.slane %v1857_v49, 1 }
 0x841   :  { %v1859_v47 = vadd.f32 %v1858_v15, %v1857_v49 }
 0x843   :  { %v1860_v42 = vmul.f32 0.03125, %v1859_v47 }
 0x845   :  { %v1861_v43 = vadd.f32 1e-05, %v1860_v42 }
 0x847   :  { %4456 = vrsqrt.f32 %v1861_v43 }
 0x854   :  { %v4457_v11 = vpop.eup %4456 }
 0x855   :  { %v1864_v23 = vmul.f32 %v4457_v11, %v1840_v61  ;;  %v1865_v21 = vmul.f32 %v4457_v11, %v1841_v16  ;;  %v1866_v7 = vmul.f32 %v4457_v11, %v1842_v56  ;;  %v1863_v9 = vmul.f32 %v4457_v11, %v1839_v13  ;;  %v1966_v61 = vpop.permute.xlu0 %1965 }
 0x857   :  { %v1889_v55 = vmul.f32 %v1880_v38, %v1865_v21  ;;  %v1890_v33 = vmul.f32 %v1885_v29, %v1866_v7  ;;  %v1887_v1 = vmul.f32 %v1870_v46, %v1863_v9  ;;  %v1888_v6 = vmul.f32 %v1875_v44, %v1864_v23 }
 0x859   :  { %v1913_v28 = vadd.f32 %v1904_v4, %v1889_v55  ;;  %v1914_v10 = vadd.f32 %v1909_v19, %v1890_v33  ;;  %v1911_v34 = vadd.f32 %v1894_v32, %v1887_v1  ;;  %v1912_v36 = vadd.f32 %v1899_v39, %v1888_v6  ;;  %v1971_v0 = vpop.permute.xlu0 %1970  ;;  %v4342_v32 = vld [vmem:[%s6078_s4 + $0x50] sm:$0xff]  }
 0x85b   :  { %v1929_v18 = vpack.c.bf16 %v1914_v10, %v1913_v28  ;;  %v1928_v60 = vpack.c.bf16 %v1912_v36, %v1911_v34  ;;  %v4343_v28 = vld [vmem:[%s6078_s4 + $0x58] sm:$0xff]   ;;  %v5501_v34 = vld [vmem:[%s6079_s1] sm:$0xff] }
 0x85d   :  { %4155 = vmatprep.subr.bf16.mxu1 %v1929_v18  ;;  %v1961_v48 = vpop.permute.xlu0 %1960 }
 0x85e   :  { %4156 = vmatpush3.bf16.msra.mxu1 %v1929_v18 }
 0x85f   :  { %4157 = vmatprep.subr.bf16.mxu1 %v1928_v60 }
 0x861   :  { %v1976_v43 = vpop.permute.xlu0 %1975 }
 0x862   :  { %4158 = vmatpush3.bf16.msra.mxu1 %v1928_v60 }
 0x863   :  { %4185 = vmatprep.subr.bf16.mxu1 %v4569_v20 }
 0x865   :  { %4160 = vmatmul.mubr.msk.bf16.vlgmr.msra.gmra.mxu1 %vm280_vm1, %v4339_v22 }
 0x866   :  { %4163 = vmatprep.mubr.msk.bf16.mxu1 %vm280_vm1, %v4340_v25  ;;  %v5511_v25 = vld [vmem:[%s6079_s1 + $0x8] sm:$0xff] }
 0x86d   :  { %4164 = vmatmul.mubr.msk.bf16.gmra.mxu1 %vm280_vm1, %v4341_v26 }
 0x86e   :  { %4167 = vmatprep.mubr.msk.bf16.mxu1 %vm280_vm1, %v4342_v32 }
 0x875   :  { %4168 = vmatmul.mubr.msk.bf16.gmra.mxu1 %vm280_vm1, %v4343_v28 }
 0x876   :  { %4191 = vmatprep.mubr.msk.bf16.mxu1 %vm4570_vm2, %v4569_v20 }
 0x925   :  { %v4161_v41 = vpop.f32.mrf.mxu1 }
 0x926   :  { %v2094_v52 = vadd.f32 %v4161_v41, %v1956_v62 }
 0x927   :  { %v2085_v45 = vpop.f32.mrf.mxu1 }
 0x928   :  { %v2086_v30 = vadd.f32 %v2085_v45, %v1946_v57  ;;  %v2550_v63 = vpack.c.bf16 %v2094_v52, %v2094_v52 }
 0x929   :  { %v4162_v59 = vpop.f32.mrf.mxu1 }
 0x92a   :  { %v2132_v50 = vpack.c.bf16 %v2086_v30, %v2086_v30  ;;  %v2097_v54 = vadd.f32 %v4162_v59, %v1961_v48  ;;  %v5521_v30 = vld [vmem:[%s6079_s1 + $0x10] sm:$0xff] }
 0x92b   :  { %v2088_v17 = vpop.f32.mrf.mxu1 }
 0x92c   :  { %v2089_v40 = vadd.f32 %v2088_v17, %v1951_v37  ;;  %2135 = vxpose.xlu1.c.b16.start.end [1/1] (short) (narrow) %v2132_v50, 48  ;;  %v2759_v31 = vpack.c.bf16 %v2097_v54, %v2097_v54 }
 0x92d   :  { %v4165_v51 = vpop.f32.mrf.mxu1 }
 0x92e   :  { %v2341_v13 = vpack.c.bf16 %v2089_v40, %v2089_v40  ;;  %v2110_v29 = vadd.f32 %v4165_v51, %v1976_v43  ;;  %v5531_v40 = vld [vmem:[%s6079_s1 + $0x18] sm:$0xff] }
 0x92f   :  { %v2101_v16 = vpop.f32.mrf.mxu1 }
 0x930   :  { %v2102_v56 = vadd.f32 %v2101_v16, %v1966_v61  ;;  %2344 = vxpose.xlu0.c.b16.start.end [1/1] (short) (narrow) %v2341_v13, 48  ;;  %v2551_v38 = vpack.c.bf16 %v2110_v29, %v2110_v29 }
 0x931   :  { %v4166_v3 = vpop.f32.mrf.mxu1 }
 0x932   :  { %v2133_v53 = vpack.c.bf16 %v2102_v56, %v2102_v56  ;;  %v2579_v4 = vsel %vm409_vm3, %v2551_v38, 0  ;;  %v5541_v56 = vld [vmem:[%s6079_s1 + $0x20] sm:$0xff] }
 0x933   :  { %v2104_v5 = vpop.f32.mrf.mxu1 }
 0x934   :  { %v2161_v35 = vsel %vm409_vm3, %v2133_v53, 0  ;;  %v2105_v27 = vadd.f32 %v2104_v5, %v1971_v0 }
 0x935   :  { %4172 = vmatpush3.bf16.msra.mxu0 %v2161_v35 }
 0x936   :  { %4195 = vmatprep.subr.bf16.mxu0 %v4569_v20  ;;  %v2342_v8 = vpack.c.bf16 %v2105_v27, %v2105_v27 }
 0x938   :  { %1980 = vperm.xlu1 %4319, %v3756_v12   ;;  %v2370_v15 = vsel %vm409_vm3, %v2342_v8, 0  ;;  %v5551_v12 = vld [vmem:[%s6079_s1 + $0x28] sm:$0xff] }
 0x939   :  { %2553 = vxpose.xlu0.c.b16.start.end [1/1] (short) (narrow) %v2550_v63, 48 }
 0x95b   :  { %2762 = vxpose.xlu1.c.b16.start.end [1/1] (short) (narrow) %v2759_v31, 48 }
 0x98e   :  { %v2143_v49 = vpop.trf.xlu1 }
 0x98f   :  { %4174 = vmatmul.mubr.msk.bf16.vlgmr.msra.gmra.mxu0 %vm399_vm4, %v2143_v49 }
 0x990   :  { %4196 = vmatpush3.bf16.msra.mxu0 %v2370_v15  ;;  %4177 = vmatprep.mubr.msk.bf16.mxu0 %vm4570_vm2, %v4569_v20 }
 0x991   :  { %4219 = vmatprep.subr.bf16.mxu0 %v4569_v20 }
 0x992   :  { %v2144_v47 = vpop.trf.xlu1  ;;  %v2352_v19 = vpop.trf.xlu0 }
 0x996   :  { %v2145_v42 = vpop.trf.xlu1  ;;  %v2353_v44 = vpop.trf.xlu0 }
 0x997   :  { %4178 = vmatmul.mubr.msk.bf16.gmra.mxu0 %vm399_vm4, %v2144_v47 }
 0x998   :  { %4181 = vmatprep.mubr.msk.bf16.mxu0 %vm4570_vm2, %v4569_v20 }
 0x99a   :  { %v2354_v11 = vpop.trf.xlu0 }
 0x99e   :  { %v2561_v7 = vpop.trf.xlu0 }
 0x99f   :  { %4182 = vmatmul.mubr.msk.bf16.gmra.mxu0 %vm399_vm4, %v2145_v42 }
 0x9a0   :  { %4197 = vmatprep.mubr.msk.bf16.mxu0 %vm4570_vm2, %v4569_v20 }
 0x9a2   :  { %v2562_v55 = vpop.trf.xlu0 }
 0x9a6   :  { %v2563_v33 = vpop.trf.xlu0 }
 0x9a7   :  { %4198 = vmatmul.mubr.msk.bf16.vlgmr.msra.gmra.mxu0 %vm399_vm4, %v2352_v19 }
 0x9a8   :  { %4220 = vmatpush3.bf16.msra.mxu0 %v2579_v4  ;;  %4201 = vmatprep.mubr.msk.bf16.mxu0 %vm4570_vm2, %v4569_v20 }
 0x9a9   :  { %4243 = vmatprep.subr.bf16.mxu0 %v4569_v20 }
 0x9af   :  { %4202 = vmatmul.mubr.msk.bf16.gmra.mxu0 %vm399_vm4, %v2353_v44 }
 0x9b0   :  { %4205 = vmatprep.mubr.msk.bf16.mxu0 %vm4570_vm2, %v4569_v20 }
 0x9b3   :  { %v1981_v46 = vpop.permute.xlu1 %1980 }
 0x9b4   :  { %v2113_v23 = vadd.f32 %v4166_v3, %v1981_v46 }
 0x9b6   :  { %v2760_v21 = vpack.c.bf16 %v2113_v23, %v2113_v23 }
 0x9b7   :  { %4206 = vmatmul.mubr.msk.bf16.gmra.mxu0 %vm399_vm4, %v2354_v11 }
 0x9b8   :  { %4221 = vmatprep.mubr.msk.bf16.mxu0 %vm4570_vm2, %v4569_v20  ;;  %v2788_v9 = vsel %vm409_vm3, %v2760_v21, 0 }
 0x9bd   :  { %v2770_v1 = vpop.trf.xlu1 }
 0x9bf   :  { %4222 = vmatmul.mubr.msk.bf16.vlgmr.msra.gmra.mxu0 %vm399_vm4, %v2561_v7 }
 0x9c0   :  { %4244 = vmatpush3.bf16.msra.mxu0 %v2788_v9  ;;  %4225 = vmatprep.mubr.msk.bf16.mxu0 %vm4570_vm2, %v4569_v20 }
 0x9c1   :  { %v2771_v6 = vpop.trf.xlu1 }
 0x9c5   :  { %v2772_v39 = vpop.trf.xlu1 }
 0x9c7   :  { %4226 = vmatmul.mubr.msk.bf16.gmra.mxu0 %vm399_vm4, %v2562_v55 }
 0x9c8   :  { %4229 = vmatprep.mubr.msk.bf16.mxu0 %vm4570_vm2, %v4569_v20 }
 0x9cf   :  { %4230 = vmatmul.mubr.msk.bf16.gmra.mxu0 %vm399_vm4, %v2563_v33 }
 0x9d0   :  { %4245 = vmatprep.mubr.msk.bf16.mxu0 %vm4570_vm2, %v4569_v20 }
 0x9d7   :  { %4246 = vmatmul.mubr.msk.bf16.vlgmr.msra.gmra.mxu0 %vm399_vm4, %v2770_v1 }
 0x9d8   :  { %4249 = vmatprep.mubr.msk.bf16.mxu0 %vm4570_vm2, %v4569_v20 }
 0x9df   :  { %4250 = vmatmul.mubr.msk.bf16.gmra.mxu0 %vm399_vm4, %v2771_v6 }
 0x9e0   :  { %4253 = vmatprep.mubr.msk.bf16.mxu0 %vm4570_vm2, %v4569_v20 }
 0x9e7   :  { %4254 = vmatmul.mubr.msk.bf16.gmra.mxu0 %vm399_vm4, %v2772_v39 }
 0xa4f   :  { %v2197_v10 = vpop.f32.mrf.mxu0 }
 0xa50   :  { %v5504_v36 = vadd.f32 %v5501_v34, %v2197_v10 }
 0xa51   :  { %v4175_v18 = vpop.f32.mrf.mxu0 }
 0xa52   :  { %v2220_v60 = vsel %vm72_vm0, %v5504_v36, -inf }
 0xa53   :  { %2221 = vmax.xlane.f32.xlu0 %v2220_v60  ;;  %v2200_v22 = vpop.f32.mrf.mxu0 }
 0xa54   :  { %v5514_v26 = vadd.f32 %v5511_v25, %v2200_v22 }
 0xa55   :  { %v4176_v41 = vpop.f32.mrf.mxu0 }
 0xa56   :  { %v2223_v57 = vsel %vm72_vm0, %v5514_v26, -inf }
 0xa57   :  { %2224 = vmax.xlane.f32.xlu1 %v2223_v57  ;;  %v2205_v45 = vpop.f32.mrf.mxu0 }
 0xa58   :  { %v5524_v59 = vadd.f32 %v5521_v30, %v2205_v45 }
 0xa59   :  { %v4179_v50 = vpop.f32.mrf.mxu0 }
 0xa5a   :  { %v2226_v37 = vsel %vm72_vm0, %v5524_v59, -inf }
 0xa5b   :  { %2227 = vmax.xlane.f32.xlu0 %v2226_v37  ;;  %v2208_v17 = vpop.f32.mrf.mxu0 }
 0xa5c   :  { %v5534_v51 = vadd.f32 %v5531_v40, %v2208_v17 }
 0xa5d   :  { %v4180_v13 = vpop.f32.mrf.mxu0 }
 0xa5e   :  { %v2229_v61 = vsel %vm72_vm0, %v5534_v51, -inf }
 0xa5f   :  { %2230 = vmax.xlane.f32.xlu0 %v2229_v61  ;;  %v2213_v16 = vpop.f32.mrf.mxu0 }
 0xa60   :  { %v5544_v62 = vadd.f32 %v5541_v56, %v2213_v16 }
 0xa61   :  { %v4183_v53 = vpop.f32.mrf.mxu0 }
 0xa62   :  { %v2232_v52 = vsel %vm72_vm0, %v5544_v62, -inf }
 0xa63   :  { %2233 = vmax.xlane.f32.xlu0 %v2232_v52  ;;  %v2216_v35 = vpop.f32.mrf.mxu0 }
 0xa64   :  { %v5554_v63 = vadd.f32 %v5551_v12, %v2216_v35 }
 0xa65   :  { %v4184_v0 = vpop.f32.mrf.mxu0 }
 0xa66   :  { %v2235_v48 = vsel %vm72_vm0, %v5554_v63, -inf }
 0xa67   :  { %2236 = vmax.xlane.f32.xlu0 %v2235_v48  ;;  %v2406_v54 = vpop.f32.mrf.mxu0 }
 0xa68   :  { %v5559_v31 = vadd.f32 %v5501_v34, %v2406_v54 }
 0xa69   :  { %v4199_v3 = vpop.f32.mrf.mxu0 }
 0xa6a   :  { %v2429_v5 = vsel %vm72_vm0, %v5559_v31, -inf }
 0xa6b   :  { %2430 = vmax.xlane.f32.xlu0 %v2429_v5  ;;  %v2409_v27 = vpop.f32.mrf.mxu0 }
 0xa6c   :  { %v5564_v8 = vadd.f32 %v5511_v25, %v2409_v27 }
 0xa6d   :  { %v4200_v49 = vpop.f32.mrf.mxu0 }
 0xa6e   :  { %v2432_v15 = vsel %vm72_vm0, %v5564_v8, -inf }
 0xa6f   :  { %2433 = vmax.xlane.f32.xlu1 %v2432_v15  ;;  %v2414_v47 = vpop.f32.mrf.mxu0 }
 0xa70   :  { %v5569_v42 = vadd.f32 %v5521_v30, %v2414_v47 }
 0xa71   :  { %v4203_v43 = vpop.f32.mrf.mxu0 }
 0xa72   :  { %v2435_v29 = vsel %vm72_vm0, %v5569_v42, -inf }
 0xa73   :  { %2436 = vmax.xlane.f32.xlu0 %v2435_v29  ;;  %v2417_v38 = vpop.f32.mrf.mxu0 }
 0xa74   :  { %v5574_v19 = vadd.f32 %v5531_v40, %v2417_v38 }
 0xa75   :  { %v4204_v4 = vpop.f32.mrf.mxu0 }
 0xa76   :  { %v2438_v44 = vsel %vm72_vm0, %v5574_v19, -inf }
 0xa77   :  { %2439 = vmax.xlane.f32.xlu0 %v2438_v44  ;;  %v2422_v46 = vpop.f32.mrf.mxu0 }
 0xa78   :  { %v5579_v11 = vadd.f32 %v5541_v56, %v2422_v46 }
 0xa79   :  { %v4207_v23 = vpop.f32.mrf.mxu0 }
 0xa7a   :  { %v2441_v21 = vsel %vm72_vm0, %v5579_v11, -inf }
 0xa7b   :  { %2442 = vmax.xlane.f32.xlu0 %v2441_v21  ;;  %v2425_v7 = vpop.f32.mrf.mxu0 }
 0xa7c   :  { %v5584_v9 = vadd.f32 %v5551_v12, %v2425_v7 }
 0xa7d   :  { %v4208_v55 = vpop.f32.mrf.mxu0 }
 0xa7e   :  { %v2444_v33 = vsel %vm72_vm0, %v5584_v9, -inf }
 0xa7f   :  { %2445 = vmax.xlane.f32.xlu0 %v2444_v33  ;;  %v2615_v1 = vpop.f32.mrf.mxu0 }
 0xa80   :  { %v5602_v16 = vadd.f32 %v5501_v34, %v2615_v1 }
 0xa81   :  { %v4223_v6 = vpop.f32.mrf.mxu0 }
 0xa82   :  { %v2638_v54 = vsel %vm72_vm0, %v5602_v16, -inf }
 0xa83   :  { %v2618_v39 = vpop.f32.mrf.mxu0 }
 0xa84   :  { %v5610_v48 = vadd.f32 %v5511_v25, %v2618_v39 }
 0xa85   :  { %v4224_v32 = vpop.f32.mrf.mxu0 }
 0xa86   :  { %v2641_v49 = vsel %vm72_vm0, %v5610_v48, -inf }
 0xa87   :  { %v2623_v28 = vpop.f32.mrf.mxu0 }
 0xa88   :  { %v5589_v41 = vadd.f32 %v5521_v30, %v2623_v28 }
 0xa89   :  { %v4227_v10 = vpop.f32.mrf.mxu0 }
 0xa8a   :  { %v2644_v13 = vsel %vm72_vm0, %v5589_v41, -inf }
 0xa8b   :  { %v2626_v18 = vpop.f32.mrf.mxu0 }
 0xa8c   :  { %v5605_v53 = vadd.f32 %v5531_v40, %v2626_v18 }
 0xa8d   :  { %v4228_v60 = vpop.f32.mrf.mxu0 }
 0xa8e   :  { %v2647_v3 = vsel %vm72_vm0, %v5605_v53, -inf }
 0xa8f   :  { %v2631_v22 = vpop.f32.mrf.mxu0 }
 0xa90   :  { %v5592_v57 = vadd.f32 %v5541_v56, %v2631_v22 }
 0xa91   :  { %v4231_v45 = vpop.f32.mrf.mxu0 }
 0xa92   :  { %v2650_v50 = vsel %vm72_vm0, %v5592_v57, -inf }
 0xa93   :  { %2651 = vmax.xlane.f32.xlu0 %v2650_v50  ;;  %v2634_v37 = vpop.f32.mrf.mxu0 }
 0xa94   :  { %v5597_v17 = vadd.f32 %v5551_v12, %v2634_v37 }
 0xa95   :  { %v4232_v61 = vpop.f32.mrf.mxu0 }
 0xa96   :  { %v2653_v52 = vsel %vm72_vm0, %v5597_v17, -inf }
 0xa97   :  { %2645 = vmax.xlane.f32.xlu0 %v2644_v13  ;;  %2654 = vmax.xlane.f32.xlu1 %v2653_v52  ;;  %v2824_v35 = vpop.f32.mrf.mxu0 }
 0xa98   :  { %v5624_v46 = vadd.f32 %v5501_v34, %v2824_v35 }
 0xa99   :  { %v4247_v0 = vpop.f32.mrf.mxu0 }
 0xa9a   :  { %v2847_v1 = vsel %vm72_vm0, %v5624_v46, -inf }
 0xa9b   :  { %2639 = vmax.xlane.f32.xlu0 %v2638_v54  ;;  %2648 = vmax.xlane.f32.xlu1 %v2647_v3  ;;  %v2827_v5 = vpop.f32.mrf.mxu0 }
 0xa9c   :  { %v5642_v6 = vadd.f32 %v5511_v25, %v2827_v5 }
 0xa9d   :  { %v4248_v27 = vpop.f32.mrf.mxu0 }
 0xa9f   :  { %2642 = vmax.xlane.f32.xlu1 %v2641_v49  ;;  %v2832_v15 = vpop.f32.mrf.mxu0 }
 0xaa0   :  { %v5619_v47 = vadd.f32 %v5521_v30, %v2832_v15 }
 0xaa1   :  { %v4251_v43 = vpop.f32.mrf.mxu0 }
 0xaa2   :  { %v2853_v29 = vsel %vm72_vm0, %v5619_v47, -inf }
 0xaa3   :  { %2854 = vmax.xlane.f32.xlu0 %v2853_v29  ;;  %v2835_v38 = vpop.f32.mrf.mxu0 }
 0xaa4   :  { %v5632_v55 = vadd.f32 %v5531_v40, %v2835_v38  ;;  %v2850_v40 = vsel %vm72_vm0, %v5642_v6, -inf }
 0xaa5   :  { %v4252_v4 = vpop.f32.mrf.mxu0 }
 0xaa6   :  { %v2856_v39 = vsel %vm72_vm0, %v5632_v55, -inf }
 0xaa7   :  { %v2840_v44 = vpop.f32.mrf.mxu0 }
 0xaa8   :  { %v5627_v23 = vadd.f32 %v5541_v56, %v2840_v44 }
 0xaa9   :  { %v4255_v21 = vpop.f32.mrf.mxu0 }
 0xaaa   :  { %v2859_v7 = vsel %vm72_vm0, %v5627_v23, -inf }
 0xaab   :  { %2860 = vmax.xlane.f32.xlu0 %v2859_v7  ;;  %v2843_v30 = vpop.f32.mrf.mxu0 }
 0xaac   :  { %v5635_v33 = vadd.f32 %v5551_v12, %v2843_v30 }
 0xaad   :  { %v4256_v34 = vpop.f32.mrf.mxu0 }
 0xaae   :  { %v2862_v56 = vsel %vm72_vm0, %v5635_v33, -inf }
 0xaaf   :  { %2848 = vmax.xlane.f32.xlu0 %v2847_v1  ;;  %2863 = vmax.xlane.f32.xlu1 %v2862_v56 }
 0xab3   :  { %2857 = vmax.xlane.f32.xlu1 %v2856_v39 }
 0xab7   :  { %2851 = vmax.xlane.f32.xlu1 %v2850_v40 }
 0xadc   :  { %v2222_v12 = vpop.xlane.xlu0 %2221 }
 0xadd   :  { %v2238_v32 = vsub.f32 %v5504_v36, %v2222_v12 }
 0xadf   :  { %v2244_v28 = vmul.f32 1.442695, %v2238_v32 }
 0xae0   :  { %v2225_v50 = vpop.xlane.xlu1 %2224 }
 0xae1   :  { %4458 = vpow2.f32 %v2244_v28  ;;  %v2239_v36 = vsub.f32 %v5514_v26, %v2225_v50 }
 0xae4   :  { %v2228_v10 = vpop.xlane.xlu0 %2227 }
 0xae5   :  { %v2240_v18 = vsub.f32 %v5524_v59, %v2228_v10  ;;  %v3757_v10 = vld [vmem:[%s6077_s5 + $0xa0] sm:$0xff] }
 0xae7   :  { %v2248_v60 = vmul.f32 1.442695, %v2240_v18 }
 0xae8   :  { %v2231_v22 = vpop.xlane.xlu0 %2230 }
 0xae9   :  { %4460 = vpow2.f32 %v2248_v60  ;;  %v2241_v25 = vsub.f32 %v5534_v51, %v2231_v22  ;;  %v2246_v51 = vmul.f32 1.442695, %v2239_v36 }
 0xaeb   :  { %v2250_v45 = vmul.f32 1.442695, %v2241_v25 }
 0xaec   :  { %v2234_v37 = vpop.xlane.xlu0 %2233 }
 0xaed   :  { %4462 = vpow2.f32 %v2250_v45  ;;  %v2242_v13 = vsub.f32 %v5544_v62, %v2234_v37 }
 0xaee   :  { %v5652_v61 = vpop.eup %4458 }
 0xaef   :  { %v2252_v52 = vmul.f32 1.442695, %v2242_v13  ;;  %v2256_v35 = vsel %vm72_vm0, %v5652_v61, 0.0 }
 0xaf0   :  { %v2237_v59 = vpop.xlane.xlu0 %2236  ;;  %2257 = vadd.xlane.f32.xlu0 %v2256_v35 }
 0xaf1   :  { %4464 = vpow2.f32 %v2252_v52  ;;  %v2243_v0 = vsub.f32 %v5554_v63, %v2237_v59 }
 0xaf3   :  { %v2254_v54 = vmul.f32 1.442695, %v2243_v0 }
 0xaf4   :  { %v2431_v5 = vpop.xlane.xlu0 %2430 }
 0xaf5   :  { %4466 = vpow2.f32 %v2254_v54  ;;  %v2447_v60 = vsub.f32 %v5559_v31, %v2431_v5 }
 0xaf6   :  { %v5658_v3 = vpop.eup %4460  ;;  %4468 = vpow2.f32 %v2246_v51 }
 0xaf7   :  { %v2262_v62 = vsel %vm72_vm0, %v5658_v3, 0.0  ;;  %v2453_v25 = vmul.f32 1.442695, %v2447_v60 }
 0xaf8   :  { %2263 = vadd.xlane.f32.xlu0 %v2262_v62  ;;  %v2434_v26 = vpop.xlane.xlu1 %2433 }
 0xaf9   :  { %v2448_v27 = vsub.f32 %v5564_v8, %v2434_v26 }
 0xafa   :  { %v5663_v49 = vpop.eup %4462 }
 0xafb   :  { %v2455_v15 = vmul.f32 1.442695, %v2448_v27  ;;  %v2265_v63 = vsel %vm72_vm0, %v5663_v49, 0.0 }
 0xafc   :  { %v2437_v43 = vpop.xlane.xlu0 %2436  ;;  %2266 = vadd.xlane.f32.xlu1 %v2265_v63 }
 0xafd   :  { %4470 = vpow2.f32 %v2455_v15  ;;  %v2449_v45 = vsub.f32 %v5569_v42, %v2437_v43 }
 0xafe   :  { %v5667_v29 = vpop.eup %4464 }
 0xaff   :  { %v2268_v38 = vsel %vm72_vm0, %v5667_v29, 0.0  ;;  %v2457_v13 = vmul.f32 1.442695, %v2449_v45 }
 0xb00   :  { %v2440_v4 = vpop.xlane.xlu0 %2439  ;;  %2269 = vadd.xlane.f32.xlu0 %v2268_v38 }
 0xb01   :  { %v2450_v44 = vsub.f32 %v5574_v19, %v2440_v4 }
 0xb02   :  { %v5672_v21 = vpop.eup %4466 }
 0xb03   :  { %v2459_v8 = vmul.f32 1.442695, %v2450_v44  ;;  %v2271_v7 = vsel %vm72_vm0, %v5672_v21, 0.0  ;;  %v5676_v30 = vpop.eup %4468 }
 0xb04   :  { %v2443_v1 = vpop.xlane.xlu0 %2442  ;;  %2272 = vadd.xlane.f32.xlu1 %v2271_v7  ;;  %v2259_v34 = vsel %vm72_vm0, %v5676_v30, 0.0 }
 0xb05   :  { %4472 = vpow2.f32 %v2459_v8  ;;  %v2451_v36 = vsub.f32 %v5579_v11, %v2443_v1 }
 0xb07   :  { %v2461_v31 = vmul.f32 1.442695, %v2451_v36 }
 0xb08   :  { %v2446_v56 = vpop.xlane.xlu0 %2445  ;;  %2260 = vadd.xlane.f32.xlu1 %v2259_v34 }
 0xb09   :  { %v2452_v39 = vsub.f32 %v5584_v9, %v2446_v56 }
 0xb0a   :  { %v5681_v40 = vpop.eup %4470 }
 0xb0b   :  { %v2463_v19 = vmul.f32 1.442695, %v2452_v39  ;;  %v2468_v12 = vsel %vm72_vm0, %v5681_v40, 0.0 }
 0xb0c   :  { %2469 = vadd.xlane.f32.xlu1 %v2468_v12 }
 0xb0d   :  { %4474 = vpow2.f32 %v2463_v19 }
 0xb0e   :  { %4476 = vpow2.f32 %v2453_v25 }
 0xb0f   :  { %4478 = vpow2.f32 %v2457_v13 }
 0xb12   :  { %v5685_v32 = vpop.eup %4472 }
 0xb13   :  { %v2474_v28 = vsel %vm72_vm0, %v5685_v32, 0.0 }
 0xb14   :  { %2475 = vadd.xlane.f32.xlu1 %v2474_v28 }
 0xb16   :  { %1985 = vperm.xlu0 %4318, %v3757_v10  }
 0xb1a   :  { %v5692_v9 = vpop.eup %4474 }
 0xb1b   :  { %v2480_v18 = vsel %vm72_vm0, %v5692_v9, 0.0  ;;  %v5704_v15 = vpop.eup %4476 }
 0xb1c   :  { %v2652_v22 = vpop.xlane.xlu0 %2651  ;;  %2481 = vadd.xlane.f32.xlu1 %v2480_v18  ;;  %v5709_v38 = vpop.eup %4478 }
 0xb1d   :  { %v2660_v11 = vsub.f32 %v5592_v57, %v2652_v22 }
 0xb20   :  { %v2646_v50 = vpop.xlane.xlu0 %2645  ;;  %v2655_v37 = vpop.xlane.xlu1 %2654 }
 0xb21   :  { %v2658_v0 = vsub.f32 %v5589_v41, %v2646_v50  ;;  %v2670_v41 = vmul.f32 1.442695, %v2660_v11  ;;  %v2661_v63 = vsub.f32 %v5597_v17, %v2655_v37  ;;  %v2471_v17 = vsel %vm72_vm0, %v5709_v38, 0.0 }
 0xb23   :  { %v2666_v42 = vmul.f32 1.442695, %v2658_v0  ;;  %v2672_v57 = vmul.f32 1.442695, %v2661_v63  ;;  %v3759_v63 = vld [vmem:[%s6077_s5 + $0xb0] sm:$0xff] }
 0xb24   :  { %v2640_v52 = vpop.xlane.xlu0 %2639  ;;  %v2649_v35 = vpop.xlane.xlu1 %2648 }
 0xb25   :  { %v2656_v59 = vsub.f32 %v5602_v16, %v2640_v52  ;;  %v2659_v5 = vsub.f32 %v5605_v53, %v2649_v35 }
 0xb27   :  { %v2662_v51 = vmul.f32 1.442695, %v2656_v59  ;;  %v2668_v27 = vmul.f32 1.442695, %v2659_v5 }
 0xb28   :  { %v2643_v54 = vpop.xlane.xlu1 %2642 }
 0xb29   :  { %4480 = vpow2.f32 %v2662_v51  ;;  %v2657_v62 = vsub.f32 %v5610_v48, %v2643_v54  ;;  %v2465_v48 = vsel %vm72_vm0, %v5704_v15, 0.0 }
 0xb2a   :  { %4482 = vpow2.f32 %v2461_v31 }
 0xb2b   :  { %v2664_v26 = vmul.f32 1.442695, %v2657_v62 }
 0xb2c   :  { %v2855_v16 = vpop.xlane.xlu0 %2854 }
 0xb2d   :  { %4484 = vpow2.f32 %v2664_v26  ;;  %v2867_v34 = vsub.f32 %v5619_v47, %v2855_v16 }
 0xb2e   :  { %4486 = vpow2.f32 %v2666_v42 }
 0xb2f   :  { %4488 = vpow2.f32 %v2668_v27  ;;  %v2875_v28 = vmul.f32 1.442695, %v2867_v34  ;;  %v3760_v34 = vld [vmem:[%s6077_s5 + $0xb8] sm:$0xff] }
 0xb30   :  { %4490 = vpow2.f32 %v2670_v41 }
 0xb31   :  { %4492 = vpow2.f32 %v2672_v57  ;;  %v3799_v57 = vld [vmem:[%s6080_s7 + $0x30] sm:$0xff] }
 0xb34   :  { %v2861_v43 = vpop.xlane.xlu0 %2860 }
 0xb35   :  { %2466 = vadd.xlane.f32.xlu0 %v2465_v48  ;;  %v2869_v4 = vsub.f32 %v5627_v23, %v2861_v43  ;;  %v3797_v43 = vld [vmem:[%s6080_s7 + $0x20] sm:$0xff]  ;;  %v3798_v48 = vld [vmem:[%s6080_s7 + $0x28] sm:$0xff] }
 0xb36   :  { %v5711_v53 = vpop.eup %4480 }
 0xb37   :  { %v2674_v44 = vsel %vm72_vm0, %v5711_v53, 0.0  ;;  %v5718_v7 = vpop.eup %4482  ;;  %v2879_v56 = vmul.f32 1.442695, %v2869_v4  ;;  %v3800_v4 = vld [vmem:[%s6080_s7 + $0x38] sm:$0xff] }
 0xb38   :  { %2675 = vadd.xlane.f32.xlu1 %v2674_v44  ;;  %v2864_v8 = vpop.xlane.xlu1 %2863  ;;  %v2477_v12 = vsel %vm72_vm0, %v5718_v7, 0.0  ;;  %v2849_v60 = vpop.xlane.xlu0 %2848 }
 0xb39   :  { %2472 = vadd.xlane.f32.xlu0 %v2471_v17  ;;  %4494 = vpow2.f32 %v2879_v56  ;;  %v2865_v22 = vsub.f32 %v5624_v46, %v2849_v60  ;;  %v2870_v5 = vsub.f32 %v5635_v33, %v2864_v8  ;;  %v3803_v8 = vld [vmem:[%s6081_s8 + $0x30] sm:$0xff]  ;;  %v3805_v60 = vld [vmem:[%s6082_s9 + $0x20] sm:$0xff] }
 0xb3a   :  { %v5720_v1 = vpop.eup %4484  ;;  %4496 = vpow2.f32 %v2875_v28  ;;  %v3807_v56 = vld [vmem:[%s6082_s9 + $0x30] sm:$0xff]  ;;  %v3801_v28 = vld [vmem:[%s6081_s8 + $0x20] sm:$0xff] }
 0xb3b   :  { %v2677_v23 = vsel %vm72_vm0, %v5720_v1, 0.0  ;;  %v5725_v39 = vpop.eup %4486  ;;  %v2871_v13 = vmul.f32 1.442695, %v2865_v22  ;;  %v2881_v27 = vmul.f32 1.442695, %v2870_v5  ;;  %v3802_v22 = vld [vmem:[%s6081_s8 + $0x28] sm:$0xff] }
 0xb3c   :  { %2678 = vadd.xlane.f32.xlu1 %v2677_v23  ;;  %v2858_v19 = vpop.xlane.xlu1 %2857  ;;  %v2680_v18 = vsel %vm72_vm0, %v5725_v39, 0.0  ;;  %v5732_v47 = vpop.eup %4488  ;;  %v3833_v5 = vld [vmem:[%s6083_s11 + $0xc0] sm:$0xff] }
 0xb3d   :  { %2478 = vadd.xlane.f32.xlu0 %v2477_v12  ;;  %v2868_v10 = vsub.f32 %v5632_v55, %v2858_v19  ;;  %v2683_v45 = vsel %vm72_vm0, %v5732_v47, 0.0  ;;  %v5737_v50 = vpop.eup %4490  ;;  %v3804_v12 = vld [vmem:[%s6081_s8 + $0x38] sm:$0xff] }
 0xb3e   :  { %v2686_v36 = vsel %vm72_vm0, %v5737_v50, 0.0  ;;  %v5742_v52 = vpop.eup %4492 }
 0xb3f   :  { %v2877_v25 = vmul.f32 1.442695, %v2868_v10  ;;  %v2689_v35 = vsel %vm72_vm0, %v5742_v52, 0.0 }
 0xb40   :  { %2681 = vadd.xlane.f32.xlu1 %v2680_v18  ;;  %v2852_v37 = vpop.xlane.xlu1 %2851  ;;  %v3808_v18 = vld [vmem:[%s6082_s9 + $0x38] sm:$0xff] }
 0xb41   :  { %4498 = vpow2.f32 %v2877_v25  ;;  %v2866_v55 = vsub.f32 %v5642_v6, %v2852_v37  ;;  %v3758_v6 = vld [vmem:[%s6077_s5 + $0xa8] sm:$0xff]  ;;  %v3839_v25 = vld [vmem:[%s6083_s11 + $0xf0] sm:$0xff] }
 0xb42   :  { %4500 = vpow2.f32 %v2871_v13  ;;  %v3806_v37 = vld [vmem:[%s6082_s9 + $0x28] sm:$0xff]  ;;  %v3837_v13 = vld [vmem:[%s6083_s11 + $0xe0] sm:$0xff] }
 0xb43   :  { %v2873_v46 = vmul.f32 1.442695, %v2866_v55 }
 0xb44   :  { %2684 = vadd.xlane.f32.xlu1 %v2683_v45 }
 0xb45   :  { %4502 = vpow2.f32 %v2873_v46  ;;  %v3835_v46 = vld [vmem:[%s6083_s11 + $0xd0] sm:$0xff] }
 0xb46   :  { %v5746_v59 = vpop.eup %4494  ;;  %4504 = vpow2.f32 %v2881_v27 }
 0xb47   :  { %v2895_v0 = vsel %vm72_vm0, %v5746_v59, 0.0  ;;  %v5750_v51 = vpop.eup %4496 }
 0xb48   :  { %2687 = vadd.xlane.f32.xlu1 %v2686_v36  ;;  %v2889_v31 = vsel %vm72_vm0, %v5750_v51, 0.0  ;;  %v3840_v36 = vld [vmem:[%s6083_s11 + $0xf8] sm:$0xff] }
 0xb4c   :  { %2690 = vadd.xlane.f32.xlu1 %v2689_v35 }
 0xb4e   :  { %v5757_v54 = vpop.eup %4498 }
 0xb4f   :  { %v2892_v62 = vsel %vm72_vm0, %v5757_v54, 0.0  ;;  %v5761_v42 = vpop.eup %4500 }
 0xb50   :  { %2896 = vadd.xlane.f32.xlu1 %v2895_v0  ;;  %v2883_v26 = vsel %vm72_vm0, %v5761_v42, 0.0 }
 0xb52   :  { %v5766_v11 = vpop.eup %4502 }
 0xb53   :  { %1990 = vperm.xlu0 %4318, %v3758_v6   ;;  %v2886_v16 = vsel %vm72_vm0, %v5766_v11, 0.0  ;;  %v5770_v41 = vpop.eup %4504 }
 0xb54   :  { %2890 = vadd.xlane.f32.xlu1 %v2889_v31  ;;  %v2898_v33 = vsel %vm72_vm0, %v5770_v41, 0.0 }
 0xb58   :  { %2893 = vadd.xlane.f32.xlu1 %v2892_v62  ;;  %v3838_v62 = vld [vmem:[%s6083_s11 + $0xe8] sm:$0xff] }
 0xb5c   :  { %2884 = vadd.xlane.f32.xlu1 %v2883_v26 }
 0xb60   :  { %2887 = vadd.xlane.f32.xlu1 %v2886_v16 }
 0xb71   :  { %1995 = vperm.xlu1 %4319, %v3759_v63  }
 0xb72   :  { %2899 = vadd.xlane.f32.xlu0 %v2898_v33 }
 0xb75   :  { %3051 = vperm.xlu1 %4319, %v3797_v43  }
 0xb79   :  { %3056 = vperm.xlu1 %4319, %v3798_v48   ;;  %v2258_v44 = vpop.xlane.xlu0 %2257 }
 0xb7d   :  { %3061 = vperm.xlu1 %4319, %v3799_v57   ;;  %v3829_v57 = vld [vmem:[%s6083_s11 + $0xa0] sm:$0xff] }
 0xb81   :  { %3066 = vperm.xlu1 %4319, %v3800_v4   ;;  %v2264_v17 = vpop.xlane.xlu0 %2263 }
 0xb85   :  { %3137 = vperm.xlu1 %4319, %v3803_v8   ;;  %v2267_v23 = vpop.xlane.xlu1 %2266 }
 0xb88   :  { %2000 = vperm.xlu0 %4318, %v3760_v34  }
 0xb89   :  { %v2270_v19 = vpop.xlane.xlu0 %2269  ;;  %3161 = vperm.xlu1 %4319, %v3807_v56   ;;  %v5862_v56 = vpop.f32.mrf.mxu1 }
 0xb8a   :  { %4506 = vrcp.f32 %v2270_v19  ;;  %v3825_v19 = vld [vmem:[%s6083_s11 + $0x80] sm:$0xff] }
 0xb8c   :  { %3142 = vperm.xlu0 %4318, %v3804_v12   ;;  %v2117_v12 = vpop.f32.mrf.mxu1 }
 0xb8d   :  { %3127 = vperm.xlu1 %4319, %v3801_v28   ;;  %v2273_v10 = vpop.xlane.xlu1 %2272 }
 0xb8e   :  { %4508 = vrcp.f32 %v2273_v10 }
 0xb8f   :  { %4510 = vrcp.f32 %v2267_v23 }
 0xb90   :  { %3166 = vperm.xlu0 %4318, %v3808_v18   ;;  %4512 = vrcp.f32 %v2264_v17  ;;  %v3827_v17 = vld [vmem:[%s6083_s11 + $0x90] sm:$0xff] }
 0xb91   :  { %3151 = vperm.xlu1 %4319, %v3805_v60   ;;  %v2261_v45 = vpop.xlane.xlu1 %2260  ;;  %v1986_v28 = vpop.permute.xlu0 %1985  ;;  %v3863_v60 = vld [vmem:[%s6084_s13 + $0x20] sm:$0xff] }
 0xb92   :  { %4514 = vrcp.f32 %v2261_v45  ;;  %v2118_v18 = vadd.f32 %v2117_v12, %v1986_v28 }
 0xb93   :  { %4516 = vrcp.f32 %v2258_v44 }
 0xb94   :  { %3132 = vperm.xlu0 %4318, %v3802_v22   ;;  %v2134_v45 = vpack.c.bf16 %v2118_v18, %v2118_v18 }
 0xb95   :  { %3281 = vperm.xlu1 %4319, %v3839_v25   ;;  %v2470_v22 = vpop.xlane.xlu1 %2469  ;;  %v3826_v25 = vld [vmem:[%s6083_s11 + $0x88] sm:$0xff] }
 0xb97   :  { %v4507_v55 = vpop.eup %4506 }
 0xb98   :  { %3156 = vperm.xlu0 %4318, %v3806_v37   ;;  %v2284_v0 = vmul.f32 %v4507_v55, %v5667_v29  ;;  %v3836_v29 = vld [vmem:[%s6083_s11 + $0xd8] sm:$0xff]  ;;  %v3865_v37 = vld [vmem:[%s6084_s13 + $0x30] sm:$0xff]  ;;  %v3864_v55 = vld [vmem:[%s6084_s13 + $0x28] sm:$0xff] }
 0xb99   :  { %3271 = vperm.xlu1 %4319, %v3837_v13  }
 0xb9b   :  { %v4509_v35 = vpop.eup %4508 }
 0xb9c   :  { %3286 = vperm.xlu0 %4318, %v3840_v36   ;;  %v2285_v6 = vmul.f32 %v4509_v35, %v5672_v21  ;;  %v4511_v31 = vpop.eup %4510  ;;  %v3831_v21 = vld [vmem:[%s6083_s11 + $0xb0] sm:$0xff]  ;;  %v3573_v36 = vld [vmem:[%s6088_s14] sm:$0xff]  ;;  %v3866_v35 = vld [vmem:[%s6084_s13 + $0x38] sm:$0xff] }
 0xb9d   :  { %3261 = vperm.xlu1 %4319, %v3835_v46   ;;  %v4513_v27 = vpop.eup %4512  ;;  %v2283_v63 = vmul.f32 %v4511_v31, %v5663_v49  ;;  %v3834_v49 = vld [vmem:[%s6083_s11 + $0xc8] sm:$0xff]  ;;  %v2476_v13 = vpop.xlane.xlu1 %2475 }
 0xb9e   :  { %v2288_v26 = vpack.c.bf16 %v2285_v6, %v2284_v0  ;;  %v2282_v33 = vmul.f32 %v4513_v27, %v5658_v3  ;;  %v3832_v3 = vld [vmem:[%s6083_s11 + $0xb8] sm:$0xff]  ;;  %v3575_v6 = vld [vmem:[%s6088_s14 + $0x10] sm:$0xff] }
 0xb9f   :  { %v4515_v48 = vpop.eup %4514 }
 0xba0   :  { %3276 = vperm.xlu0 %4318, %v3838_v62   ;;  %v2299_v16 = vsel %vm72_vm0, %v2288_v26, 0  ;;  %v2287_v43 = vpack.c.bf16 %v2283_v63, %v2282_v33  ;;  %v4517_v4 = vpop.eup %4516  ;;  %v2281_v8 = vmul.f32 %v4515_v48, %v5676_v30  ;;  %v3830_v30 = vld [vmem:[%s6083_s11 + $0xa8] sm:$0xff]  ;;  %v3577_v26 = vld [vmem:[%s6089_s15] sm:$0xff]  ;;  %v3580_v48 = vld [vmem:[%s6089_s15 + $0x18] sm:$0xff] }
 0xba1   :  { %3251 = vperm.xlu1 %4319, %v3833_v5   ;;  %4186 = vmatpush3.bf16.xpose.msra.mxu1 %v2299_v16  ;;  %v2280_v34 = vmul.f32 %v4517_v4, %v5652_v61  ;;  %v3828_v61 = vld [vmem:[%s6083_s11 + $0x98] sm:$0xff]  ;;  %v3574_v62 = vld [vmem:[%s6088_s14 + $0x8] sm:$0xff] }
 0xba2   :  { %4187 = vmatprep.subr.bf16.mxu1 %v4569_v20  ;;  %v2296_v44 = vsel %vm72_vm0, %v2287_v43, 0  ;;  %v3576_v16 = vld [vmem:[%s6088_s14 + $0x18] sm:$0xff]  ;;  %v3578_v33 = vld [vmem:[%s6089_s15 + $0x8] sm:$0xff] }
 0xba3   :  { %v2286_v23 = vpack.c.bf16 %v2281_v8, %v2280_v34 }
 0xba4   :  { %3266 = vperm.xlu0 %4318, %v3836_v29   ;;  %v3579_v29 = vld [vmem:[%s6089_s15 + $0x10] sm:$0xff] }
 0xba5   :  { %3241 = vperm.xlu1 %4319, %v3831_v21   ;;  %v2293_v10 = vsel %vm72_vm0, %v2286_v23, 0  ;;  %v2482_v46 = vpop.xlane.xlu1 %2481 }
 0xba6   :  { %4518 = vrcp.f32 %v2482_v46 }
 0xba8   :  { %3256 = vperm.xlu0 %4318, %v3834_v49  }
 0xba9   :  { %3231 = vperm.xlu1 %4319, %v3829_v57   ;;  %4188 = vmatpush3.bf16.xpose.msra.mxu1 %v2296_v44 }
 0xbaa   :  { %4189 = vmatprep.subr.bf16.mxu1 %v4569_v20 }
 0xbac   :  { %3246 = vperm.xlu0 %4318, %v3832_v3  }
 0xbad   :  { %3221 = vperm.xlu1 %4319, %v3827_v17  }
 0xbb0   :  { %3236 = vperm.xlu0 %4318, %v3830_v30  }
 0xbb1   :  { %3211 = vperm.xlu1 %4319, %v3825_v19   ;;  %4190 = vmatpush3.bf16.xpose.msra.mxu1 %v2293_v10 }
 0xbb2   :  { %4209 = vmatprep.subr.bf16.mxu1 %v4569_v20 }
 0xbb3   :  { %v4519_v57 = vpop.eup %4518 }
 0xbb4   :  { %3226 = vperm.xlu0 %4318, %v3828_v61   ;;  %v2494_v8 = vmul.f32 %v4519_v57, %v5692_v9 }
 0xbb5   :  { %3551 = vperm.xlu1 %4319, %v3863_v60   ;;  %v5925_v60 = vpop.f32.mrf.mxu1 }
 0xbb8   :  { %3216 = vperm.xlu0 %4318, %v3826_v25   ;;  %4192 = vmatmul.mubr.msk.bf16.vlgmr.msra.gmra.mxu1 %vm72_vm0, %v2134_v45 }
 0xbb9   :  { %3561 = vperm.xlu1 %4319, %v3865_v37   ;;  %4215 = vmatprep.mubr.msk.bf16.mxu1 %vm4570_vm2, %v4569_v20 }
 0xbbc   :  { %3556 = vperm.xlu0 %4318, %v3864_v55  }
 0xbbd   :  { %3625 = vperm.xlu1 %4319, %v3573_v36  }
 0xbbe   :  { %v2467_v0 = vpop.xlane.xlu0 %2466 }
 0xbc0   :  { %3566 = vperm.xlu0 %4318, %v3866_v35  }
 0xbc1   :  { %3635 = vperm.xlu1 %4319, %v3575_v6   ;;  %v2676_v31 = vpop.xlane.xlu1 %2675 }
 0xbc2   :  { %v2473_v5 = vpop.xlane.xlu0 %2472 }
 0xbc4   :  { %3630 = vperm.xlu0 %4318, %v3574_v62  }
 0xbc5   :  { %3649 = vperm.xlu1 %4319, %v3577_v26   ;;  %v2679_v27 = vpop.xlane.xlu1 %2678 }
 0xbc6   :  { %v2479_v63 = vpop.xlane.xlu0 %2478 }
 0xbc7   :  { %4520 = vrcp.f32 %v2479_v63 }
 0xbc8   :  { %3640 = vperm.xlu0 %4318, %v3576_v16   ;;  %4522 = vrcp.f32 %v2473_v5 }
 0xbc9   :  { %3659 = vperm.xlu1 %4319, %v3579_v29   ;;  %v2682_v21 = vpop.xlane.xlu1 %2681  ;;  %4524 = vrcp.f32 %v2476_v13 }
 0xbca   :  { %4526 = vrcp.f32 %v2467_v0 }
 0xbcb   :  { %4528 = vrcp.f32 %v2470_v22 }
 0xbcc   :  { %3654 = vperm.xlu0 %4318, %v3578_v33  }
 0xbcd   :  { %v2685_v43 = vpop.xlane.xlu1 %2684 }
 0xbce   :  { %v1991_v37 = vpop.permute.xlu0 %1990 }
 0xbd0   :  { %3664 = vperm.xlu0 %4318, %v3580_v48  }
 0xbd1   :  { %v2688_v49 = vpop.xlane.xlu1 %2687 }
 0xbd4   :  { %v4521_v4 = vpop.eup %4520 }
 0xbd5   :  { %v2493_v44 = vmul.f32 %v4521_v4, %v5718_v7  ;;  %v4523_v3 = vpop.eup %4522  ;;  %v2691_v17 = vpop.xlane.xlu1 %2690 }
 0xbd6   :  { %v4525_v23 = vpop.eup %4524  ;;  %4530 = vrcp.f32 %v2691_v17  ;;  %v2491_v19 = vmul.f32 %v4523_v3, %v5709_v38 }
 0xbd7   :  { %v2497_v34 = vpack.c.bf16 %v2494_v8, %v2493_v44  ;;  %4532 = vrcp.f32 %v2688_v49  ;;  %v2492_v12 = vmul.f32 %v4525_v23, %v5685_v32  ;;  %v4527_v10 = vpop.eup %4526  ;;  %v2120_v32 = vpop.f32.mrf.mxu1 }
 0xbd8   :  { %v4529_v7 = vpop.eup %4528  ;;  %4534 = vrcp.f32 %v2685_v43  ;;  %v2489_v61 = vmul.f32 %v4527_v10, %v5704_v15  ;;  %v2121_v36 = vadd.f32 %v2120_v32, %v1991_v37 }
 0xbd9   :  { %v2508_v30 = vsel %vm72_vm0, %v2497_v34, 0  ;;  %v2496_v28 = vpack.c.bf16 %v2492_v12, %v2491_v19  ;;  %v2897_v18 = vpop.xlane.xlu1 %2896  ;;  %4536 = vrcp.f32 %v2682_v21  ;;  %v2490_v38 = vmul.f32 %v4529_v7, %v5681_v40 }
 0xbda   :  { %4210 = vmatpush3.bf16.xpose.msra.mxu1 %v2508_v30  ;;  %4538 = vrcp.f32 %v2679_v27  ;;  %v2343_v6 = vpack.c.bf16 %v2121_v36, %v2121_v36 }
 0xbdb   :  { %4211 = vmatprep.subr.bf16.mxu1 %v4569_v20  ;;  %v2505_v9 = vsel %vm72_vm0, %v2496_v28, 0  ;;  %v2495_v22 = vpack.c.bf16 %v2490_v38, %v2489_v61  ;;  %4540 = vrcp.f32 %v2676_v31  ;;  %v4344_v61 = vld [vmem:[%s6085_s6 + $0x10] sm:$0xff]  }
 0xbdc   :  { %4542 = vrcp.f32 %v2897_v18  ;;  %4271 = vmatprep.mubr.msk.bf16.mxu0 %vm280_vm1, %v4344_v61 }
 0xbdd   :  { %v2891_v13 = vpop.xlane.xlu1 %2890  ;;  %v2502_v55 = vsel %vm72_vm0, %v2495_v22, 0 }
 0xbe1   :  { %v2894_v0 = vpop.xlane.xlu1 %2893 }
 0xbe2   :  { %4212 = vmatpush3.bf16.xpose.msra.mxu1 %v2505_v9 }
 0xbe3   :  { %4213 = vmatprep.subr.bf16.mxu1 %v4569_v20  ;;  %v4531_v25 = vpop.eup %4530 }
 0xbe4   :  { %v4533_v45 = vpop.eup %4532  ;;  %v2703_v15 = vmul.f32 %v4531_v25, %v5742_v52 }
 0xbe5   :  { %v2702_v46 = vmul.f32 %v4533_v45, %v5737_v50  ;;  %v4535_v40 = vpop.eup %4534  ;;  %v2885_v50 = vpop.xlane.xlu1 %2884 }
 0xbe6   :  { %v4537_v62 = vpop.eup %4536  ;;  %v2701_v26 = vmul.f32 %v4535_v40, %v5732_v47 }
 0xbe7   :  { %v2706_v35 = vpack.c.bf16 %v2703_v15, %v2702_v46  ;;  %v2700_v52 = vmul.f32 %v4537_v62, %v5725_v39  ;;  %v4539_v27 = vpop.eup %4538 }
 0xbe8   :  { %v4541_v16 = vpop.eup %4540  ;;  %v2699_v29 = vmul.f32 %v4539_v27, %v5720_v1 }
 0xbe9   :  { %v2717_v5 = vsel %vm72_vm0, %v2706_v35, 0  ;;  %v2705_v31 = vpack.c.bf16 %v2701_v26, %v2700_v52  ;;  %v2888_v21 = vpop.xlane.xlu1 %2887  ;;  %v2698_v33 = vmul.f32 %v4541_v16, %v5711_v53  ;;  %v4543_v1 = vpop.eup %4542 }
 0xbea   :  { %4214 = vmatpush3.bf16.xpose.msra.mxu1 %v2502_v55  ;;  %v2911_v53 = vmul.f32 %v4543_v1, %v5746_v59 }
 0xbeb   :  { %4233 = vmatprep.subr.bf16.mxu1 %v4569_v20  ;;  %v2714_v63 = vsel %vm72_vm0, %v2705_v31, 0  ;;  %v2704_v43 = vpack.c.bf16 %v2699_v29, %v2698_v33 }
 0xbed   :  { %v1996_v39 = vpop.permute.xlu1 %1995  ;;  %v2711_v48 = vsel %vm72_vm0, %v2704_v43, 0 }
 0xbee   :  { %v2126_v49 = vadd.f32 %v5862_v56, %v1996_v39 }
 0xbf0   :  { %v2552_v57 = vpack.c.bf16 %v2126_v49, %v2126_v49 }
 0xbf1   :  { %4216 = vmatmul.mubr.msk.bf16.vlgmr.msra.gmra.mxu1 %vm72_vm0, %v2343_v6  ;;  %v4346_v6 = vld [vmem:[%s6086_s10 + $0x40] sm:$0xff]   ;;  %v3052_v62 = vpop.permute.xlu1 %3051 }
 0xbf2   :  { %4234 = vmatpush3.bf16.xpose.msra.mxu1 %v2717_v5  ;;  %4239 = vmatprep.mubr.msk.bf16.mxu1 %vm4570_vm2, %v4569_v20 }
 0xbf3   :  { %4235 = vmatprep.subr.bf16.mxu1 %v4569_v20 }
 0xbf5   :  { %v3057_v5 = vpop.permute.xlu1 %3056 }
 0xbf9   :  { %v3062_v31 = vpop.permute.xlu1 %3061 }
 0xbfa   :  { %4236 = vmatpush3.bf16.xpose.msra.mxu1 %v2714_v63 }
 0xbfb   :  { %v2900_v47 = vpop.xlane.xlu0 %2899  ;;  %4237 = vmatprep.subr.bf16.mxu1 %v4569_v20 }
 0xbfc   :  { %4544 = vrcp.f32 %v2900_v47 }
 0xbfd   :  { %4546 = vrcp.f32 %v2894_v0  ;;  %v4345_v0 = vld [vmem:[%s6085_s6 + $0x18] sm:$0xff]   ;;  %v3067_v39 = vpop.permute.xlu1 %3066 }
 0xbfe   :  { %4548 = vrcp.f32 %v2891_v13 }
 0xbff   :  { %4550 = vrcp.f32 %v2888_v21 }
 0xc00   :  { %4552 = vrcp.f32 %v2885_v50 }
 0xc02   :  { %4238 = vmatpush3.bf16.xpose.msra.mxu1 %v2711_v48 }
 0xc03   :  { %4257 = vmatprep.subr.bf16.mxu1 %v4569_v20  ;;  %v2001_v7 = vpop.permute.xlu0 %2000 }
 0xc04   :  { %v2129_v9 = vadd.f32 %v5925_v60, %v2001_v7 }
 0xc09   :  { %v4545_v4 = vpop.eup %4544  ;;  %4240 = vmatmul.mubr.msk.bf16.vlgmr.msra.gmra.mxu1 %vm72_vm0, %v2552_v57 }
 0xc0a   :  { %v2912_v44 = vmul.f32 %v4545_v4, %v5770_v41  ;;  %4263 = vmatprep.mubr.msk.bf16.mxu1 %vm4570_vm2, %v4569_v20  ;;  %v4547_v8 = vpop.eup %4546 }
 0xc0b   :  { %v4549_v17 = vpop.eup %4548  ;;  %v2910_v34 = vmul.f32 %v4547_v8, %v5757_v54 }
 0xc0c   :  { %v2915_v3 = vpack.c.bf16 %v2912_v44, %v2911_v53  ;;  %v2909_v23 = vmul.f32 %v4549_v17, %v5750_v51  ;;  %v4551_v19 = vpop.eup %4550  ;;  %v2761_v51 = vpack.c.bf16 %v2129_v9, %v2129_v9 }
 0xc0d   :  { %v4553_v59 = vpop.eup %4552  ;;  %v2908_v12 = vmul.f32 %v4551_v19, %v5766_v11 }
 0xc0e   :  { %v2926_v56 = vsel %vm72_vm0, %v2915_v3, 0  ;;  %v2914_v30 = vpack.c.bf16 %v2910_v34, %v2909_v23  ;;  %v2907_v28 = vmul.f32 %v4553_v59, %v5761_v42 }
 0xc0f   :  { %4258 = vmatpush3.bf16.xpose.msra.mxu1 %v2926_v56 }
 0xc10   :  { %4259 = vmatprep.subr.bf16.mxu1 %v4569_v20  ;;  %v2923_v41 = vsel %vm72_vm0, %v2914_v30, 0  ;;  %v2913_v10 = vpack.c.bf16 %v2908_v12, %v2907_v28 }
 0xc12   :  { %v2920_v54 = vsel %vm72_vm0, %v2913_v10, 0 }
 0xc17   :  { %4260 = vmatpush3.bf16.xpose.msra.mxu1 %v2923_v41 }
 0xc18   :  { %4261 = vmatprep.subr.bf16.mxu1 %v4569_v20 }
 0xc1f   :  { %4262 = vmatpush3.bf16.xpose.msra.mxu1 %v2920_v54 }
 0xc26   :  { %4264 = vmatmul.mubr.msk.bf16.vlgmr.msra.gmra.mxu1 %vm72_vm0, %v2761_v51 }
 0xc27   :  { %4279 = vmatprep.mubr.msk.bf16.mxu1 %vm280_vm1, %v4346_v6 }
 0xc78   :  { %v2335_v11 = vpop.f32.mrf.mxu1 }
 0xc7a   :  { %v4193_v20 = vpop.f32.mrf.mxu1 }
 0xc7c   :  { %v2338_v18 = vpop.f32.mrf.mxu1 }
 0xc7e   :  { %v4194_v42 = vpop.f32.mrf.mxu1 }
 0xcb1   :  { %v2544_v38 = vpop.f32.mrf.mxu1 }
 0xcb2   :  { %v2973_v46 = vpack.c.bf16 %v2544_v38, %v2335_v11 }
 0xcb3   :  { %v4217_v22 = vpop.f32.mrf.mxu1 }
 0xcb5   :  { %v2547_v25 = vpop.f32.mrf.mxu1 }
 0xcb7   :  { %v4218_v32 = vpop.f32.mrf.mxu1 }
 0xcc9   :  { %v2753_v45 = vpop.f32.mrf.mxu1 }
 0xccb   :  { %v4241_v37 = vpop.f32.mrf.mxu1 }
 0xccc   :  { %v3138_v37 = vpop.permute.xlu1 %3137 }
 0xccd   :  { %v2756_v60 = vpop.f32.mrf.mxu1 }
 0xcce   :  { %v3143_v60 = vpop.permute.xlu0 %3142 }
 0xccf   :  { %v4242_v13 = vpop.f32.mrf.mxu1 }
 0xcd0   :  { %v3162_v13 = vpop.permute.xlu1 %3161 }
 0xce6   :  { %v2962_v55 = vpop.f32.mrf.mxu1 }
 0xce7   :  { %v2974_v15 = vpack.c.bf16 %v2962_v55, %v2753_v45  ;;  %v3167_v55 = vpop.permute.xlu0 %3166 }
 0xce8   :  { %v4265_v36 = vpop.f32.mrf.mxu1 }
 0xce9   :  { %4267 = vmatprep.subr.bf16.mxu0 %v2974_v15 }
 0xcea   :  { %v2965_v35 = vpop.f32.mrf.mxu1  ;;  %4268 = vmatpush3.bf16.msra.mxu0 %v2974_v15  ;;  %v3128_v15 = vpop.permute.xlu1 %3127 }
 0xceb   :  { %4269 = vmatprep.subr.bf16.mxu0 %v2973_v46  ;;  %v3133_v36 = vpop.permute.xlu0 %3132 }
 0xcec   :  { %v4266_v40 = vpop.f32.mrf.mxu1 }
 0xcee   :  { %4270 = vmatpush3.bf16.msra.mxu0 %v2973_v46 }
 0xcf1   :  { %4272 = vmatmul.mubr.msk.bf16.vlgmr.msra.gmra.mxu0 %vm280_vm1, %v4345_v0 }
 0xdb1   :  { %v4273_v26 = vpop.f32.mrf.mxu0 }
 0xdb2   :  { %v3042_v16 = vadd.f32 %v4273_v26, %v5409_v14 }
 0xdb3   :  { %v3025_v52 = vpop.f32.mrf.mxu0 }
 0xdb4   :  { %v3040_v50 = vadd.f32 %v3025_v52, %v5405_v2  ;;  %v5981_v33 = vadd.f32 %v3062_v31, %v3042_v16  ;;  %v3157_v31 = vpop.permute.xlu0 %3156 }
 0xdb5   :  { %v4274_v27 = vpop.f32.mrf.mxu0 }
 0xdb6   :  { %v5977_v29 = vadd.f32 %v3052_v62, %v3040_v50  ;;  %v3043_v21 = vadd.f32 %v4274_v27, %v5415_v58  ;;  %v3086_v1 = vsel %vm72_vm0, %v5981_v33, 0.0  ;;  %v3152_v50 = vpop.permute.xlu1 %3151 }
 0xdb7   :  { %v3028_v63 = vpop.f32.mrf.mxu0 }
 0xdb8   :  { %v3041_v47 = vadd.f32 %v3028_v63, %v5411_v24  ;;  %v3083_v48 = vsel %vm72_vm0, %v5977_v29, 0.0  ;;  %v5987_v2 = vadd.f32 %v3067_v39, %v3043_v21 }
 0xdba   :  { %v5983_v43 = vadd.f32 %v3057_v5, %v3041_v47  ;;  %v3088_v24 = vsel %vm72_vm0, %v5987_v2, 0.0 }
 0xdbc   :  { %v3084_v14 = vsel %vm72_vm0, %v5983_v43, 0.0 }
 0xdbd   :  { %v3085_v49 = vadd.f32 %v3084_v14, %v3083_v48  ;;  %v4347_v48 = vld [vmem:[%s6086_s10 + $0x48] sm:$0xff]   ;;  %v4348_v14 = vld [vmem:[%s6086_s10 + $0x50] sm:$0xff]  }
 0xdbf   :  { %v3087_v58 = vadd.f32 %v3086_v1, %v3085_v49  ;;  %v4349_v49 = vld [vmem:[%s6086_s10 + $0x58] sm:$0xff]   ;;  %v4350_v1 = vld [vmem:[%s6086_s10 + $0x60] sm:$0xff]  }
 0xdc1   :  { %v3089_v57 = vadd.f32 %v3088_v24, %v3087_v58  ;;  %v4351_v58 = vld [vmem:[%s6086_s10 + $0x68] sm:$0xff]   ;;  %v4352_v24 = vld [vmem:[%s6086_s10 + $0x70] sm:$0xff]  }
 0xdc3   :  { %v3090_v4 = vrot.slane %v3089_v57, 4 }
 0xdc5   :  { %v3091_v53 = vadd.f32 %v3090_v4, %v3089_v57  ;;  %v4353_v57 = vld [vmem:[%s6086_s10 + $0x78] sm:$0xff]   ;;  %v4354_v4 = vld [vmem:[%s6087_s12 + $0x10] sm:$0xff]  }
 0xdc6   :  { %4311 = vmatprep.mubr.bf16.mxu0 %v4354_v4 }
 0xdc7   :  { %v3092_v44 = vrot.slane %v3091_v53, 2 }
 0xdc9   :  { %v3093_v8 = vadd.f32 %v3092_v44, %v3091_v53 }
 0xdcb   :  { %v3094_v3 = vrot.slane %v3093_v8, 1 }
 0xdcd   :  { %v3095_v17 = vadd.f32 %v3094_v3, %v3093_v8 }
 0xdcf   :  { %v3096_v56 = vmul.f32 0.03125, %v3095_v17  ;;  %v3287_v17 = vpop.permute.xlu0 %3286 }
 0xdd1   :  { %v3097_v34 = vsub.f32 %v5977_v29, %v3096_v56  ;;  %v3098_v23 = vsub.f32 %v5983_v43, %v3096_v56  ;;  %v3099_v30 = vsub.f32 %v5981_v33, %v3096_v56  ;;  %v3100_v19 = vsub.f32 %v5987_v2, %v3096_v56 }
 0xdd3   :  { %v3101_v59 = vmul.f32 %v3097_v34, %v3097_v34  ;;  %v3102_v41 = vmul.f32 %v3098_v23, %v3098_v23  ;;  %v3103_v12 = vmul.f32 %v3099_v30, %v3099_v30  ;;  %v3104_v28 = vmul.f32 %v3100_v19, %v3100_v19 }
 0xdd5   :  { %v3105_v10 = vsel %vm72_vm0, %v3101_v59, 0.0  ;;  %v3106_v7 = vsel %vm72_vm0, %v3102_v41, 0.0  ;;  %v3108_v9 = vsel %vm72_vm0, %v3103_v12, 0.0  ;;  %v3110_v61 = vsel %vm72_vm0, %v3104_v28, 0.0 }
 0xdd6   :  { %v3107_v54 = vadd.f32 %v3106_v7, %v3105_v10 }
 0xdd8   :  { %v3109_v51 = vadd.f32 %v3108_v9, %v3107_v54 }
 0xdda   :  { %v3111_v11 = vadd.f32 %v3110_v61, %v3109_v51 }
 0xddc   :  { %v3112_v20 = vrot.slane %v3111_v11, 4 }
 0xdde   :  { %v3113_v18 = vadd.f32 %v3112_v20, %v3111_v11 }
 0xde0   :  { %v3114_v42 = vrot.slane %v3113_v18, 2 }
 0xde2   :  { %v3115_v38 = vadd.f32 %v3114_v42, %v3113_v18 }
 0xde4   :  { %v3116_v22 = vrot.slane %v3115_v38, 1 }
 0xde6   :  { %v3117_v25 = vadd.f32 %v3116_v22, %v3115_v38 }
 0xde8   :  { %v3118_v32 = vmul.f32 0.03125, %v3117_v25 }
 0xdea   :  { %v3119_v45 = vadd.f32 1e-05, %v3118_v32 }
 0xdec   :  { %4554 = vrsqrt.f32 %v3119_v45 }
 0xdf9   :  { %v4555_v46 = vpop.eup %4554 }
 0xdfa   :  { %v3122_v35 = vmul.f32 %v4555_v46, %v3098_v23  ;;  %v3123_v40 = vmul.f32 %v4555_v46, %v3099_v30  ;;  %v3124_v0 = vmul.f32 %v4555_v46, %v3100_v19  ;;  %v3121_v6 = vmul.f32 %v4555_v46, %v3097_v34  ;;  %v3282_v34 = vpop.permute.xlu1 %3281  ;;  %v3277_v19 = vpop.permute.xlu0 %3276 }
 0xdfc   :  { %v3147_v62 = vmul.f32 %v3138_v37, %v3123_v40  ;;  %v3148_v5 = vmul.f32 %v3143_v60, %v3124_v0  ;;  %v3145_v26 = vmul.f32 %v3128_v15, %v3121_v6  ;;  %v3146_v52 = vmul.f32 %v3133_v36, %v3122_v35 }
 0xdfe   :  { %v3171_v27 = vadd.f32 %v3162_v13, %v3147_v62  ;;  %v3172_v16 = vadd.f32 %v3167_v55, %v3148_v5  ;;  %v3169_v63 = vadd.f32 %v3152_v50, %v3145_v26  ;;  %v3170_v21 = vadd.f32 %v3157_v31, %v3146_v52  ;;  %v3272_v41 = vpop.permute.xlu1 %3271  ;;  %v3267_v10 = vpop.permute.xlu0 %3266 }
 0xe00   :  { %v3191_v47 = vpack.c.bf16 %v3172_v16, %v3171_v27  ;;  %v3190_v39 = vpack.c.bf16 %v3170_v21, %v3169_v63 }
 0xe02   :  { %4275 = vmatprep.subr.bf16.mxu1 %v3191_v47  ;;  %v3262_v54 = vpop.permute.xlu1 %3261  ;;  %v3257_v61 = vpop.permute.xlu0 %3256 }
 0xe03   :  { %4276 = vmatpush3.bf16.msra.mxu1 %v3191_v47 }
 0xe04   :  { %4277 = vmatprep.subr.bf16.mxu1 %v3190_v39 }
 0xe06   :  { %v3252_v18 = vpop.permute.xlu1 %3251  ;;  %v3247_v13 = vpop.permute.xlu0 %3246 }
 0xe07   :  { %4278 = vmatpush3.bf16.msra.mxu1 %v3190_v39 }
 0xe0a   :  { %4280 = vmatmul.mubr.msk.bf16.vlgmr.msra.gmra.mxu1 %vm280_vm1, %v4347_v48  ;;  %v3242_v35 = vpop.permute.xlu1 %3241  ;;  %v3237_v26 = vpop.permute.xlu0 %3236 }
 0xe0b   :  { %4283 = vmatprep.mubr.msk.bf16.mxu1 %vm280_vm1, %v4348_v14 }
 0xe0e   :  { %v3232_v27 = vpop.permute.xlu1 %3231  ;;  %v3227_v48 = vpop.permute.xlu0 %3226 }
 0xe12   :  { %4284 = vmatmul.mubr.msk.bf16.gmra.mxu1 %vm280_vm1, %v4349_v49 }
 0xe13   :  { %4287 = vmatprep.mubr.msk.bf16.mxu1 %vm280_vm1, %v4350_v1  ;;  %v3222_v1 = vpop.permute.xlu1 %3221 }
 0xe1a   :  { %4288 = vmatmul.mubr.msk.bf16.gmra.mxu1 %vm280_vm1, %v4351_v58 }
 0xe1b   :  { %4291 = vmatprep.mubr.msk.bf16.mxu1 %vm280_vm1, %v4352_v24 }
 0xe22   :  { %4292 = vmatmul.mubr.msk.bf16.gmra.mxu1 %vm280_vm1, %v4353_v57 }
 0xeca   :  { %v6034_v53 = vpop.f32.mrf.mxu1 }
 0xecb   :  { %v3396_v4 = vadd.f32 %v6034_v53, %v3222_v1  ;;  %v4355_v53 = vld [vmem:[%s6087_s12 + $0x18] sm:$0xff]  }
 0xecc   :  { %v6036_v44 = vpop.f32.mrf.mxu1 }
 0xece   :  { %v4282_v8 = vpop.f32.mrf.mxu1 }
 0xecf   :  { %v3399_v58 = vadd.f32 %v4282_v8, %v3227_v48 }
 0xed0   :  { %v6038_v3 = vpop.f32.mrf.mxu1 }
 0xed2   :  { %v4285_v56 = vpop.f32.mrf.mxu1 }
 0xed3   :  { %v3412_v16 = vadd.f32 %v4285_v56, %v3242_v35  ;;  %v3217_v56 = vpop.permute.xlu0 %3216 }
 0xed4   :  { %v3403_v23 = vpop.f32.mrf.mxu1 }
 0xed5   :  { %v3456_v14 = vmax.f32 %v3412_v16, 0.0  ;;  %v3404_v49 = vadd.f32 %v3403_v23, %v3232_v27 }
 0xed6   :  { %v4286_v30 = vpop.f32.mrf.mxu1 }
 0xed7   :  { %v3415_v52 = vadd.f32 %v4286_v30, %v3247_v13  ;;  %v3391_v30 = vadd.f32 %v6038_v3, %v3217_v56 }
 0xed8   :  { %v3406_v59 = vpop.f32.mrf.mxu1 }
 0xed9   :  { %v3457_v21 = vmax.f32 %v3415_v52, 0.0  ;;  %v3407_v47 = vadd.f32 %v3406_v59, %v3237_v26  ;;  %v3212_v59 = vpop.permute.xlu1 %3211  ;;  %v3451_v8 = vmax.f32 %v3391_v30, 0.0 }
 0xeda   :  { %v4289_v12 = vpop.f32.mrf.mxu1  ;;  %v3388_v23 = vadd.f32 %v6036_v44, %v3212_v59 }
 0xedb   :  { %v3428_v55 = vadd.f32 %v4289_v12, %v3262_v54  ;;  %v3474_v24 = vpack.c.bf16 %v3457_v21, %v3456_v14  ;;  %v3455_v57 = vmax.f32 %v3407_v47, 0.0 }
 0xedc   :  { %v3419_v28 = vpop.f32.mrf.mxu1 }
 0xedd   :  { %v3460_v62 = vmax.f32 %v3428_v55, 0.0  ;;  %v3420_v5 = vadd.f32 %v3419_v28, %v3252_v18  ;;  %v3450_v28 = vmax.f32 %v3388_v23, 0.0 }
 0xede   :  { %v4290_v7 = vpop.f32.mrf.mxu1 }
 0xedf   :  { %v3431_v32 = vadd.f32 %v4290_v7, %v3267_v10  ;;  %v3458_v63 = vmax.f32 %v3420_v5, 0.0  ;;  %v3471_v10 = vpack.c.bf16 %v3451_v8, %v3450_v28  ;;  %v3552_v7 = vpop.permute.xlu1 %3551 }
 0xee0   :  { %v3422_v9 = vpop.f32.mrf.mxu1 }
 0xee1   :  { %v3461_v40 = vmax.f32 %v3431_v32, 0.0  ;;  %v3423_v0 = vadd.f32 %v3422_v9, %v3257_v61  ;;  %v3557_v9 = vpop.permute.xlu0 %3556 }
 0xee2   :  { %v4293_v51 = vpop.f32.mrf.mxu1 }
 0xee3   :  { %v3444_v20 = vadd.f32 %v4293_v51, %v3282_v34  ;;  %v3476_v50 = vpack.c.bf16 %v3461_v40, %v3460_v62  ;;  %v3459_v31 = vmax.f32 %v3423_v0, 0.0  ;;  %v3453_v34 = vmax.f32 %v3399_v58, 0.0 }
 0xee4   :  { %v3435_v11 = vpop.f32.mrf.mxu1 }
 0xee5   :  { %v3436_v38 = vadd.f32 %v3435_v11, %v3272_v41  ;;  %v3464_v45 = vmax.f32 %v3444_v20, 0.0  ;;  %v3475_v39 = vpack.c.bf16 %v3459_v31, %v3458_v63  ;;  %v3452_v41 = vmax.f32 %v3396_v4, 0.0  ;;  %v3567_v32 = vpop.permute.xlu0 %3566 }
 0xee6   :  { %v4294_v42 = vpop.f32.mrf.mxu1 }
 0xee7   :  { %v3447_v22 = vadd.f32 %v4294_v42, %v3287_v17  ;;  %v3462_v15 = vmax.f32 %v3436_v38, 0.0  ;;  %v3454_v17 = vmax.f32 %v3404_v49, 0.0  ;;  %v3472_v12 = vpack.c.bf16 %v3453_v34, %v3452_v41  ;;  %v3562_v38 = vpop.permute.xlu1 %3561 }
 0xee8   :  { %v3438_v25 = vpop.f32.mrf.mxu1 }
 0xee9   :  { %v3465_v37 = vmax.f32 %v3447_v22, 0.0  ;;  %v3439_v60 = vadd.f32 %v3438_v25, %v3277_v19  ;;  %v3473_v19 = vpack.c.bf16 %v3455_v57, %v3454_v17  ;;  %v3631_v30 = vpop.permute.xlu0 %3630 }
 0xeeb   :  { %v3478_v36 = vpack.c.bf16 %v3465_v37, %v3464_v45  ;;  %v3463_v46 = vmax.f32 %v3439_v60, 0.0  ;;  %v3626_v34 = vpop.permute.xlu1 %3625 }
 0xeed   :  { %v3477_v6 = vpack.c.bf16 %v3463_v46, %v3462_v15  ;;  %4295 = vmatprep.subr.bf16.mxu0 %v3478_v36  ;;  %v3641_v59 = vpop.permute.xlu0 %3640 }
 0xeee   :  { %4296 = vmatpush3.bf16.msra.mxu0 %v3478_v36 }
 0xeef   :  { %4297 = vmatprep.subr.bf16.mxu0 %v3477_v6 }
 0xef1   :  { %v3655_v23 = vpop.permute.xlu0 %3654 }
 0xef2   :  { %4298 = vmatpush3.bf16.msra.mxu0 %v3477_v6 }
 0xef3   :  { %4299 = vmatprep.subr.bf16.mxu0 %v3476_v50 }
 0xef6   :  { %4300 = vmatpush3.bf16.msra.mxu0 %v3476_v50 }
 0xef7   :  { %4301 = vmatprep.subr.bf16.mxu0 %v3475_v39 }
 0xefa   :  { %4302 = vmatpush3.bf16.msra.mxu0 %v3475_v39 }
 0xefb   :  { %4303 = vmatprep.subr.bf16.mxu0 %v3474_v24 }
 0xefe   :  { %4304 = vmatpush3.bf16.msra.mxu0 %v3474_v24 }
 0xeff   :  { %4305 = vmatprep.subr.bf16.mxu0 %v3473_v19 }
 0xf02   :  { %4306 = vmatpush3.bf16.msra.mxu0 %v3473_v19  ;;  %v3636_v19 = vpop.permute.xlu1 %3635 }
 0xf03   :  { %4307 = vmatprep.subr.bf16.mxu0 %v3472_v12 }
 0xf06   :  { %4308 = vmatpush3.bf16.msra.mxu0 %v3472_v12  ;;  %v3650_v41 = vpop.permute.xlu1 %3649 }
 0xf07   :  { %4309 = vmatprep.subr.bf16.mxu0 %v3471_v10 }
 0xf0a   :  { %4310 = vmatpush3.bf16.msra.mxu0 %v3471_v10 }
 0xf0d   :  { %4312 = vmatmul.mubr.bf16.vlgmr.msra.gmra.mxu0 %v4355_v53 }
 0xfcd   :  { %v4313_v3 = vpop.f32.mrf.mxu0 }
 0xfce   :  { %v3542_v61 = vadd.f32 %v4313_v3, %v5981_v33 }
 0xfcf   :  { %v3525_v54 = vpop.f32.mrf.mxu0 }
 0xfd0   :  { %v3540_v44 = vadd.f32 %v3525_v54, %v5977_v29  ;;  %v3571_v22 = vadd.f32 %v3562_v38, %v3542_v61 }
 0xfd1   :  { %v4314_v51 = vpop.f32.mrf.mxu0 }
 0xfd2   :  { %v3569_v20 = vadd.f32 %v3552_v7, %v3540_v44  ;;  %v3543_v18 = vadd.f32 %v4314_v51, %v5987_v2  ;;  %v3584_v13 = vsel %vm72_vm0, %v3571_v22, 0.0  ;;  %v3665_v51 = vpop.permute.xlu0 %3664 }
 0xfd3   :  { %v3528_v11 = vpop.f32.mrf.mxu0 }
 0xfd4   :  { %v3541_v42 = vadd.f32 %v3528_v11, %v5983_v43  ;;  %v3581_v45 = vsel %vm72_vm0, %v3569_v20, 0.0  ;;  %v3572_v37 = vadd.f32 %v3567_v32, %v3543_v18 }
 0xfd6   :  { %v3570_v25 = vadd.f32 %v3557_v9, %v3541_v42  ;;  %v3586_v33 = vsel %vm72_vm0, %v3572_v37, 0.0  ;;  %v3660_v9 = vpop.permute.xlu1 %3659 }
 0xfd8   :  { %v3582_v60 = vsel %vm72_vm0, %v3570_v25, 0.0 }
 0xfd9   :  { %v3583_v29 = vadd.f32 %v3582_v60, %v3581_v45 }
 0xfdb   :  { %v3585_v55 = vadd.f32 %v3584_v13, %v3583_v29 }
 0xfdd   :  { %v3587_v15 = vadd.f32 %v3586_v33, %v3585_v55 }
 0xfdf   :  { %v3588_v36 = vrot.slane %v3587_v15, 4 }
 0xfe1   :  { %v3589_v2 = vadd.f32 %v3588_v36, %v3587_v15 }
 0xfe3   :  { %v3590_v46 = vrot.slane %v3589_v2, 2 }
 0xfe5   :  { %v3591_v43 = vadd.f32 %v3590_v46, %v3589_v2 }
 0xfe7   :  { %v3592_v35 = vrot.slane %v3591_v43, 1 }
 0xfe9   :  { %v3593_v40 = vadd.f32 %v3592_v35, %v3591_v43 }
 0xfeb   :  { %v3594_v0 = vmul.f32 0.03125, %v3593_v40 }
 0xfed   :  { %v3595_v6 = vsub.f32 %v3569_v20, %v3594_v0  ;;  %v3596_v62 = vsub.f32 %v3570_v25, %v3594_v0  ;;  %v3597_v5 = vsub.f32 %v3571_v22, %v3594_v0  ;;  %v3598_v26 = vsub.f32 %v3572_v37, %v3594_v0 }
 0xfef   :  { %v3599_v52 = vmul.f32 %v3595_v6, %v3595_v6  ;;  %v3600_v50 = vmul.f32 %v3596_v62, %v3596_v62  ;;  %v3601_v31 = vmul.f32 %v3597_v5, %v3597_v5  ;;  %v3602_v27 = vmul.f32 %v3598_v26, %v3598_v26 }
 0xff1   :  { %v3603_v16 = vsel %vm72_vm0, %v3599_v52, 0.0  ;;  %v3604_v63 = vsel %vm72_vm0, %v3600_v50, 0.0  ;;  %v3606_v47 = vsel %vm72_vm0, %v3601_v31, 0.0  ;;  %v3608_v48 = vsel %vm72_vm0, %v3602_v27, 0.0 }
 0xff2   :  { %v3605_v21 = vadd.f32 %v3604_v63, %v3603_v16 }
 0xff4   :  { %v3607_v39 = vadd.f32 %v3606_v47, %v3605_v21 }
 0xff6   :  { %v3609_v14 = vadd.f32 %v3608_v48, %v3607_v39 }
 0xff8   :  { %v3610_v49 = vrot.slane %v3609_v14, 4 }
 0xffa   :  { %v3611_v1 = vadd.f32 %v3610_v49, %v3609_v14 }
 0xffc   :  { %v3612_v58 = vrot.slane %v3611_v1, 2 }
 0xffe   :  { %v3613_v24 = vadd.f32 %v3612_v58, %v3611_v1 }
0x1000   :  { %v3614_v57 = vrot.slane %v3613_v24, 1 }
0x1002   :  { %v3615_v4 = vadd.f32 %v3614_v57, %v3613_v24 }
0x1004   :  { %v3616_v17 = vmul.f32 0.03125, %v3615_v4 }
0x1006   :  { %v3617_v56 = vadd.f32 1e-05, %v3616_v17 }
0x1008   :  { %4556 = vrsqrt.f32 %v3617_v56 }
0x1015   :  { %v4557_v12 = vpop.eup %4556 }
0x1016   :  { %v3619_v8 = vmul.f32 %v4557_v12, %v3595_v6  ;;  %v3620_v28 = vmul.f32 %v4557_v12, %v3596_v62  ;;  %v3621_v10 = vmul.f32 %v4557_v12, %v3597_v5  ;;  %v3622_v53 = vmul.f32 %v4557_v12, %v3598_v26 }
0x1018   :  { %v3643_v3 = vmul.f32 %v3626_v34, %v3619_v8  ;;  %v3644_v7 = vmul.f32 %v3631_v30, %v3620_v28  ;;  %v3645_v54 = vmul.f32 %v3636_v19, %v3621_v10  ;;  %v3646_v44 = vmul.f32 %v3641_v59, %v3622_v53 }
0x101a   :  { %v3667_v61 = vadd.f32 %v3650_v41, %v3643_v3  ;;  %v3668_v11 = vadd.f32 %v3655_v23, %v3644_v7  ;;  %v3669_v20 = vadd.f32 %v3660_v9, %v3645_v54  ;;  %v3670_v18 = vadd.f32 %v3665_v51, %v3646_v44 }
0x101c   :  { %3671 = vst.msk [vmem:[%s6090_s16] sm:$0xff] %vm72_vm0, %v3667_v61  ;;  %3672 = vst.msk [vmem:[%s6090_s16 + $0x8] sm:$0xff] %vm72_vm0, %v3668_v11 }
0x101d   :  { %3673 = vst.msk [vmem:[%s6090_s16 + $0x10] sm:$0xff] %vm72_vm0, %v3669_v20  ;;  %3674 = vst.msk [vmem:[%s6090_s16 + $0x18] sm:$0xff] %vm72_vm0, %v3670_v18 }

</bundles_post_ra>
